<compile_context>
chip_gen: v5e
topology: v5e:2x2
jax: 0.10.0
libtpu: 0.0.40
codegen_flags: <defaults>
</compile_context>

<pallas_src>
import functools

import jax
import jax.numpy as jnp
from jax.experimental import pallas as pl
from jax.experimental.pallas import tpu as pltpu

K = 7
PAD = (K - 1) // 2  # = 3, "same" padding for the 7x7 conv


def spatial_gate_kernel(w_ref, b_ref, mask_ref, x_ref, o_ref, *, H, W):
    """One grid step = NB batch elements.

    w_ref   : (7, 7) f32 SMEM   -- conv weight with BatchNorm scale folded in
    b_ref   : (1, 1) f32 SMEM   -- folded BatchNorm bias
    mask_ref: (7, H*W) f32 VMEM -- per-kx column-validity masks (1.0 / 0.0)
    x_ref   : (NB, C, H*W) VMEM -- lane-dense input block
    o_ref   : (NB, C, H*W) VMEM -- lane-dense output block
    """
    NB, C, HW = x_ref.shape
    PADW = PAD * W + PAD  # flat halo: 3 rows + 3 cols worth of zeros

    # Hoist scalar weight reads (49 SMEM loads once) and the bias.
    wk = [[w_ref[ky, kx] for kx in range(K)] for ky in range(K)]
    bias = b_ref[0, 0]

    # Hoist the 7 column-tap masks (each (1, HW)).
    col_masks = [mask_ref[kx:kx + 1, :] for kx in range(K)]

    zpad = jnp.zeros((1, PADW), jnp.float32)

    for b in range(NB):  # static unroll; NB is kept small by the wrapper
        xb = x_ref[b]  # (C, HW), native dtype

        # ChannelPool: mean over channels, accumulated in f32.
        mean = jnp.sum(xb.astype(jnp.float32), axis=0, keepdims=True) * (1.0 / C)  # (1, HW)

        # Flat zero halo: a tap offset of dy*W + dx that walks past the first or
        # last image row lands in the zero halo; column wrap is masked below.
        padded = jnp.concatenate([zpad, mean, zpad], axis=1)  # (1, HW + 2*PADW)

        # 7x7 conv as 7 independent column-tap accumulators of 7 row taps each.
        # Tap (ky, kx) == padded[:, ky*W + kx : ky*W + kx + HW], i.e.
        # mean[i + ky - 3, j + kx - 3] with zeros outside (rows via halo,
        # columns via mask) -> exact cross-correlation like nn.Conv2d.
        col_sums = []
        for kx in range(K):
            acc = wk[0][kx] * padded[:, kx:kx + HW]
            for ky in range(1, K):
                s = ky * W + kx
                acc = acc + wk[ky][kx] * padded[:, s:s + HW]
            col_sums.append(acc * col_masks[kx])

        # Pairwise tree reduction of the 7 partial sums (short dependency chain).
        while len(col_sums) > 1:
            nxt = [col_sums[i] + col_sums[i + 1] for i in range(0, len(col_sums) - 1, 2)]
            if len(col_sums) % 2:
                nxt.append(col_sums[-1])
            col_sums = nxt

        y = col_sums[0] + bias               # folded BN bias
        scale = jax.nn.sigmoid(y)            # (1, HW) f32

        # Gate the original input; keep the big multiply/store in x's dtype.
        o_ref[b] = (xb * scale.astype(xb.dtype)).astype(o_ref.dtype)


def spatial_gate(x, conv_w, bn_gamma, bn_beta, bn_mean, bn_var, eps=1e-5):
    """x: (N, C, H, W); conv_w: (1, 1, 7, 7); bn_*: (1,) scalars."""
    N, C, H, W = x.shape
    HW = H * W

    # Fold eval-mode BatchNorm into the conv weight / a scalar bias:
    #   BN(conv(x)) = conv(x) * a + b,  a = gamma/sqrt(var+eps),  b = beta - mean*a
    # TODO(synk): training-mode BatchNorm (batch statistics) is not implemented.
    a = (bn_gamma / jnp.sqrt(bn_var + eps)).astype(jnp.float32)
    w_eff = (conv_w.reshape(K, K) * a).astype(jnp.float32)
    b_eff = jnp.reshape(bn_beta - bn_mean * a, (1, 1)).astype(jnp.float32)

    # Column-validity masks for the 7 lane (kx) taps, built once outside the kernel.
    col = jnp.arange(HW, dtype=jnp.int32) % W
    masks = jnp.stack(
        [((col + (kx - PAD) >= 0) & (col + (kx - PAD) < W)) for kx in range(K)],
        axis=0,
    ).astype(jnp.float32)  # (K, HW)

    # Lane-dense view of x: free reshape of contiguous NCHW.
    xf = x.reshape(N, C, HW)

    # Batch elements per grid step: largest divisor of N whose double-buffered
    # in+out blocks (~4 * nb * C * HW * itemsize) stay under a conservative
    # budget that also fits v7x's smaller VMEM (64 MiB phys / 32 MiB scoped).
    bytes_per_elem = C * HW * x.dtype.itemsize
    budget = 24 * 1024 * 1024
    nb = 1
    for cand in range(1, N + 1):
        if N % cand == 0 and cand <= 16 and 4 * cand * bytes_per_elem <= budget:
            nb = cand
    # TODO(synk): if even nb=1 overflows VMEM (huge C*H*W), split into a
    # gate-plane kernel + an elementwise gating kernel tiled over C.

    kernel = functools.partial(spatial_gate_kernel, H=H, W=W)

    out = pl.pallas_call(
        kernel,
        out_shape=jax.ShapeDtypeStruct((N, C, HW), x.dtype),
        grid=(N // nb,),
        in_specs=[
            pl.BlockSpec(memory_space=pltpu.MemorySpace.SMEM),   # folded conv weight (7,7)
            pl.BlockSpec(memory_space=pltpu.MemorySpace.SMEM),   # folded BN bias (1,1)
            pl.BlockSpec((K, HW), lambda n: (0, 0)),             # column masks
            pl.BlockSpec((nb, C, HW), lambda n: (n, 0, 0)),      # x block (lane-dense)
        ],
        out_specs=pl.BlockSpec((nb, C, HW), lambda n: (n, 0, 0)),
        compiler_params=pltpu.CompilerParams(
            dimension_semantics=("parallel",),                   # shard N across TCs (v7x)
        ),
    )(w_eff, b_eff, masks, xf)

    return out.reshape(N, C, H, W)


def spatial_gate_ref(x, conv_w, bn_gamma, bn_beta, bn_mean, bn_var, eps=1e-5):
    """Pure-JAX reference (mirrors the PyTorch forward, BN in eval mode)."""
    xc = jnp.mean(x, axis=1, keepdims=True)  # ChannelPool -> (N, 1, H, W)
    y = jax.lax.conv_general_dilated(
        xc, conv_w, window_strides=(1, 1),
        padding=[(PAD, PAD), (PAD, PAD)],
        dimension_numbers=("NCHW", "OIHW", "NCHW"))
    a = bn_gamma / jnp.sqrt(bn_var + eps)
    y = y * a + (bn_beta - bn_mean * a)
    return x * jax.nn.sigmoid(y)


if __name__ == "__main__":
    key = jax.random.PRNGKey(0)
    kx_key, kw_key = jax.random.split(key)

    N, C, H, W = 2, 4, 16, 16
    x = jax.random.normal(kx_key, (N, C, H, W), dtype=jnp.float32)

    # Deterministic parameter init (Conv2d(1,1,7,7,bias=False) + BatchNorm2d(1)).
    fan_in = 1 * K * K
    conv_w = jax.random.normal(kw_key, (1, 1, K, K), dtype=jnp.float32) * (2.0 / fan_in) ** 0.5
    bn_gamma = jnp.array([1.25], dtype=jnp.float32)
    bn_beta = jnp.array([0.10], dtype=jnp.float32)
    bn_mean = jnp.array([0.05], dtype=jnp.float32)   # running_mean (eval-mode BN)
    bn_var = jnp.array([0.80], dtype=jnp.float32)    # running_var

    out = spatial_gate(x, conv_w, bn_gamma, bn_beta, bn_mean, bn_var)
    out = jax.block_until_ready(out)

    ref = spatial_gate_ref(x, conv_w, bn_gamma, bn_beta, bn_mean, bn_var)
    assert out.shape == (N, C, H, W)
    assert jnp.allclose(out, ref, atol=1e-5, rtol=1e-5), "mismatch vs reference"

    print("KERNEL_OK")
</pallas_src>

<mosaic_0001>
module attributes {stable_mosaic.version = 11 : i64} {
  func.func @spatial_gate_kernel(%arg0: i32, %arg1: memref<7x7xf32, #tpu.memory_space<smem>>, %arg2: memref<1x1xf32, #tpu.memory_space<smem>>, %arg3: memref<7x256xf32, #tpu.memory_space<vmem>>, %arg4: memref<2x4x256xf32, #tpu.memory_space<vmem>>, %arg5: memref<2x4x256xf32, #tpu.memory_space<vmem>>) attributes {dimension_semantics = [#tpu.dimension_semantics<parallel>], iteration_bounds = array<i64: 1>, scalar_prefetch = 0 : i64, scratch_operands = 0 : i64, tpu.core_type = #tpu.core_type<tc>, window_params = [{transform_indices = @transform_0, window_bounds = array<i64: 7, 7>}, {transform_indices = @transform_1, window_bounds = array<i64: 1, 1>}, {pipeline_mode = #tpu.pipeline_mode<synchronous>, transform_indices = @transform_2, window_bounds = array<i64: 7, 256>}, {transform_indices = @transform_3, window_bounds = array<i64: 2, 4, 256>}, {transform_indices = @transform_4, window_bounds = array<i64: 2, 4, 256>}]} {
    %c0 = arith.constant 0 : index
    %c0_0 = arith.constant 0 : index
    %0 = memref.load %arg1[%c0, %c0_0] : memref<7x7xf32, #tpu.memory_space<smem>>
    %c0_1 = arith.constant 0 : index
    %c1 = arith.constant 1 : index
    %1 = memref.load %arg1[%c0_1, %c1] : memref<7x7xf32, #tpu.memory_space<smem>>
    %c0_2 = arith.constant 0 : index
    %c2 = arith.constant 2 : index
    %2 = memref.load %arg1[%c0_2, %c2] : memref<7x7xf32, #tpu.memory_space<smem>>
    %c0_3 = arith.constant 0 : index
    %c3 = arith.constant 3 : index
    %3 = memref.load %arg1[%c0_3, %c3] : memref<7x7xf32, #tpu.memory_space<smem>>
    %c0_4 = arith.constant 0 : index
    %c4 = arith.constant 4 : index
    %4 = memref.load %arg1[%c0_4, %c4] : memref<7x7xf32, #tpu.memory_space<smem>>
    %c0_5 = arith.constant 0 : index
    %c5 = arith.constant 5 : index
    %5 = memref.load %arg1[%c0_5, %c5] : memref<7x7xf32, #tpu.memory_space<smem>>
    %c0_6 = arith.constant 0 : index
    %c6 = arith.constant 6 : index
    %6 = memref.load %arg1[%c0_6, %c6] : memref<7x7xf32, #tpu.memory_space<smem>>
    %c1_7 = arith.constant 1 : index
    %c0_8 = arith.constant 0 : index
    %7 = memref.load %arg1[%c1_7, %c0_8] : memref<7x7xf32, #tpu.memory_space<smem>>
    %c1_9 = arith.constant 1 : index
    %c1_10 = arith.constant 1 : index
    %8 = memref.load %arg1[%c1_9, %c1_10] : memref<7x7xf32, #tpu.memory_space<smem>>
    %c1_11 = arith.constant 1 : index
    %c2_12 = arith.constant 2 : index
    %9 = memref.load %arg1[%c1_11, %c2_12] : memref<7x7xf32, #tpu.memory_space<smem>>
    %c1_13 = arith.constant 1 : index
    %c3_14 = arith.constant 3 : index
    %10 = memref.load %arg1[%c1_13, %c3_14] : memref<7x7xf32, #tpu.memory_space<smem>>
    %c1_15 = arith.constant 1 : index
    %c4_16 = arith.constant 4 : index
    %11 = memref.load %arg1[%c1_15, %c4_16] : memref<7x7xf32, #tpu.memory_space<smem>>
    %c1_17 = arith.constant 1 : index
    %c5_18 = arith.constant 5 : index
    %12 = memref.load %arg1[%c1_17, %c5_18] : memref<7x7xf32, #tpu.memory_space<smem>>
    %c1_19 = arith.constant 1 : index
    %c6_20 = arith.constant 6 : index
    %13 = memref.load %arg1[%c1_19, %c6_20] : memref<7x7xf32, #tpu.memory_space<smem>>
    %c2_21 = arith.constant 2 : index
    %c0_22 = arith.constant 0 : index
    %14 = memref.load %arg1[%c2_21, %c0_22] : memref<7x7xf32, #tpu.memory_space<smem>>
    %c2_23 = arith.constant 2 : index
    %c1_24 = arith.constant 1 : index
    %15 = memref.load %arg1[%c2_23, %c1_24] : memref<7x7xf32, #tpu.memory_space<smem>>
    %c2_25 = arith.constant 2 : index
    %c2_26 = arith.constant 2 : index
    %16 = memref.load %arg1[%c2_25, %c2_26] : memref<7x7xf32, #tpu.memory_space<smem>>
    %c2_27 = arith.constant 2 : index
    %c3_28 = arith.constant 3 : index
    %17 = memref.load %arg1[%c2_27, %c3_28] : memref<7x7xf32, #tpu.memory_space<smem>>
    %c2_29 = arith.constant 2 : index
    %c4_30 = arith.constant 4 : index
    %18 = memref.load %arg1[%c2_29, %c4_30] : memref<7x7xf32, #tpu.memory_space<smem>>
    %c2_31 = arith.constant 2 : index
    %c5_32 = arith.constant 5 : index
    %19 = memref.load %arg1[%c2_31, %c5_32] : memref<7x7xf32, #tpu.memory_space<smem>>
    %c2_33 = arith.constant 2 : index
    %c6_34 = arith.constant 6 : index
    %20 = memref.load %arg1[%c2_33, %c6_34] : memref<7x7xf32, #tpu.memory_space<smem>>
    %c3_35 = arith.constant 3 : index
    %c0_36 = arith.constant 0 : index
    %21 = memref.load %arg1[%c3_35, %c0_36] : memref<7x7xf32, #tpu.memory_space<smem>>
    %c3_37 = arith.constant 3 : index
    %c1_38 = arith.constant 1 : index
    %22 = memref.load %arg1[%c3_37, %c1_38] : memref<7x7xf32, #tpu.memory_space<smem>>
    %c3_39 = arith.constant 3 : index
    %c2_40 = arith.constant 2 : index
    %23 = memref.load %arg1[%c3_39, %c2_40] : memref<7x7xf32, #tpu.memory_space<smem>>
    %c3_41 = arith.constant 3 : index
    %c3_42 = arith.constant 3 : index
    %24 = memref.load %arg1[%c3_41, %c3_42] : memref<7x7xf32, #tpu.memory_space<smem>>
    %c3_43 = arith.constant 3 : index
    %c4_44 = arith.constant 4 : index
    %25 = memref.load %arg1[%c3_43, %c4_44] : memref<7x7xf32, #tpu.memory_space<smem>>
    %c3_45 = arith.constant 3 : index
    %c5_46 = arith.constant 5 : index
    %26 = memref.load %arg1[%c3_45, %c5_46] : memref<7x7xf32, #tpu.memory_space<smem>>
    %c3_47 = arith.constant 3 : index
    %c6_48 = arith.constant 6 : index
    %27 = memref.load %arg1[%c3_47, %c6_48] : memref<7x7xf32, #tpu.memory_space<smem>>
    %c4_49 = arith.constant 4 : index
    %c0_50 = arith.constant 0 : index
    %28 = memref.load %arg1[%c4_49, %c0_50] : memref<7x7xf32, #tpu.memory_space<smem>>
    %c4_51 = arith.constant 4 : index
    %c1_52 = arith.constant 1 : index
    %29 = memref.load %arg1[%c4_51, %c1_52] : memref<7x7xf32, #tpu.memory_space<smem>>
    %c4_53 = arith.constant 4 : index
    %c2_54 = arith.constant 2 : index
    %30 = memref.load %arg1[%c4_53, %c2_54] : memref<7x7xf32, #tpu.memory_space<smem>>
    %c4_55 = arith.constant 4 : index
    %c3_56 = arith.constant 3 : index
    %31 = memref.load %arg1[%c4_55, %c3_56] : memref<7x7xf32, #tpu.memory_space<smem>>
    %c4_57 = arith.constant 4 : index
    %c4_58 = arith.constant 4 : index
    %32 = memref.load %arg1[%c4_57, %c4_58] : memref<7x7xf32, #tpu.memory_space<smem>>
    %c4_59 = arith.constant 4 : index
    %c5_60 = arith.constant 5 : index
    %33 = memref.load %arg1[%c4_59, %c5_60] : memref<7x7xf32, #tpu.memory_space<smem>>
    %c4_61 = arith.constant 4 : index
    %c6_62 = arith.constant 6 : index
    %34 = memref.load %arg1[%c4_61, %c6_62] : memref<7x7xf32, #tpu.memory_space<smem>>
    %c5_63 = arith.constant 5 : index
    %c0_64 = arith.constant 0 : index
    %35 = memref.load %arg1[%c5_63, %c0_64] : memref<7x7xf32, #tpu.memory_space<smem>>
    %c5_65 = arith.constant 5 : index
    %c1_66 = arith.constant 1 : index
    %36 = memref.load %arg1[%c5_65, %c1_66] : memref<7x7xf32, #tpu.memory_space<smem>>
    %c5_67 = arith.constant 5 : index
    %c2_68 = arith.constant 2 : index
    %37 = memref.load %arg1[%c5_67, %c2_68] : memref<7x7xf32, #tpu.memory_space<smem>>
    %c5_69 = arith.constant 5 : index
    %c3_70 = arith.constant 3 : index
    %38 = memref.load %arg1[%c5_69, %c3_70] : memref<7x7xf32, #tpu.memory_space<smem>>
    %c5_71 = arith.constant 5 : index
    %c4_72 = arith.constant 4 : index
    %39 = memref.load %arg1[%c5_71, %c4_72] : memref<7x7xf32, #tpu.memory_space<smem>>
    %c5_73 = arith.constant 5 : index
    %c5_74 = arith.constant 5 : index
    %40 = memref.load %arg1[%c5_73, %c5_74] : memref<7x7xf32, #tpu.memory_space<smem>>
    %c5_75 = arith.constant 5 : index
    %c6_76 = arith.constant 6 : index
    %41 = memref.load %arg1[%c5_75, %c6_76] : memref<7x7xf32, #tpu.memory_space<smem>>
    %c6_77 = arith.constant 6 : index
    %c0_78 = arith.constant 0 : index
    %42 = memref.load %arg1[%c6_77, %c0_78] : memref<7x7xf32, #tpu.memory_space<smem>>
    %c6_79 = arith.constant 6 : index
    %c1_80 = arith.constant 1 : index
    %43 = memref.load %arg1[%c6_79, %c1_80] : memref<7x7xf32, #tpu.memory_space<smem>>
    %c6_81 = arith.constant 6 : index
    %c2_82 = arith.constant 2 : index
    %44 = memref.load %arg1[%c6_81, %c2_82] : memref<7x7xf32, #tpu.memory_space<smem>>
    %c6_83 = arith.constant 6 : index
    %c3_84 = arith.constant 3 : index
    %45 = memref.load %arg1[%c6_83, %c3_84] : memref<7x7xf32, #tpu.memory_space<smem>>
    %c6_85 = arith.constant 6 : index
    %c4_86 = arith.constant 4 : index
    %46 = memref.load %arg1[%c6_85, %c4_86] : memref<7x7xf32, #tpu.memory_space<smem>>
    %c6_87 = arith.constant 6 : index
    %c5_88 = arith.constant 5 : index
    %47 = memref.load %arg1[%c6_87, %c5_88] : memref<7x7xf32, #tpu.memory_space<smem>>
    %c6_89 = arith.constant 6 : index
    %c6_90 = arith.constant 6 : index
    %48 = memref.load %arg1[%c6_89, %c6_90] : memref<7x7xf32, #tpu.memory_space<smem>>
    %c0_91 = arith.constant 0 : index
    %c0_92 = arith.constant 0 : index
    %49 = memref.load %arg2[%c0_91, %c0_92] : memref<1x1xf32, #tpu.memory_space<smem>>
    %c0_93 = arith.constant 0 : index
    %c0_94 = arith.constant 0 : index
    %50 = vector.load %arg3[%c0_93, %c0_94] : memref<7x256xf32, #tpu.memory_space<vmem>>, vector<1x256xf32>
    %c1_95 = arith.constant 1 : index
    %c0_96 = arith.constant 0 : index
    %51 = vector.load %arg3[%c1_95, %c0_96] : memref<7x256xf32, #tpu.memory_space<vmem>>, vector<1x256xf32>
    %c2_97 = arith.constant 2 : index
    %c0_98 = arith.constant 0 : index
    %52 = vector.load %arg3[%c2_97, %c0_98] : memref<7x256xf32, #tpu.memory_space<vmem>>, vector<1x256xf32>
    %c3_99 = arith.constant 3 : index
    %c0_100 = arith.constant 0 : index
    %53 = vector.load %arg3[%c3_99, %c0_100] : memref<7x256xf32, #tpu.memory_space<vmem>>, vector<1x256xf32>
    %c4_101 = arith.constant 4 : index
    %c0_102 = arith.constant 0 : index
    %54 = vector.load %arg3[%c4_101, %c0_102] : memref<7x256xf32, #tpu.memory_space<vmem>>, vector<1x256xf32>
    %c5_103 = arith.constant 5 : index
    %c0_104 = arith.constant 0 : index
    %55 = vector.load %arg3[%c5_103, %c0_104] : memref<7x256xf32, #tpu.memory_space<vmem>>, vector<1x256xf32>
    %c6_105 = arith.constant 6 : index
    %c0_106 = arith.constant 0 : index
    %56 = vector.load %arg3[%c6_105, %c0_106] : memref<7x256xf32, #tpu.memory_space<vmem>>, vector<1x256xf32>
    %cst = arith.constant 0.000000e+00 : f32
    %57 = vector.broadcast %cst : f32 to vector<1x51xf32>
    %c0_107 = arith.constant 0 : index
    %c0_108 = arith.constant 0 : index
    %c0_109 = arith.constant 0 : index
    %58 = vector.load %arg4[%c0_107, %c0_108, %c0_109] : memref<2x4x256xf32, #tpu.memory_space<vmem>>, vector<1x4x256xf32>
    %59 = vector.shape_cast %58 : vector<1x4x256xf32> to vector<4x256xf32>
    %cst_110 = arith.constant dense<0.000000e+00> : vector<256xf32>
    %60 = vector.multi_reduction <add>, %59, %cst_110 [0] : vector<4x256xf32> to vector<256xf32>
    %61 = vector.shape_cast %60 : vector<256xf32> to vector<1x256xf32>
    %cst_111 = arith.constant 2.500000e-01 : f32
    %62 = vector.broadcast %cst_111 : f32 to vector<1x256xf32>
    %63 = arith.mulf %61, %62 : vector<1x256xf32>
    %64 = tpu.concatenate %57, %63, %57 in 1 : vector<1x51xf32>, vector<1x256xf32>, vector<1x51xf32> -> vector<1x358xf32>
    %65 = vector.extract_strided_slice %64 {offsets = [0, 0], sizes = [1, 256], strides = [1, 1]} : vector<1x358xf32> to vector<1x256xf32>
    %66 = vector.broadcast %0 : f32 to vector<1x256xf32>
    %67 = arith.mulf %66, %65 : vector<1x256xf32>
    %68 = vector.extract_strided_slice %64 {offsets = [0, 16], sizes = [1, 256], strides = [1, 1]} : vector<1x358xf32> to vector<1x256xf32>
    %69 = vector.broadcast %7 : f32 to vector<1x256xf32>
    %70 = arith.mulf %69, %68 : vector<1x256xf32>
    %71 = arith.addf %67, %70 : vector<1x256xf32>
    %72 = vector.extract_strided_slice %64 {offsets = [0, 32], sizes = [1, 256], strides = [1, 1]} : vector<1x358xf32> to vector<1x256xf32>
    %73 = vector.broadcast %14 : f32 to vector<1x256xf32>
    %74 = arith.mulf %73, %72 : vector<1x256xf32>
    %75 = arith.addf %71, %74 : vector<1x256xf32>
    %76 = vector.extract_strided_slice %64 {offsets = [0, 48], sizes = [1, 256], strides = [1, 1]} : vector<1x358xf32> to vector<1x256xf32>
    %77 = vector.broadcast %21 : f32 to vector<1x256xf32>
    %78 = arith.mulf %77, %76 : vector<1x256xf32>
    %79 = arith.addf %75, %78 : vector<1x256xf32>
    %80 = vector.extract_strided_slice %64 {offsets = [0, 64], sizes = [1, 256], strides = [1, 1]} : vector<1x358xf32> to vector<1x256xf32>
    %81 = vector.broadcast %28 : f32 to vector<1x256xf32>
    %82 = arith.mulf %81, %80 : vector<1x256xf32>
    %83 = arith.addf %79, %82 : vector<1x256xf32>
    %84 = vector.extract_strided_slice %64 {offsets = [0, 80], sizes = [1, 256], strides = [1, 1]} : vector<1x358xf32> to vector<1x256xf32>
    %85 = vector.broadcast %35 : f32 to vector<1x256xf32>
    %86 = arith.mulf %85, %84 : vector<1x256xf32>
    %87 = arith.addf %83, %86 : vector<1x256xf32>
    %88 = vector.extract_strided_slice %64 {offsets = [0, 96], sizes = [1, 256], strides = [1, 1]} : vector<1x358xf32> to vector<1x256xf32>
    %89 = vector.broadcast %42 : f32 to vector<1x256xf32>
    %90 = arith.mulf %89, %88 : vector<1x256xf32>
    %91 = arith.addf %87, %90 : vector<1x256xf32>
    %92 = arith.mulf %91, %50 : vector<1x256xf32>
    %93 = vector.extract_strided_slice %64 {offsets = [0, 1], sizes = [1, 256], strides = [1, 1]} : vector<1x358xf32> to vector<1x256xf32>
    %94 = vector.broadcast %1 : f32 to vector<1x256xf32>
    %95 = arith.mulf %94, %93 : vector<1x256xf32>
    %96 = vector.extract_strided_slice %64 {offsets = [0, 17], sizes = [1, 256], strides = [1, 1]} : vector<1x358xf32> to vector<1x256xf32>
    %97 = vector.broadcast %8 : f32 to vector<1x256xf32>
    %98 = arith.mulf %97, %96 : vector<1x256xf32>
    %99 = arith.addf %95, %98 : vector<1x256xf32>
    %100 = vector.extract_strided_slice %64 {offsets = [0, 33], sizes = [1, 256], strides = [1, 1]} : vector<1x358xf32> to vector<1x256xf32>
    %101 = vector.broadcast %15 : f32 to vector<1x256xf32>
    %102 = arith.mulf %101, %100 : vector<1x256xf32>
    %103 = arith.addf %99, %102 : vector<1x256xf32>
    %104 = vector.extract_strided_slice %64 {offsets = [0, 49], sizes = [1, 256], strides = [1, 1]} : vector<1x358xf32> to vector<1x256xf32>
    %105 = vector.broadcast %22 : f32 to vector<1x256xf32>
    %106 = arith.mulf %105, %104 : vector<1x256xf32>
    %107 = arith.addf %103, %106 : vector<1x256xf32>
    %108 = vector.extract_strided_slice %64 {offsets = [0, 65], sizes = [1, 256], strides = [1, 1]} : vector<1x358xf32> to vector<1x256xf32>
    %109 = vector.broadcast %29 : f32 to vector<1x256xf32>
    %110 = arith.mulf %109, %108 : vector<1x256xf32>
    %111 = arith.addf %107, %110 : vector<1x256xf32>
    %112 = vector.extract_strided_slice %64 {offsets = [0, 81], sizes = [1, 256], strides = [1, 1]} : vector<1x358xf32> to vector<1x256xf32>
    %113 = vector.broadcast %36 : f32 to vector<1x256xf32>
    %114 = arith.mulf %113, %112 : vector<1x256xf32>
    %115 = arith.addf %111, %114 : vector<1x256xf32>
    %116 = vector.extract_strided_slice %64 {offsets = [0, 97], sizes = [1, 256], strides = [1, 1]} : vector<1x358xf32> to vector<1x256xf32>
    %117 = vector.broadcast %43 : f32 to vector<1x256xf32>
    %118 = arith.mulf %117, %116 : vector<1x256xf32>
    %119 = arith.addf %115, %118 : vector<1x256xf32>
    %120 = arith.mulf %119, %51 : vector<1x256xf32>
    %121 = vector.extract_strided_slice %64 {offsets = [0, 2], sizes = [1, 256], strides = [1, 1]} : vector<1x358xf32> to vector<1x256xf32>
    %122 = vector.broadcast %2 : f32 to vector<1x256xf32>
    %123 = arith.mulf %122, %121 : vector<1x256xf32>
    %124 = vector.extract_strided_slice %64 {offsets = [0, 18], sizes = [1, 256], strides = [1, 1]} : vector<1x358xf32> to vector<1x256xf32>
    %125 = vector.broadcast %9 : f32 to vector<1x256xf32>
    %126 = arith.mulf %125, %124 : vector<1x256xf32>
    %127 = arith.addf %123, %126 : vector<1x256xf32>
    %128 = vector.extract_strided_slice %64 {offsets = [0, 34], sizes = [1, 256], strides = [1, 1]} : vector<1x358xf32> to vector<1x256xf32>
    %129 = vector.broadcast %16 : f32 to vector<1x256xf32>
    %130 = arith.mulf %129, %128 : vector<1x256xf32>
    %131 = arith.addf %127, %130 : vector<1x256xf32>
    %132 = vector.extract_strided_slice %64 {offsets = [0, 50], sizes = [1, 256], strides = [1, 1]} : vector<1x358xf32> to vector<1x256xf32>
    %133 = vector.broadcast %23 : f32 to vector<1x256xf32>
    %134 = arith.mulf %133, %132 : vector<1x256xf32>
    %135 = arith.addf %131, %134 : vector<1x256xf32>
    %136 = vector.extract_strided_slice %64 {offsets = [0, 66], sizes = [1, 256], strides = [1, 1]} : vector<1x358xf32> to vector<1x256xf32>
    %137 = vector.broadcast %30 : f32 to vector<1x256xf32>
    %138 = arith.mulf %137, %136 : vector<1x256xf32>
    %139 = arith.addf %135, %138 : vector<1x256xf32>
    %140 = vector.extract_strided_slice %64 {offsets = [0, 82], sizes = [1, 256], strides = [1, 1]} : vector<1x358xf32> to vector<1x256xf32>
    %141 = vector.broadcast %37 : f32 to vector<1x256xf32>
    %142 = arith.mulf %141, %140 : vector<1x256xf32>
    %143 = arith.addf %139, %142 : vector<1x256xf32>
    %144 = vector.extract_strided_slice %64 {offsets = [0, 98], sizes = [1, 256], strides = [1, 1]} : vector<1x358xf32> to vector<1x256xf32>
    %145 = vector.broadcast %44 : f32 to vector<1x256xf32>
    %146 = arith.mulf %145, %144 : vector<1x256xf32>
    %147 = arith.addf %143, %146 : vector<1x256xf32>
    %148 = arith.mulf %147, %52 : vector<1x256xf32>
    %149 = vector.extract_strided_slice %64 {offsets = [0, 3], sizes = [1, 256], strides = [1, 1]} : vector<1x358xf32> to vector<1x256xf32>
    %150 = vector.broadcast %3 : f32 to vector<1x256xf32>
    %151 = arith.mulf %150, %149 : vector<1x256xf32>
    %152 = vector.extract_strided_slice %64 {offsets = [0, 19], sizes = [1, 256], strides = [1, 1]} : vector<1x358xf32> to vector<1x256xf32>
    %153 = vector.broadcast %10 : f32 to vector<1x256xf32>
    %154 = arith.mulf %153, %152 : vector<1x256xf32>
    %155 = arith.addf %151, %154 : vector<1x256xf32>
    %156 = vector.extract_strided_slice %64 {offsets = [0, 35], sizes = [1, 256], strides = [1, 1]} : vector<1x358xf32> to vector<1x256xf32>
    %157 = vector.broadcast %17 : f32 to vector<1x256xf32>
    %158 = arith.mulf %157, %156 : vector<1x256xf32>
    %159 = arith.addf %155, %158 : vector<1x256xf32>
    %160 = vector.extract_strided_slice %64 {offsets = [0, 51], sizes = [1, 256], strides = [1, 1]} : vector<1x358xf32> to vector<1x256xf32>
    %161 = vector.broadcast %24 : f32 to vector<1x256xf32>
    %162 = arith.mulf %161, %160 : vector<1x256xf32>
    %163 = arith.addf %159, %162 : vector<1x256xf32>
    %164 = vector.extract_strided_slice %64 {offsets = [0, 67], sizes = [1, 256], strides = [1, 1]} : vector<1x358xf32> to vector<1x256xf32>
    %165 = vector.broadcast %31 : f32 to vector<1x256xf32>
    %166 = arith.mulf %165, %164 : vector<1x256xf32>
    %167 = arith.addf %163, %166 : vector<1x256xf32>
    %168 = vector.extract_strided_slice %64 {offsets = [0, 83], sizes = [1, 256], strides = [1, 1]} : vector<1x358xf32> to vector<1x256xf32>
    %169 = vector.broadcast %38 : f32 to vector<1x256xf32>
    %170 = arith.mulf %169, %168 : vector<1x256xf32>
    %171 = arith.addf %167, %170 : vector<1x256xf32>
    %172 = vector.extract_strided_slice %64 {offsets = [0, 99], sizes = [1, 256], strides = [1, 1]} : vector<1x358xf32> to vector<1x256xf32>
    %173 = vector.broadcast %45 : f32 to vector<1x256xf32>
    %174 = arith.mulf %173, %172 : vector<1x256xf32>
    %175 = arith.addf %171, %174 : vector<1x256xf32>
    %176 = arith.mulf %175, %53 : vector<1x256xf32>
    %177 = vector.extract_strided_slice %64 {offsets = [0, 4], sizes = [1, 256], strides = [1, 1]} : vector<1x358xf32> to vector<1x256xf32>
    %178 = vector.broadcast %4 : f32 to vector<1x256xf32>
    %179 = arith.mulf %178, %177 : vector<1x256xf32>
    %180 = vector.extract_strided_slice %64 {offsets = [0, 20], sizes = [1, 256], strides = [1, 1]} : vector<1x358xf32> to vector<1x256xf32>
    %181 = vector.broadcast %11 : f32 to vector<1x256xf32>
    %182 = arith.mulf %181, %180 : vector<1x256xf32>
    %183 = arith.addf %179, %182 : vector<1x256xf32>
    %184 = vector.extract_strided_slice %64 {offsets = [0, 36], sizes = [1, 256], strides = [1, 1]} : vector<1x358xf32> to vector<1x256xf32>
    %185 = vector.broadcast %18 : f32 to vector<1x256xf32>
    %186 = arith.mulf %185, %184 : vector<1x256xf32>
    %187 = arith.addf %183, %186 : vector<1x256xf32>
    %188 = vector.extract_strided_slice %64 {offsets = [0, 52], sizes = [1, 256], strides = [1, 1]} : vector<1x358xf32> to vector<1x256xf32>
    %189 = vector.broadcast %25 : f32 to vector<1x256xf32>
    %190 = arith.mulf %189, %188 : vector<1x256xf32>
    %191 = arith.addf %187, %190 : vector<1x256xf32>
    %192 = vector.extract_strided_slice %64 {offsets = [0, 68], sizes = [1, 256], strides = [1, 1]} : vector<1x358xf32> to vector<1x256xf32>
    %193 = vector.broadcast %32 : f32 to vector<1x256xf32>
    %194 = arith.mulf %193, %192 : vector<1x256xf32>
    %195 = arith.addf %191, %194 : vector<1x256xf32>
    %196 = vector.extract_strided_slice %64 {offsets = [0, 84], sizes = [1, 256], strides = [1, 1]} : vector<1x358xf32> to vector<1x256xf32>
    %197 = vector.broadcast %39 : f32 to vector<1x256xf32>
    %198 = arith.mulf %197, %196 : vector<1x256xf32>
    %199 = arith.addf %195, %198 : vector<1x256xf32>
    %200 = vector.extract_strided_slice %64 {offsets = [0, 100], sizes = [1, 256], strides = [1, 1]} : vector<1x358xf32> to vector<1x256xf32>
    %201 = vector.broadcast %46 : f32 to vector<1x256xf32>
    %202 = arith.mulf %201, %200 : vector<1x256xf32>
    %203 = arith.addf %199, %202 : vector<1x256xf32>
    %204 = arith.mulf %203, %54 : vector<1x256xf32>
    %205 = vector.extract_strided_slice %64 {offsets = [0, 5], sizes = [1, 256], strides = [1, 1]} : vector<1x358xf32> to vector<1x256xf32>
    %206 = vector.broadcast %5 : f32 to vector<1x256xf32>
    %207 = arith.mulf %206, %205 : vector<1x256xf32>
    %208 = vector.extract_strided_slice %64 {offsets = [0, 21], sizes = [1, 256], strides = [1, 1]} : vector<1x358xf32> to vector<1x256xf32>
    %209 = vector.broadcast %12 : f32 to vector<1x256xf32>
    %210 = arith.mulf %209, %208 : vector<1x256xf32>
    %211 = arith.addf %207, %210 : vector<1x256xf32>
    %212 = vector.extract_strided_slice %64 {offsets = [0, 37], sizes = [1, 256], strides = [1, 1]} : vector<1x358xf32> to vector<1x256xf32>
    %213 = vector.broadcast %19 : f32 to vector<1x256xf32>
    %214 = arith.mulf %213, %212 : vector<1x256xf32>
    %215 = arith.addf %211, %214 : vector<1x256xf32>
    %216 = vector.extract_strided_slice %64 {offsets = [0, 53], sizes = [1, 256], strides = [1, 1]} : vector<1x358xf32> to vector<1x256xf32>
    %217 = vector.broadcast %26 : f32 to vector<1x256xf32>
    %218 = arith.mulf %217, %216 : vector<1x256xf32>
    %219 = arith.addf %215, %218 : vector<1x256xf32>
    %220 = vector.extract_strided_slice %64 {offsets = [0, 69], sizes = [1, 256], strides = [1, 1]} : vector<1x358xf32> to vector<1x256xf32>
    %221 = vector.broadcast %33 : f32 to vector<1x256xf32>
    %222 = arith.mulf %221, %220 : vector<1x256xf32>
    %223 = arith.addf %219, %222 : vector<1x256xf32>
    %224 = vector.extract_strided_slice %64 {offsets = [0, 85], sizes = [1, 256], strides = [1, 1]} : vector<1x358xf32> to vector<1x256xf32>
    %225 = vector.broadcast %40 : f32 to vector<1x256xf32>
    %226 = arith.mulf %225, %224 : vector<1x256xf32>
    %227 = arith.addf %223, %226 : vector<1x256xf32>
    %228 = vector.extract_strided_slice %64 {offsets = [0, 101], sizes = [1, 256], strides = [1, 1]} : vector<1x358xf32> to vector<1x256xf32>
    %229 = vector.broadcast %47 : f32 to vector<1x256xf32>
    %230 = arith.mulf %229, %228 : vector<1x256xf32>
    %231 = arith.addf %227, %230 : vector<1x256xf32>
    %232 = arith.mulf %231, %55 : vector<1x256xf32>
    %233 = vector.extract_strided_slice %64 {offsets = [0, 6], sizes = [1, 256], strides = [1, 1]} : vector<1x358xf32> to vector<1x256xf32>
    %234 = vector.broadcast %6 : f32 to vector<1x256xf32>
    %235 = arith.mulf %234, %233 : vector<1x256xf32>
    %236 = vector.extract_strided_slice %64 {offsets = [0, 22], sizes = [1, 256], strides = [1, 1]} : vector<1x358xf32> to vector<1x256xf32>
    %237 = vector.broadcast %13 : f32 to vector<1x256xf32>
    %238 = arith.mulf %237, %236 : vector<1x256xf32>
    %239 = arith.addf %235, %238 : vector<1x256xf32>
    %240 = vector.extract_strided_slice %64 {offsets = [0, 38], sizes = [1, 256], strides = [1, 1]} : vector<1x358xf32> to vector<1x256xf32>
    %241 = vector.broadcast %20 : f32 to vector<1x256xf32>
    %242 = arith.mulf %241, %240 : vector<1x256xf32>
    %243 = arith.addf %239, %242 : vector<1x256xf32>
    %244 = vector.extract_strided_slice %64 {offsets = [0, 54], sizes = [1, 256], strides = [1, 1]} : vector<1x358xf32> to vector<1x256xf32>
    %245 = vector.broadcast %27 : f32 to vector<1x256xf32>
    %246 = arith.mulf %245, %244 : vector<1x256xf32>
    %247 = arith.addf %243, %246 : vector<1x256xf32>
    %248 = vector.extract_strided_slice %64 {offsets = [0, 70], sizes = [1, 256], strides = [1, 1]} : vector<1x358xf32> to vector<1x256xf32>
    %249 = vector.broadcast %34 : f32 to vector<1x256xf32>
    %250 = arith.mulf %249, %248 : vector<1x256xf32>
    %251 = arith.addf %247, %250 : vector<1x256xf32>
    %252 = vector.extract_strided_slice %64 {offsets = [0, 86], sizes = [1, 256], strides = [1, 1]} : vector<1x358xf32> to vector<1x256xf32>
    %253 = vector.broadcast %41 : f32 to vector<1x256xf32>
    %254 = arith.mulf %253, %252 : vector<1x256xf32>
    %255 = arith.addf %251, %254 : vector<1x256xf32>
    %256 = vector.extract_strided_slice %64 {offsets = [0, 102], sizes = [1, 256], strides = [1, 1]} : vector<1x358xf32> to vector<1x256xf32>
    %257 = vector.broadcast %48 : f32 to vector<1x256xf32>
    %258 = arith.mulf %257, %256 : vector<1x256xf32>
    %259 = arith.addf %255, %258 : vector<1x256xf32>
    %260 = arith.mulf %259, %56 : vector<1x256xf32>
    %261 = arith.addf %92, %120 : vector<1x256xf32>
    %262 = arith.addf %148, %176 : vector<1x256xf32>
    %263 = arith.addf %204, %232 : vector<1x256xf32>
    %264 = arith.addf %261, %262 : vector<1x256xf32>
    %265 = arith.addf %263, %260 : vector<1x256xf32>
    %266 = arith.addf %264, %265 : vector<1x256xf32>
    %267 = vector.broadcast %49 : f32 to vector<1x256xf32>
    %268 = arith.addf %266, %267 : vector<1x256xf32>
    %269 = arith.negf %268 : vector<1x256xf32>
    %270 = math.exp %269 : vector<1x256xf32>
    %cst_112 = arith.constant 1.000000e+00 : f32
    %271 = vector.broadcast %cst_112 : f32 to vector<1x256xf32>
    %272 = arith.addf %271, %270 : vector<1x256xf32>
    %273 = arith.divf %271, %272 : vector<1x256xf32>
    %274 = vector.broadcast %273 : vector<1x256xf32> to vector<4x256xf32>
    %275 = arith.mulf %59, %274 : vector<4x256xf32>
    %c0_113 = arith.constant 0 : index
    %c0_114 = arith.constant 0 : index
    %c0_115 = arith.constant 0 : index
    %276 = vector.load %arg5[%c0_113, %c0_114, %c0_115] : memref<2x4x256xf32, #tpu.memory_space<vmem>>, vector<1x4x256xf32>
    %277 = vector.shape_cast %276 : vector<1x4x256xf32> to vector<4x256xf32>
    %278 = vector.shape_cast %275 : vector<4x256xf32> to vector<1x4x256xf32>
    tpu.vector_store %arg5[%c0_113, %c0_114, %c0_115], %278 {strides = array<i32>} : memref<2x4x256xf32, #tpu.memory_space<vmem>>, vector<1x4x256xf32>,
    %c1_116 = arith.constant 1 : index
    %c0_117 = arith.constant 0 : index
    %c0_118 = arith.constant 0 : index
    %279 = vector.load %arg4[%c1_116, %c0_117, %c0_118] : memref<2x4x256xf32, #tpu.memory_space<vmem>>, vector<1x4x256xf32>
    %280 = vector.shape_cast %279 : vector<1x4x256xf32> to vector<4x256xf32>
    %cst_119 = arith.constant dense<0.000000e+00> : vector<256xf32>
    %281 = vector.multi_reduction <add>, %280, %cst_119 [0] : vector<4x256xf32> to vector<256xf32>
    %282 = vector.shape_cast %281 : vector<256xf32> to vector<1x256xf32>
    %cst_120 = arith.constant 2.500000e-01 : f32
    %283 = vector.broadcast %cst_120 : f32 to vector<1x256xf32>
    %284 = arith.mulf %282, %283 : vector<1x256xf32>
    %285 = tpu.concatenate %57, %284, %57 in 1 : vector<1x51xf32>, vector<1x256xf32>, vector<1x51xf32> -> vector<1x358xf32>
    %286 = vector.extract_strided_slice %285 {offsets = [0, 0], sizes = [1, 256], strides = [1, 1]} : vector<1x358xf32> to vector<1x256xf32>
    %287 = vector.broadcast %0 : f32 to vector<1x256xf32>
    %288 = arith.mulf %287, %286 : vector<1x256xf32>
    %289 = vector.extract_strided_slice %285 {offsets = [0, 16], sizes = [1, 256], strides = [1, 1]} : vector<1x358xf32> to vector<1x256xf32>
    %290 = vector.broadcast %7 : f32 to vector<1x256xf32>
    %291 = arith.mulf %290, %289 : vector<1x256xf32>
    %292 = arith.addf %288, %291 : vector<1x256xf32>
    %293 = vector.extract_strided_slice %285 {offsets = [0, 32], sizes = [1, 256], strides = [1, 1]} : vector<1x358xf32> to vector<1x256xf32>
    %294 = vector.broadcast %14 : f32 to vector<1x256xf32>
    %295 = arith.mulf %294, %293 : vector<1x256xf32>
    %296 = arith.addf %292, %295 : vector<1x256xf32>
    %297 = vector.extract_strided_slice %285 {offsets = [0, 48], sizes = [1, 256], strides = [1, 1]} : vector<1x358xf32> to vector<1x256xf32>
    %298 = vector.broadcast %21 : f32 to vector<1x256xf32>
    %299 = arith.mulf %298, %297 : vector<1x256xf32>
    %300 = arith.addf %296, %299 : vector<1x256xf32>
    %301 = vector.extract_strided_slice %285 {offsets = [0, 64], sizes = [1, 256], strides = [1, 1]} : vector<1x358xf32> to vector<1x256xf32>
    %302 = vector.broadcast %28 : f32 to vector<1x256xf32>
    %303 = arith.mulf %302, %301 : vector<1x256xf32>
    %304 = arith.addf %300, %303 : vector<1x256xf32>
    %305 = vector.extract_strided_slice %285 {offsets = [0, 80], sizes = [1, 256], strides = [1, 1]} : vector<1x358xf32> to vector<1x256xf32>
    %306 = vector.broadcast %35 : f32 to vector<1x256xf32>
    %307 = arith.mulf %306, %305 : vector<1x256xf32>
    %308 = arith.addf %304, %307 : vector<1x256xf32>
    %309 = vector.extract_strided_slice %285 {offsets = [0, 96], sizes = [1, 256], strides = [1, 1]} : vector<1x358xf32> to vector<1x256xf32>
    %310 = vector.broadcast %42 : f32 to vector<1x256xf32>
    %311 = arith.mulf %310, %309 : vector<1x256xf32>
    %312 = arith.addf %308, %311 : vector<1x256xf32>
    %313 = arith.mulf %312, %50 : vector<1x256xf32>
    %314 = vector.extract_strided_slice %285 {offsets = [0, 1], sizes = [1, 256], strides = [1, 1]} : vector<1x358xf32> to vector<1x256xf32>
    %315 = vector.broadcast %1 : f32 to vector<1x256xf32>
    %316 = arith.mulf %315, %314 : vector<1x256xf32>
    %317 = vector.extract_strided_slice %285 {offsets = [0, 17], sizes = [1, 256], strides = [1, 1]} : vector<1x358xf32> to vector<1x256xf32>
    %318 = vector.broadcast %8 : f32 to vector<1x256xf32>
    %319 = arith.mulf %318, %317 : vector<1x256xf32>
    %320 = arith.addf %316, %319 : vector<1x256xf32>
    %321 = vector.extract_strided_slice %285 {offsets = [0, 33], sizes = [1, 256], strides = [1, 1]} : vector<1x358xf32> to vector<1x256xf32>
    %322 = vector.broadcast %15 : f32 to vector<1x256xf32>
    %323 = arith.mulf %322, %321 : vector<1x256xf32>
    %324 = arith.addf %320, %323 : vector<1x256xf32>
    %325 = vector.extract_strided_slice %285 {offsets = [0, 49], sizes = [1, 256], strides = [1, 1]} : vector<1x358xf32> to vector<1x256xf32>
    %326 = vector.broadcast %22 : f32 to vector<1x256xf32>
    %327 = arith.mulf %326, %325 : vector<1x256xf32>
    %328 = arith.addf %324, %327 : vector<1x256xf32>
    %329 = vector.extract_strided_slice %285 {offsets = [0, 65], sizes = [1, 256], strides = [1, 1]} : vector<1x358xf32> to vector<1x256xf32>
    %330 = vector.broadcast %29 : f32 to vector<1x256xf32>
    %331 = arith.mulf %330, %329 : vector<1x256xf32>
    %332 = arith.addf %328, %331 : vector<1x256xf32>
    %333 = vector.extract_strided_slice %285 {offsets = [0, 81], sizes = [1, 256], strides = [1, 1]} : vector<1x358xf32> to vector<1x256xf32>
    %334 = vector.broadcast %36 : f32 to vector<1x256xf32>
    %335 = arith.mulf %334, %333 : vector<1x256xf32>
    %336 = arith.addf %332, %335 : vector<1x256xf32>
    %337 = vector.extract_strided_slice %285 {offsets = [0, 97], sizes = [1, 256], strides = [1, 1]} : vector<1x358xf32> to vector<1x256xf32>
    %338 = vector.broadcast %43 : f32 to vector<1x256xf32>
    %339 = arith.mulf %338, %337 : vector<1x256xf32>
    %340 = arith.addf %336, %339 : vector<1x256xf32>
    %341 = arith.mulf %340, %51 : vector<1x256xf32>
    %342 = vector.extract_strided_slice %285 {offsets = [0, 2], sizes = [1, 256], strides = [1, 1]} : vector<1x358xf32> to vector<1x256xf32>
    %343 = vector.broadcast %2 : f32 to vector<1x256xf32>
    %344 = arith.mulf %343, %342 : vector<1x256xf32>
    %345 = vector.extract_strided_slice %285 {offsets = [0, 18], sizes = [1, 256], strides = [1, 1]} : vector<1x358xf32> to vector<1x256xf32>
    %346 = vector.broadcast %9 : f32 to vector<1x256xf32>
    %347 = arith.mulf %346, %345 : vector<1x256xf32>
    %348 = arith.addf %344, %347 : vector<1x256xf32>
    %349 = vector.extract_strided_slice %285 {offsets = [0, 34], sizes = [1, 256], strides = [1, 1]} : vector<1x358xf32> to vector<1x256xf32>
    %350 = vector.broadcast %16 : f32 to vector<1x256xf32>
    %351 = arith.mulf %350, %349 : vector<1x256xf32>
    %352 = arith.addf %348, %351 : vector<1x256xf32>
    %353 = vector.extract_strided_slice %285 {offsets = [0, 50], sizes = [1, 256], strides = [1, 1]} : vector<1x358xf32> to vector<1x256xf32>
    %354 = vector.broadcast %23 : f32 to vector<1x256xf32>
    %355 = arith.mulf %354, %353 : vector<1x256xf32>
    %356 = arith.addf %352, %355 : vector<1x256xf32>
    %357 = vector.extract_strided_slice %285 {offsets = [0, 66], sizes = [1, 256], strides = [1, 1]} : vector<1x358xf32> to vector<1x256xf32>
    %358 = vector.broadcast %30 : f32 to vector<1x256xf32>
    %359 = arith.mulf %358, %357 : vector<1x256xf32>
    %360 = arith.addf %356, %359 : vector<1x256xf32>
    %361 = vector.extract_strided_slice %285 {offsets = [0, 82], sizes = [1, 256], strides = [1, 1]} : vector<1x358xf32> to vector<1x256xf32>
    %362 = vector.broadcast %37 : f32 to vector<1x256xf32>
    %363 = arith.mulf %362, %361 : vector<1x256xf32>
    %364 = arith.addf %360, %363 : vector<1x256xf32>
    %365 = vector.extract_strided_slice %285 {offsets = [0, 98], sizes = [1, 256], strides = [1, 1]} : vector<1x358xf32> to vector<1x256xf32>
    %366 = vector.broadcast %44 : f32 to vector<1x256xf32>
    %367 = arith.mulf %366, %365 : vector<1x256xf32>
    %368 = arith.addf %364, %367 : vector<1x256xf32>
    %369 = arith.mulf %368, %52 : vector<1x256xf32>
    %370 = vector.extract_strided_slice %285 {offsets = [0, 3], sizes = [1, 256], strides = [1, 1]} : vector<1x358xf32> to vector<1x256xf32>
    %371 = vector.broadcast %3 : f32 to vector<1x256xf32>
    %372 = arith.mulf %371, %370 : vector<1x256xf32>
    %373 = vector.extract_strided_slice %285 {offsets = [0, 19], sizes = [1, 256], strides = [1, 1]} : vector<1x358xf32> to vector<1x256xf32>
    %374 = vector.broadcast %10 : f32 to vector<1x256xf32>
    %375 = arith.mulf %374, %373 : vector<1x256xf32>
    %376 = arith.addf %372, %375 : vector<1x256xf32>
    %377 = vector.extract_strided_slice %285 {offsets = [0, 35], sizes = [1, 256], strides = [1, 1]} : vector<1x358xf32> to vector<1x256xf32>
    %378 = vector.broadcast %17 : f32 to vector<1x256xf32>
    %379 = arith.mulf %378, %377 : vector<1x256xf32>
    %380 = arith.addf %376, %379 : vector<1x256xf32>
    %381 = vector.extract_strided_slice %285 {offsets = [0, 51], sizes = [1, 256], strides = [1, 1]} : vector<1x358xf32> to vector<1x256xf32>
    %382 = vector.broadcast %24 : f32 to vector<1x256xf32>
    %383 = arith.mulf %382, %381 : vector<1x256xf32>
    %384 = arith.addf %380, %383 : vector<1x256xf32>
    %385 = vector.extract_strided_slice %285 {offsets = [0, 67], sizes = [1, 256], strides = [1, 1]} : vector<1x358xf32> to vector<1x256xf32>
    %386 = vector.broadcast %31 : f32 to vector<1x256xf32>
    %387 = arith.mulf %386, %385 : vector<1x256xf32>
    %388 = arith.addf %384, %387 : vector<1x256xf32>
    %389 = vector.extract_strided_slice %285 {offsets = [0, 83], sizes = [1, 256], strides = [1, 1]} : vector<1x358xf32> to vector<1x256xf32>
    %390 = vector.broadcast %38 : f32 to vector<1x256xf32>
    %391 = arith.mulf %390, %389 : vector<1x256xf32>
    %392 = arith.addf %388, %391 : vector<1x256xf32>
    %393 = vector.extract_strided_slice %285 {offsets = [0, 99], sizes = [1, 256], strides = [1, 1]} : vector<1x358xf32> to vector<1x256xf32>
    %394 = vector.broadcast %45 : f32 to vector<1x256xf32>
    %395 = arith.mulf %394, %393 : vector<1x256xf32>
    %396 = arith.addf %392, %395 : vector<1x256xf32>
    %397 = arith.mulf %396, %53 : vector<1x256xf32>
    %398 = vector.extract_strided_slice %285 {offsets = [0, 4], sizes = [1, 256], strides = [1, 1]} : vector<1x358xf32> to vector<1x256xf32>
    %399 = vector.broadcast %4 : f32 to vector<1x256xf32>
    %400 = arith.mulf %399, %398 : vector<1x256xf32>
    %401 = vector.extract_strided_slice %285 {offsets = [0, 20], sizes = [1, 256], strides = [1, 1]} : vector<1x358xf32> to vector<1x256xf32>
    %402 = vector.broadcast %11 : f32 to vector<1x256xf32>
    %403 = arith.mulf %402, %401 : vector<1x256xf32>
    %404 = arith.addf %400, %403 : vector<1x256xf32>
    %405 = vector.extract_strided_slice %285 {offsets = [0, 36], sizes = [1, 256], strides = [1, 1]} : vector<1x358xf32> to vector<1x256xf32>
    %406 = vector.broadcast %18 : f32 to vector<1x256xf32>
    %407 = arith.mulf %406, %405 : vector<1x256xf32>
    %408 = arith.addf %404, %407 : vector<1x256xf32>
    %409 = vector.extract_strided_slice %285 {offsets = [0, 52], sizes = [1, 256], strides = [1, 1]} : vector<1x358xf32> to vector<1x256xf32>
    %410 = vector.broadcast %25 : f32 to vector<1x256xf32>
    %411 = arith.mulf %410, %409 : vector<1x256xf32>
    %412 = arith.addf %408, %411 : vector<1x256xf32>
    %413 = vector.extract_strided_slice %285 {offsets = [0, 68], sizes = [1, 256], strides = [1, 1]} : vector<1x358xf32> to vector<1x256xf32>
    %414 = vector.broadcast %32 : f32 to vector<1x256xf32>
    %415 = arith.mulf %414, %413 : vector<1x256xf32>
    %416 = arith.addf %412, %415 : vector<1x256xf32>
    %417 = vector.extract_strided_slice %285 {offsets = [0, 84], sizes = [1, 256], strides = [1, 1]} : vector<1x358xf32> to vector<1x256xf32>
    %418 = vector.broadcast %39 : f32 to vector<1x256xf32>
    %419 = arith.mulf %418, %417 : vector<1x256xf32>
    %420 = arith.addf %416, %419 : vector<1x256xf32>
    %421 = vector.extract_strided_slice %285 {offsets = [0, 100], sizes = [1, 256], strides = [1, 1]} : vector<1x358xf32> to vector<1x256xf32>
    %422 = vector.broadcast %46 : f32 to vector<1x256xf32>
    %423 = arith.mulf %422, %421 : vector<1x256xf32>
    %424 = arith.addf %420, %423 : vector<1x256xf32>
    %425 = arith.mulf %424, %54 : vector<1x256xf32>
    %426 = vector.extract_strided_slice %285 {offsets = [0, 5], sizes = [1, 256], strides = [1, 1]} : vector<1x358xf32> to vector<1x256xf32>
    %427 = vector.broadcast %5 : f32 to vector<1x256xf32>
    %428 = arith.mulf %427, %426 : vector<1x256xf32>
    %429 = vector.extract_strided_slice %285 {offsets = [0, 21], sizes = [1, 256], strides = [1, 1]} : vector<1x358xf32> to vector<1x256xf32>
    %430 = vector.broadcast %12 : f32 to vector<1x256xf32>
    %431 = arith.mulf %430, %429 : vector<1x256xf32>
    %432 = arith.addf %428, %431 : vector<1x256xf32>
    %433 = vector.extract_strided_slice %285 {offsets = [0, 37], sizes = [1, 256], strides = [1, 1]} : vector<1x358xf32> to vector<1x256xf32>
    %434 = vector.broadcast %19 : f32 to vector<1x256xf32>
    %435 = arith.mulf %434, %433 : vector<1x256xf32>
    %436 = arith.addf %432, %435 : vector<1x256xf32>
    %437 = vector.extract_strided_slice %285 {offsets = [0, 53], sizes = [1, 256], strides = [1, 1]} : vector<1x358xf32> to vector<1x256xf32>
    %438 = vector.broadcast %26 : f32 to vector<1x256xf32>
    %439 = arith.mulf %438, %437 : vector<1x256xf32>
    %440 = arith.addf %436, %439 : vector<1x256xf32>
    %441 = vector.extract_strided_slice %285 {offsets = [0, 69], sizes = [1, 256], strides = [1, 1]} : vector<1x358xf32> to vector<1x256xf32>
    %442 = vector.broadcast %33 : f32 to vector<1x256xf32>
    %443 = arith.mulf %442, %441 : vector<1x256xf32>
    %444 = arith.addf %440, %443 : vector<1x256xf32>
    %445 = vector.extract_strided_slice %285 {offsets = [0, 85], sizes = [1, 256], strides = [1, 1]} : vector<1x358xf32> to vector<1x256xf32>
    %446 = vector.broadcast %40 : f32 to vector<1x256xf32>
    %447 = arith.mulf %446, %445 : vector<1x256xf32>
    %448 = arith.addf %444, %447 : vector<1x256xf32>
    %449 = vector.extract_strided_slice %285 {offsets = [0, 101], sizes = [1, 256], strides = [1, 1]} : vector<1x358xf32> to vector<1x256xf32>
    %450 = vector.broadcast %47 : f32 to vector<1x256xf32>
    %451 = arith.mulf %450, %449 : vector<1x256xf32>
    %452 = arith.addf %448, %451 : vector<1x256xf32>
    %453 = arith.mulf %452, %55 : vector<1x256xf32>
    %454 = vector.extract_strided_slice %285 {offsets = [0, 6], sizes = [1, 256], strides = [1, 1]} : vector<1x358xf32> to vector<1x256xf32>
    %455 = vector.broadcast %6 : f32 to vector<1x256xf32>
    %456 = arith.mulf %455, %454 : vector<1x256xf32>
    %457 = vector.extract_strided_slice %285 {offsets = [0, 22], sizes = [1, 256], strides = [1, 1]} : vector<1x358xf32> to vector<1x256xf32>
    %458 = vector.broadcast %13 : f32 to vector<1x256xf32>
    %459 = arith.mulf %458, %457 : vector<1x256xf32>
    %460 = arith.addf %456, %459 : vector<1x256xf32>
    %461 = vector.extract_strided_slice %285 {offsets = [0, 38], sizes = [1, 256], strides = [1, 1]} : vector<1x358xf32> to vector<1x256xf32>
    %462 = vector.broadcast %20 : f32 to vector<1x256xf32>
    %463 = arith.mulf %462, %461 : vector<1x256xf32>
    %464 = arith.addf %460, %463 : vector<1x256xf32>
    %465 = vector.extract_strided_slice %285 {offsets = [0, 54], sizes = [1, 256], strides = [1, 1]} : vector<1x358xf32> to vector<1x256xf32>
    %466 = vector.broadcast %27 : f32 to vector<1x256xf32>
    %467 = arith.mulf %466, %465 : vector<1x256xf32>
    %468 = arith.addf %464, %467 : vector<1x256xf32>
    %469 = vector.extract_strided_slice %285 {offsets = [0, 70], sizes = [1, 256], strides = [1, 1]} : vector<1x358xf32> to vector<1x256xf32>
    %470 = vector.broadcast %34 : f32 to vector<1x256xf32>
    %471 = arith.mulf %470, %469 : vector<1x256xf32>
    %472 = arith.addf %468, %471 : vector<1x256xf32>
    %473 = vector.extract_strided_slice %285 {offsets = [0, 86], sizes = [1, 256], strides = [1, 1]} : vector<1x358xf32> to vector<1x256xf32>
    %474 = vector.broadcast %41 : f32 to vector<1x256xf32>
    %475 = arith.mulf %474, %473 : vector<1x256xf32>
    %476 = arith.addf %472, %475 : vector<1x256xf32>
    %477 = vector.extract_strided_slice %285 {offsets = [0, 102], sizes = [1, 256], strides = [1, 1]} : vector<1x358xf32> to vector<1x256xf32>
    %478 = vector.broadcast %48 : f32 to vector<1x256xf32>
    %479 = arith.mulf %478, %477 : vector<1x256xf32>
    %480 = arith.addf %476, %479 : vector<1x256xf32>
    %481 = arith.mulf %480, %56 : vector<1x256xf32>
    %482 = arith.addf %313, %341 : vector<1x256xf32>
    %483 = arith.addf %369, %397 : vector<1x256xf32>
    %484 = arith.addf %425, %453 : vector<1x256xf32>
    %485 = arith.addf %482, %483 : vector<1x256xf32>
    %486 = arith.addf %484, %481 : vector<1x256xf32>
    %487 = arith.addf %485, %486 : vector<1x256xf32>
    %488 = vector.broadcast %49 : f32 to vector<1x256xf32>
    %489 = arith.addf %487, %488 : vector<1x256xf32>
    %490 = arith.negf %489 : vector<1x256xf32>
    %491 = math.exp %490 : vector<1x256xf32>
    %cst_121 = arith.constant 1.000000e+00 : f32
    %492 = vector.broadcast %cst_121 : f32 to vector<1x256xf32>
    %493 = arith.addf %492, %491 : vector<1x256xf32>
    %494 = arith.divf %492, %493 : vector<1x256xf32>
    %495 = vector.broadcast %494 : vector<1x256xf32> to vector<4x256xf32>
    %496 = arith.mulf %280, %495 : vector<4x256xf32>
    %c1_122 = arith.constant 1 : index
    %c0_123 = arith.constant 0 : index
    %c0_124 = arith.constant 0 : index
    %497 = vector.load %arg5[%c1_122, %c0_123, %c0_124] : memref<2x4x256xf32, #tpu.memory_space<vmem>>, vector<1x4x256xf32>
    %498 = vector.shape_cast %497 : vector<1x4x256xf32> to vector<4x256xf32>
    %499 = vector.shape_cast %496 : vector<4x256xf32> to vector<1x4x256xf32>
    tpu.vector_store %arg5[%c1_122, %c0_123, %c0_124], %499 {strides = array<i32>} : memref<2x4x256xf32, #tpu.memory_space<vmem>>, vector<1x4x256xf32>,
    return
  }
  func.func @transform_0(%arg0: i32) -> (i32, i32) {
    %c0_i32 = arith.constant 0 : i32
    %c0_i32_0 = arith.constant 0 : i32
    %c0_i32_1 = arith.constant 0 : i32
    return %c0_i32, %c0_i32_0 : i32, i32
  }
  func.func @transform_1(%arg0: i32) -> (i32, i32) {
    %c0_i32 = arith.constant 0 : i32
    %c0_i32_0 = arith.constant 0 : i32
    %c0_i32_1 = arith.constant 0 : i32
    return %c0_i32, %c0_i32_0 : i32, i32
  }
  func.func @transform_2(%arg0: i32) -> (i32, i32) {
    %c0_i32 = arith.constant 0 : i32
    %c0_i32_0 = arith.constant 0 : i32
    %c0_i32_1 = arith.constant 0 : i32
    return %c0_i32, %c0_i32_0 : i32, i32
  }
  func.func @transform_3(%arg0: i32) -> (i32, i32, i32) {
    %c0_i32 = arith.constant 0 : i32
    %c0_i32_0 = arith.constant 0 : i32
    %c0_i32_1 = arith.constant 0 : i32
    return %arg0, %c0_i32, %c0_i32_0 : i32, i32, i32
  }
  func.func @transform_4(%arg0: i32) -> (i32, i32, i32) {
    %c0_i32 = arith.constant 0 : i32
    %c0_i32_0 = arith.constant 0 : i32
    %c0_i32_1 = arith.constant 0 : i32
    return %arg0, %c0_i32, %c0_i32_0 : i32, i32, i32
  }
}

</mosaic_0001>

<bundles_post_ra>
// kernel: tpu_custom_call.1
= control target key start
LH: loop header
LB: loop body
LE: loop exit
PB: predicated region body
PF: predicated region fallthrough
CT: control target
= control target key end

     0   :  { %10 = vsyncpa [#allocation6], 0  ;;  %s4434_s0 = inlined_call_operand.hbm [shape: f32[7,7], index: 0, kind: input, shape index: {}]   ;;  %s4435_s1 = inlined_call_operand.<no memory space> [shape: f32[1,1], index: 1, kind: input, shape index: {}]   ;;  %s4436_s2 = inlined_call_operand.hbm [shape: f32[7,256], index: 2, kind: input, shape index: {}]   ;;  %s4437_s3 = inlined_call_operand.hbm [shape: f32[2,4,256], index: 3, kind: input, shape index: {}]   ;;  %s4438_s4 = inlined_call_operand.hbm [shape: f32[2,4,256], index: 4, kind: output, shape index: {}]  }
   0x1   :  { %11 = vsyncpa [#allocation4], 0 }
   0x2   :  { %12 = vsyncpa [#allocation9], 0 }
   0x3   :  { %13 = vsyncpa [#allocation5], 0  ;;  %s19_s17 = sshll.u32 %s4434_s0, 4  ;;  %s30_s20 = sshll.u32 %s4436_s2, 4  ;;  %s20_s17 = int_to_ptr.hbm [resolvable:$true] %s19_s17  ;;  %s31_s20 = int_to_ptr.hbm [resolvable:$true] %s30_s20 }
   0x4   :  { %s2564_s21 = smov [#allocation3]   ;;  %s2565_s22 = smov [#allocation7]  }
   0x5   :  { %22 = dma.hbm_to_smem %s20_s17, 128, %s2564_s21, [#allocation6]  }
   0x6   :  { %s32_s23 = sshll.u32 %s2565_s22, 4  ;;  %s40_s26 = sshll.u32 %s4437_s3, 4  ;;  %s33_s23 = int_to_ptr.vmem [resolvable:$true] %s32_s23  ;;  %s41_s26 = int_to_ptr.hbm [resolvable:$true] %s40_s26 }
   0x7   :  { %35 = dma.hbm_to_vmem [thread:$0]  %s31_s20, 256, %s33_s23, [#allocation4]  }
   0x8   :  { %s2566_s27 = smov [#allocation8]   ;;  %s2567_s0 = smov 128  }
   0x9   :  { %s42_s28 = sshll.u32 %s2566_s27, 4  ;;  %s2568_s29 = smov 8   ;;  %s43_s28 = int_to_ptr.vmem [resolvable:$true] %s42_s28 }
   0xa   :  { %48 = dma.hbm_to_vmem [thread:$0]  %s41_s26, 256, %s43_s28, [#allocation9], %s2567_s0, %s2567_s0, %s2568_s29  }
   0xb   :  { %2556 = dma.done.wait [#allocation6], 128  }
   0xc   :  { %2557 = vsyncadd [#allocation6], 4294967168 }
   0xd   :  { %2558 = dma.done.wait [#allocation4], 256  }
   0xe   :  { %2559 = vsyncadd [#allocation4], 4294967040 }
   0xf   :  { %2560 = dma.done.wait [#allocation9], 256  }
  0x10   :  { %2561 = vsyncadd [#allocation9], 4294967040 }
  0x11   :  { %61 = sfence }
  0x12   :  { %v114_v0 = vld [vmem:[#allocation7 + $0x1] ss:$8 sm:$0x3]  ;;  %v2623_v1 = vld [vmem:[#allocation8] sm:$0xff]  ;;  %s2569_s2 = smov 1   ;;  %vm132_vm0 = vcmask 1043456  }
  0x13   :  { %4554 = vst [vmem:[#allocation15_spill] sm:$0xff] %v2623_v1  ;;  %v424_v2 = vperm.slane %v114_v0, 1  ;;  %v423_v3 = vperm.slane %v114_v0, 0  ;;  %v2626_v4 = vld [vmem:[#allocation8 + $0x8] sm:$0xff]  ;;  %s2570_s3 = smov 51   ;;  %s2388_s30 = sld [smem:[#allocation3 + $0x80]] }
  0x14   :  { %127 = vst [vmem:[#allocation1] ss:$2 sm:$0xff] %v2623_v1  ;;  %vm155_vm1 = vcmask 416768   ;;  %s2395_s5 = sld [smem:[#allocation3 + $0x100]]  ;;  %s2571_s6 = smov 112   ;;  %vm178_vm2 = vcmask 916480  }
  0x15   :  { %427 = vrot.lane.b32.xlu0 %v424_v2, %s2569_s2  ;;  %425 = vrot.lane.b32.xlu2 %v423_v3, %s2569_s2  ;;  %4555 = vst [vmem:[#allocation16_spill] sm:$0xff] %v2626_v4  ;;  %s2402_s7 = sld [smem:[#allocation3 + $0x180]]  ;;  %s2572_s8 = smov 96   ;;  %vm198_vm3 = vcmask 785408   ;;  %vm218_vm4 = vcmask 654336   ;;  %vm238_vm5 = vcmask 523264  }
  0x16   :  { %s2409_s9 = sld [smem:[#allocation3 + $0x200]]  ;;  %s2573_s10 = smov 80   ;;  %vm258_vm6 = vcmask 392192   ;;  %vm278_vm7 = vcmask 261120   ;;  %vm429_vm8 = vcmask 7168   ;;  %vm719_vm9 = vcmask 23552  }
  0x17   :  { %s2416_s11 = sld [smem:[#allocation3 + $0x280]]  ;;  %s2574_s12 = smov 64   ;;  %vm1009_vm10 = vcmask 39936   ;;  %vm1171_vm11 = vcmask 1039360   ;;  %vm574_vm12 = vcmask 15360   ;;  %vm1154_vm13 = vcmask 48128  }
  0x18   :  { %s2423_s13 = sld [smem:[#allocation3 + $0x300]]  ;;  %s2575_s14 = smov 48   ;;  %vm864_vm14 = vcmask 31744   ;;  %vm4553_vm15 = vcmask 1031168  }
  0x19   :  { %v2635_v24 = vstv %s2388_s30  ;;  %s2389_s15 = sld [smem:[#allocation3 + $0x81]]  ;;  %s2576_s16 = smov 32  }
  0x1a   :  { %4557 = vst [vmem:[#allocation18_spill] sm:$0xff] %v2635_v24  ;;  %v2649_v31 = vstv %s2395_s5  ;;  %s2396_s17 = sld [smem:[#allocation3 + $0x101]]  ;;  %s2577_s5 = smov 2  }
  0x1b   :  { %v128_v5 = vld.sshfl [vmem:[#allocation1] sm:$0xff pattern:$0x75316420]  ;;  %v129_v6 = vld.sshfl [vmem:[#allocation1 + $0x8] sm:$0xff pattern:$0x75316420]  ;;  %v2660_v35 = vstv %s2402_s7 }
  0x1c   :  { %v133_v7 = vsel %vm132_vm0, %v128_v5, 0.0  ;;  %v140_v8 = vsel %vm132_vm0, %v129_v6, 0.0  ;;  %1314 = vst [vmem:[#allocation1] ss:$2 sm:$0xff] %v2626_v4  ;;  %v2671_v39 = vstv %s2409_s9  ;;  %s2403_s18 = sld [smem:[#allocation3 + $0x181]] }
  0x1d   :  { %v134_v9 = vrot.slane %v133_v7, 4  ;;  %v141_v10 = vrot.slane %v140_v8, 4  ;;  %4558 = vst [vmem:[#allocation19_spill] sm:$0xff] %v2649_v31  ;;  %v2682_v43 = vstv %s2416_s11  ;;  %s2410_s19 = sld [smem:[#allocation3 + $0x201]] }
  0x1e   :  { %4559 = vst [vmem:[#allocation20_spill] sm:$0xff] %v2660_v35  ;;  %v2693_v47 = vstv %s2423_s13  ;;  %s2417_s20 = sld [smem:[#allocation3 + $0x281]] }
  0x1f   :  { %v135_v11 = vadd.f32 %v134_v9, %v133_v7  ;;  %v142_v12 = vadd.f32 %v141_v10, %v140_v8  ;;  %4560 = vst [vmem:[#allocation21_spill] sm:$0xff] %v2671_v39  ;;  %v2704_v51 = vstv %s2389_s15  ;;  %s2424_s21 = sld [smem:[#allocation3 + $0x301]]  ;;  %s2578_s15 = smov 3  }
  0x20   :  { %4561 = vst [vmem:[#allocation22_spill] sm:$0xff] %v2682_v43  ;;  %v2715_v55 = vstv %s2396_s17  ;;  %s2390_s22 = sld [smem:[#allocation3 + $0x82]] }
  0x21   :  { %v136_v13 = vrot.slane %v135_v11, 2  ;;  %v143_v14 = vrot.slane %v142_v12, 2  ;;  %4562 = vst [vmem:[#allocation23_spill] sm:$0xff] %v2693_v47  ;;  %s2397_s23 = sld [smem:[#allocation3 + $0x102]] }
  0x22   :  { %4563 = vst [vmem:[#allocation24_spill] sm:$0xff] %v2704_v51  ;;  %v2726_v59 = vstv %s2403_s18  ;;  %s2404_s24 = sld [smem:[#allocation3 + $0x182]] }
  0x23   :  { %v137_v15 = vadd.f32 %v136_v13, %v135_v11  ;;  %v144_v16 = vadd.f32 %v143_v14, %v142_v12  ;;  %4564 = vst [vmem:[#allocation25_spill] sm:$0xff] %v2715_v55  ;;  %v2737_v63 = vstv %s2410_s19  ;;  %s2411_s25 = sld [smem:[#allocation3 + $0x202]] }
  0x24   :  { %4565 = vst [vmem:[#allocation26_spill] sm:$0xff] %v2726_v59  ;;  %v2748_v5 = vstv %s2417_s20  ;;  %s2418_s26 = sld [smem:[#allocation3 + $0x282]] }
  0x25   :  { %v138_v17 = vrot.slane %v137_v15, 1  ;;  %v145_v19 = vrot.slane %v144_v16, 1  ;;  %4566 = vst [vmem:[#allocation27_spill] sm:$0xff] %v2737_v63  ;;  %v2759_v9 = vstv %s2424_s21  ;;  %s2425_s27 = sld [smem:[#allocation3 + $0x302]] }
  0x26   :  { %4567 = vst [vmem:[#allocation28_spill] sm:$0xff] %v2748_v5  ;;  %v2772_v14 = vstv %s2390_s22  ;;  %s2391_s28 = sld [smem:[#allocation3 + $0x83]] }
  0x27   :  { %v139_v18 = vadd.f32 %v138_v17, %v137_v15  ;;  %v146_v21 = vadd.f32 %v145_v19, %v144_v16  ;;  %4568 = vst [vmem:[#allocation29_spill] sm:$0xff] %v2759_v9  ;;  %v2785_v19 = vstv %s2397_s23  ;;  %s2398_s2 = sld [smem:[#allocation3 + $0x103]]  ;;  %s2579_s23 = smov 4  }
  0x28   :  { %4570 = vst [vmem:[#allocation31_spill] sm:$0xff] %v2772_v14  ;;  %s2405_s30 = sld [smem:[#allocation3 + $0x183]] }
  0x29   :  { %v147_v20 = vmul.f32 0.25, %v139_v18  ;;  %v148_v22 = vmul.f32 0.25, %v146_v21  ;;  %4572 = vst [vmem:[#allocation33_spill] sm:$0xff] %v2785_v19  ;;  %s2412_s7 = sld [smem:[#allocation3 + $0x203]] }
  0x2a   :  { %s2419_s9 = sld [smem:[#allocation3 + $0x283]] }
  0x2b   :  { %151 = vrot.lane.b32.xlu0 %v147_v20, %s2570_s3  ;;  %s2426_s11 = sld [smem:[#allocation3 + $0x303]] }
  0x2c   :  { %s2392_s13 = sld [smem:[#allocation3 + $0x84]] }
  0x2d   :  { %s2399_s17 = sld [smem:[#allocation3 + $0x104]] }
  0x2e   :  { %s2406_s18 = sld [smem:[#allocation3 + $0x184]] }
  0x2f   :  { %s2413_s19 = sld [smem:[#allocation3 + $0x204]] }
  0x30   :  { %s2420_s20 = sld [smem:[#allocation3 + $0x284]] }
  0x31   :  { %s2427_s21 = sld [smem:[#allocation3 + $0x304]] }
  0x32   :  { %s2393_s22 = sld [smem:[#allocation3 + $0x85]] }
  0x33   :  { %153 = vrot.lane.b32.xlu0 %v148_v22, %s2570_s3 }
  0x6f   :  { %v2770_v13 = vpop.permute.xlu2 %425 }
  0x70   :  { %4569 = vst [vmem:[#allocation30_spill] sm:$0xff] %v2770_v13 }
  0x87   :  { %v2633_v23 = vpop.permute.xlu0 %427 }
  0x88   :  { %4556 = vst [vmem:[#allocation17_spill] sm:$0xff] %v2633_v23 }
  0x9d   :  { %v152_v25 = vpop.permute.xlu0 %151 }
  0x9e   :  { %v2638_v26 = vsel %vm155_vm1, 0.0, %v152_v25 }
  0x9f   :  { %v166_v27 = vmul.f32 %v2635_v24, %v2638_v26  ;;  %v186_v37 = vmul.f32 %v2649_v31, %v2638_v26  ;;  %v206_v41 = vmul.f32 %v2660_v35, %v2638_v26  ;;  %v226_v45 = vmul.f32 %v2671_v39, %v2638_v26 }
  0xa0   :  { %v246_v49 = vmul.f32 %v2682_v43, %v2638_v26  ;;  %v266_v53 = vmul.f32 %v2693_v47, %v2638_v26  ;;  %v297_v57 = vmul.f32 %v2704_v51, %v2638_v26  ;;  %v318_v61 = vmul.f32 %v2715_v55, %v2638_v26 }
  0xa1   :  { %172 = vrot.lane.b32.xlu1 %v166_v27, %s2571_s6  ;;  %v339_v2 = vmul.f32 %v2726_v59, %v2638_v26  ;;  %v360_v7 = vmul.f32 %v2737_v63, %v2638_v26  ;;  %v381_v11 = vmul.f32 %v2748_v5, %v2638_v26  ;;  %v402_v16 = vmul.f32 %v2759_v9, %v2638_v26 }
  0xa2   :  { %v442_v22 = vmul.f32 %v2772_v14, %v2638_v26  ;;  %v2798_v27 = vstv %s2404_s24  ;;  %s2400_s24 = sld [smem:[#allocation3 + $0x105]] }
  0xa3   :  { %4574 = vst [vmem:[#allocation35_spill] sm:$0xff] %v2798_v27 }
  0xa5   :  { %v154_v28 = vpop.permute.xlu0 %153 }
  0xa6   :  { %v2644_v29 = vsel %vm155_vm1, %v152_v25, %v154_v28  ;;  %v2647_v30 = vsel %vm155_vm1, %v154_v28, 0.0 }
  0xa7   :  { %v187_v32 = vmul.f32 %v2649_v31, %v2644_v29  ;;  %v168_v33 = vmul.f32 %v2635_v24, %v2647_v30  ;;  %v167_v34 = vmul.f32 %v2635_v24, %v2644_v29  ;;  %v207_v36 = vmul.f32 %v2660_v35, %v2644_v29 }
  0xa8   :  { %v188_v38 = vmul.f32 %v2649_v31, %v2647_v30  ;;  %v227_v40 = vmul.f32 %v2671_v39, %v2644_v29  ;;  %v208_v42 = vmul.f32 %v2660_v35, %v2647_v30  ;;  %v247_v44 = vmul.f32 %v2682_v43, %v2644_v29 }
  0xa9   :  { %194 = vrot.lane.b32.xlu0 %v187_v32, %s2572_s8  ;;  %176 = vrot.lane.b32.xlu2 %v168_v33, %s2571_s6  ;;  %v228_v46 = vmul.f32 %v2671_v39, %v2647_v30  ;;  %v267_v48 = vmul.f32 %v2693_v47, %v2644_v29  ;;  %v248_v50 = vmul.f32 %v2682_v43, %v2647_v30  ;;  %v3054_v39 = vstv %s2427_s21  ;;  %s2383_s21 = sld [smem:[#allocation3 + $0x2]] }
  0xaa   :  { %174 = vrot.lane.b32.xlu1 %v167_v34, %s2571_s6  ;;  %v298_v52 = vmul.f32 %v2704_v51, %v2644_v29  ;;  %v268_v54 = vmul.f32 %v2693_v47, %v2647_v30  ;;  %v319_v56 = vmul.f32 %v2715_v55, %v2644_v29  ;;  %v299_v58 = vmul.f32 %v2704_v51, %v2647_v30 }
  0xab   :  { %v340_v60 = vmul.f32 %v2726_v59, %v2644_v29  ;;  %v320_v62 = vmul.f32 %v2715_v55, %v2647_v30  ;;  %v361_v0 = vmul.f32 %v2737_v63, %v2644_v29  ;;  %v341_v3 = vmul.f32 %v2726_v59, %v2647_v30  ;;  %4613 = vst [vmem:[#allocation74_spill] sm:$0xff] %v3054_v39 }
  0xac   :  { %v382_v6 = vmul.f32 %v2748_v5, %v2644_v29  ;;  %v362_v8 = vmul.f32 %v2737_v63, %v2647_v30  ;;  %v403_v10 = vmul.f32 %v2759_v9, %v2644_v29  ;;  %v383_v12 = vmul.f32 %v2748_v5, %v2647_v30 }
  0xad   :  { %v444_v15 = vmul.f32 %v2772_v14, %v2647_v30  ;;  %v404_v17 = vmul.f32 %v2759_v9, %v2647_v30  ;;  %v465_v20 = vmul.f32 %v2785_v19, %v2647_v30  ;;  %v443_v21 = vmul.f32 %v2772_v14, %v2644_v29 }
  0xae   :  { %v486_v28 = vmul.f32 %v2798_v27, %v2647_v30  ;;  %v464_v32 = vmul.f32 %v2785_v19, %v2644_v29  ;;  %v463_v33 = vmul.f32 %v2785_v19, %v2638_v26  ;;  %v3003_v9 = vstv %s2406_s18  ;;  %s2581_s18 = smov 6  }
  0xaf   :  { %4603 = vst [vmem:[#allocation64_spill] sm:$0xff] %v3003_v9  ;;  %v3020_v63 = vstv %s2413_s19  ;;  %v3037_v51 = vstv %s2420_s20  ;;  %v838_v35 = vmul.f32 %v3054_v39, %v2644_v29  ;;  %s2582_s19 = smov 127   ;;  %s2386_s20 = sld [smem:[#allocation3 + $0x5]] }
  0xb0   :  { %4606 = vst [vmem:[#allocation67_spill] sm:$0xff] %v3020_v63  ;;  %v796_v59 = vmul.f32 %v3020_v63, %v2644_v29  ;;  %v817_v47 = vmul.f32 %v3037_v51, %v2644_v29 }
  0xb1   :  { %214 = vrot.lane.b32.xlu0 %v207_v36, %s2573_s10  ;;  %192 = vrot.lane.b32.xlu2 %v186_v37, %s2572_s8  ;;  %v2813_v37 = vstv %s2411_s25  ;;  %4609 = vst [vmem:[#allocation70_spill] sm:$0xff] %v3037_v51  ;;  %s2407_s25 = sld [smem:[#allocation3 + $0x185]] }
  0xb2   :  { %196 = vrot.lane.b32.xlu1 %v188_v38, %s2572_s8  ;;  %4577 = vst [vmem:[#allocation38_spill] sm:$0xff] %v2813_v37  ;;  %v507_v38 = vmul.f32 %v2813_v37, %v2647_v30 }
  0xb9   :  { %234 = vrot.lane.b32.xlu0 %v227_v40, %s2574_s12  ;;  %212 = vrot.lane.b32.xlu2 %v206_v41, %s2573_s10  ;;  %v485_v40 = vmul.f32 %v2798_v27, %v2644_v29  ;;  %v484_v41 = vmul.f32 %v2798_v27, %v2638_v26  ;;  %v2989_v27 = vstv %s2399_s17  ;;  %s2384_s17 = sld [smem:[#allocation3 + $0x3]] }
  0xba   :  { %216 = vrot.lane.b32.xlu1 %v208_v42, %s2573_s10  ;;  %4601 = vst [vmem:[#allocation62_spill] sm:$0xff] %v2989_v27  ;;  %v754_v14 = vmul.f32 %v2989_v27, %v2644_v29  ;;  %v753_v5 = vmul.f32 %v2989_v27, %v2638_v26 }
  0xc1   :  { %254 = vrot.lane.b32.xlu0 %v247_v44, %s2575_s14  ;;  %232 = vrot.lane.b32.xlu2 %v226_v45, %s2574_s12 }
  0xc2   :  { %236 = vrot.lane.b32.xlu1 %v228_v46, %s2574_s12  ;;  %v2830_v46 = vstv %s2418_s26  ;;  %s2414_s26 = sld [smem:[#allocation3 + $0x205]] }
  0xc3   :  { %4581 = vst [vmem:[#allocation42_spill] sm:$0xff] %v2830_v46 }
  0xc9   :  { %274 = vrot.lane.b32.xlu0 %v267_v48, %s2576_s16  ;;  %252 = vrot.lane.b32.xlu2 %v246_v49, %s2575_s14  ;;  %v528_v48 = vmul.f32 %v2830_v46, %v2647_v30  ;;  %v506_v49 = vmul.f32 %v2813_v37, %v2644_v29 }
  0xca   :  { %256 = vrot.lane.b32.xlu1 %v248_v50, %s2575_s14  ;;  %v505_v50 = vmul.f32 %v2813_v37, %v2638_v26 }
  0xd1   :  { %305 = vrot.lane.b32.xlu0 %v298_v52, %s2571_s6  ;;  %272 = vrot.lane.b32.xlu2 %v266_v53, %s2576_s16 }
  0xd2   :  { %276 = vrot.lane.b32.xlu1 %v268_v54, %s2576_s16 }
  0xd9   :  { %326 = vrot.lane.b32.xlu0 %v319_v56, %s2572_s8  ;;  %303 = vrot.lane.b32.xlu2 %v297_v57, %s2571_s6  ;;  %v2847_v56 = vstv %s2425_s27  ;;  %s2421_s27 = sld [smem:[#allocation3 + $0x285]] }
  0xda   :  { %307 = vrot.lane.b32.xlu1 %v299_v58, %s2571_s6  ;;  %4585 = vst [vmem:[#allocation46_spill] sm:$0xff] %v2847_v56  ;;  %v549_v57 = vmul.f32 %v2847_v56, %v2647_v30  ;;  %v527_v58 = vmul.f32 %v2830_v46, %v2644_v29 }
  0xe1   :  { %347 = vrot.lane.b32.xlu0 %v340_v60, %s2573_s10  ;;  %324 = vrot.lane.b32.xlu2 %v318_v61, %s2572_s8  ;;  %v526_v60 = vmul.f32 %v2830_v46, %v2638_v26 }
  0xe2   :  { %328 = vrot.lane.b32.xlu1 %v320_v62, %s2572_s8 }
  0xe9   :  { %368 = vrot.lane.b32.xlu0 %v361_v0, %s2574_s12  ;;  %345 = vrot.lane.b32.xlu2 %v339_v2, %s2573_s10  ;;  %v2864_v2 = vstv %s2391_s28  ;;  %s2428_s28 = sld [smem:[#allocation3 + $0x305]] }
  0xea   :  { %349 = vrot.lane.b32.xlu1 %v341_v3, %s2573_s10  ;;  %4589 = vst [vmem:[#allocation50_spill] sm:$0xff] %v2864_v2  ;;  %v587_v3 = vmul.f32 %v2864_v2, %v2638_v26 }
  0xf1   :  { %389 = vrot.lane.b32.xlu0 %v382_v6, %s2575_s14  ;;  %366 = vrot.lane.b32.xlu2 %v360_v7, %s2574_s12  ;;  %v548_v6 = vmul.f32 %v2847_v56, %v2644_v29  ;;  %v547_v7 = vmul.f32 %v2847_v56, %v2638_v26  ;;  %v2972_v56 = vstv %s2392_s13  ;;  %s2429_s13 = sld [smem:[#allocation3 + $0x306]] }
  0xf2   :  { %370 = vrot.lane.b32.xlu1 %v362_v8, %s2574_s12  ;;  %v116_v8 = vld [vmem:[#allocation7 + $0x2] ss:$8 sm:$0x3]  ;;  %4600 = vst [vmem:[#allocation61_spill] sm:$0xff] %v2972_v56  ;;  %v733_v46 = vmul.f32 %v2972_v56, %v2644_v29 }
  0xf9   :  { %410 = vrot.lane.b32.xlu0 %v403_v10, %s2576_s16  ;;  %387 = vrot.lane.b32.xlu2 %v381_v11, %s2575_s14 }
  0xfa   :  { %391 = vrot.lane.b32.xlu1 %v383_v12, %s2575_s14 }
 0x101   :  { %452 = vrot.lane.b32.xlu0 %v444_v15, %s2571_s6  ;;  %408 = vrot.lane.b32.xlu2 %v402_v16, %s2576_s16  ;;  %v2881_v15 = vstv %s2398_s2  ;;  %v569_v16 = vperm.slane %v116_v8, 1  ;;  %s2394_s2 = sld [smem:[#allocation3 + $0x86]] }
 0x102   :  { %412 = vrot.lane.b32.xlu1 %v404_v17, %s2576_s16  ;;  %4592 = vst [vmem:[#allocation53_spill] sm:$0xff] %v2881_v15  ;;  %v568_v17 = vperm.slane %v116_v8, 0  ;;  %v2926_v8 = vstv %s2419_s9  ;;  %s2415_s9 = sld [smem:[#allocation3 + $0x206]] }
 0x103   :  { %v2783_v18 = vpop.permute.xlu2 %176  ;;  %4598 = vst [vmem:[#allocation59_spill] sm:$0xff] %v2926_v8 }
 0x104   :  { %4571 = vst [vmem:[#allocation32_spill] sm:$0xff] %v2783_v18 }
 0x109   :  { %473 = vrot.lane.b32.xlu0 %v465_v20, %s2572_s8  ;;  %450 = vrot.lane.b32.xlu2 %v443_v21, %s2571_s6  ;;  %v608_v20 = vmul.f32 %v2881_v15, %v2638_v26 }
 0x10a   :  { %448 = vrot.lane.b32.xlu1 %v442_v22, %s2571_s6 }
 0x10b   :  { %v2796_v25 = vpop.permute.xlu2 %192 }
 0x10c   :  { %4573 = vst [vmem:[#allocation34_spill] sm:$0xff] %v2796_v25 }
 0x111   :  { %494 = vrot.lane.b32.xlu0 %v486_v28, %s2573_s10  ;;  %471 = vrot.lane.b32.xlu2 %v464_v32, %s2572_s8  ;;  %v2892_v32 = vstv %s2405_s30  ;;  %s2401_s30 = sld [smem:[#allocation3 + $0x106]] }
 0x112   :  { %469 = vrot.lane.b32.xlu1 %v463_v33, %s2572_s8  ;;  %4595 = vst [vmem:[#allocation56_spill] sm:$0xff] %v2892_v32  ;;  %v629_v33 = vmul.f32 %v2892_v32, %v2638_v26 }
 0x113   :  { %v2809_v34 = vpop.permute.xlu2 %212  ;;  %v2811_v36 = vpop.permute.xlu1 %172 }
 0x114   :  { %4575 = vst [vmem:[#allocation36_spill] sm:$0xff] %v2809_v34 }
 0x115   :  { %4576 = vst [vmem:[#allocation37_spill] sm:$0xff] %v2811_v36  ;;  %v3165_v36 = vstv %s2428_s28 }
 0x116   :  { %4626 = vst [vmem:[#allocation87_spill] sm:$0xff] %v3165_v36 }
 0x119   :  { %515 = vrot.lane.b32.xlu0 %v507_v38, %s2574_s12  ;;  %492 = vrot.lane.b32.xlu2 %v485_v40, %s2573_s10  ;;  %v589_v38 = vmul.f32 %v2864_v2, %v2647_v30  ;;  %v588_v40 = vmul.f32 %v2864_v2, %v2644_v29  ;;  %v673_v2 = vmul.f32 %v2926_v8, %v2647_v30 }
 0x11a   :  { %490 = vrot.lane.b32.xlu1 %v484_v41, %s2573_s10 }
 0x11b   :  { %v2824_v42 = vpop.permute.xlu0 %194  ;;  %v2826_v44 = vpop.permute.xlu2 %232 }
 0x11c   :  { %4578 = vst [vmem:[#allocation39_spill] sm:$0xff] %v2824_v42  ;;  %v2828_v45 = vpop.permute.xlu1 %174 }
 0x11d   :  { %4579 = vst [vmem:[#allocation40_spill] sm:$0xff] %v2826_v44 }
 0x11e   :  { %4580 = vst [vmem:[#allocation41_spill] sm:$0xff] %v2828_v45  ;;  %v984_v45 = vmul.f32 %v3165_v36, %v2647_v30 }
 0x121   :  { %536 = vrot.lane.b32.xlu0 %v528_v48, %s2575_s14  ;;  %513 = vrot.lane.b32.xlu2 %v506_v49, %s2574_s12 }
 0x122   :  { %511 = vrot.lane.b32.xlu1 %v505_v50, %s2574_s12  ;;  %v2909_v50 = vstv %s2412_s7  ;;  %s2580_s7 = smov 5  }
 0x123   :  { %v2841_v52 = vpop.permute.xlu0 %214  ;;  %v2843_v53 = vpop.permute.xlu2 %252  ;;  %4597 = vst [vmem:[#allocation58_spill] sm:$0xff] %v2909_v50 }
 0x124   :  { %4582 = vst [vmem:[#allocation43_spill] sm:$0xff] %v2841_v52  ;;  %v2845_v54 = vpop.permute.xlu1 %196  ;;  %v3131_v52 = vstv %s2414_s26  ;;  %s62_s26 = sld [smem:[#allocation3]] }
 0x125   :  { %4583 = vst [vmem:[#allocation44_spill] sm:$0xff] %v2843_v53  ;;  %v942_v25 = vmul.f32 %v3131_v52, %v2647_v30 }
 0x126   :  { %4584 = vst [vmem:[#allocation45_spill] sm:$0xff] %v2845_v54  ;;  %v3148_v54 = vstv %s2421_s27 }
 0x127   :  { %4624 = vst [vmem:[#allocation85_spill] sm:$0xff] %v3131_v52  ;;  %v963_v18 = vmul.f32 %v3148_v54, %v2647_v30 }
 0x128   :  { %4625 = vst [vmem:[#allocation86_spill] sm:$0xff] %v3148_v54 }
 0x129   :  { %557 = vrot.lane.b32.xlu0 %v549_v57, %s2576_s16  ;;  %534 = vrot.lane.b32.xlu2 %v527_v58, %s2575_s14  ;;  %v650_v57 = vmul.f32 %v2909_v50, %v2638_v26  ;;  %v610_v58 = vmul.f32 %v2881_v15, %v2647_v30 }
 0x12a   :  { %532 = vrot.lane.b32.xlu1 %v526_v60, %s2575_s14  ;;  %v609_v60 = vmul.f32 %v2881_v15, %v2644_v29 }
 0x12b   :  { %v2858_v61 = vpop.permute.xlu0 %234  ;;  %v2860_v62 = vpop.permute.xlu2 %272 }
 0x12c   :  { %4586 = vst [vmem:[#allocation47_spill] sm:$0xff] %v2858_v61  ;;  %v2862_v0 = vpop.permute.xlu1 %216 }
 0x12d   :  { %4587 = vst [vmem:[#allocation48_spill] sm:$0xff] %v2860_v62 }
 0x12e   :  { %4588 = vst [vmem:[#allocation49_spill] sm:$0xff] %v2862_v0  ;;  %v3114_v0 = vstv %s2407_s25  ;;  %s2584_s25 = smov 124  }
 0x12f   :  { %4623 = vst [vmem:[#allocation84_spill] sm:$0xff] %v3114_v0  ;;  %v921_v31 = vmul.f32 %v3114_v0, %v2647_v30 }
 0x131   :  { %593 = vrot.lane.b32.xlu0 %v587_v3, %s2571_s6  ;;  %555 = vrot.lane.b32.xlu2 %v548_v6, %s2576_s16 }
 0x132   :  { %553 = vrot.lane.b32.xlu1 %v547_v7, %s2576_s16 }
 0x133   :  { %v2875_v10 = vpop.permute.xlu0 %254  ;;  %v2877_v11 = vpop.permute.xlu2 %303 }
 0x134   :  { %4590 = vst [vmem:[#allocation51_spill] sm:$0xff] %v2875_v10  ;;  %v2879_v12 = vpop.permute.xlu1 %236  ;;  %v3083_v10 = vstv %s2393_s22  ;;  %s2387_s22 = sld [smem:[#allocation3 + $0x6]] }
 0x135   :  { %4591 = vst [vmem:[#allocation52_spill] sm:$0xff] %v2879_v12  ;;  %v879_v12 = vmul.f32 %v3083_v10, %v2647_v30 }
 0x136   :  { %4619 = vst [vmem:[#allocation80_spill] sm:$0xff] %v3083_v10 }
 0x139   :  { %614 = vrot.lane.b32.xlu0 %v608_v20, %s2572_s8  ;;  %572 = vrot.lane.b32.xlu2 %v569_v16, %s2577_s5  ;;  %v671_v16 = vmul.f32 %v2926_v8, %v2638_v26  ;;  %v630_v20 = vmul.f32 %v2892_v32, %v2644_v29 }
 0x13a   :  { %570 = vrot.lane.b32.xlu1 %v568_v17, %s2577_s5  ;;  %v631_v17 = vmul.f32 %v2892_v32, %v2647_v30  ;;  %s2408_s5 = sld [smem:[#allocation3 + $0x186]] }
 0x13b   :  { %v2886_v21 = vpop.permute.xlu0 %274  ;;  %v2888_v22 = vpop.permute.xlu2 %324 }
 0x13c   :  { %4593 = vst [vmem:[#allocation54_spill] sm:$0xff] %v2886_v21  ;;  %v2890_v28 = vpop.permute.xlu1 %256 }
 0x13d   :  { %4594 = vst [vmem:[#allocation55_spill] sm:$0xff] %v2890_v28  ;;  %v837_v28 = vmul.f32 %v3054_v39, %v2638_v26 }
 0x141   :  { %635 = vrot.lane.b32.xlu0 %v629_v33, %s2573_s10  ;;  %597 = vrot.lane.b32.xlu2 %v589_v38, %s2571_s6 }
 0x142   :  { %595 = vrot.lane.b32.xlu1 %v588_v40, %s2571_s6 }
 0x143   :  { %v2903_v41 = vpop.permute.xlu0 %305  ;;  %v2905_v48 = vpop.permute.xlu2 %345 }
 0x144   :  { %v2907_v49 = vpop.permute.xlu1 %276 }
 0x145   :  { %4596 = vst [vmem:[#allocation57_spill] sm:$0xff] %v2907_v49 }
 0x149   :  { %656 = vrot.lane.b32.xlu0 %v650_v57, %s2574_s12  ;;  %618 = vrot.lane.b32.xlu2 %v610_v58, %s2572_s8  ;;  %v2943_v57 = vstv %s2426_s11  ;;  %s2422_s11 = sld [smem:[#allocation3 + $0x286]] }
 0x14a   :  { %616 = vrot.lane.b32.xlu1 %v609_v60, %s2572_s8  ;;  %4599 = vst [vmem:[#allocation60_spill] sm:$0xff] %v2943_v57  ;;  %v692_v58 = vmul.f32 %v2943_v57, %v2638_v26  ;;  %v652_v60 = vmul.f32 %v2909_v50, %v2647_v30 }
 0x14b   :  { %v2920_v3 = vpop.permute.xlu0 %326  ;;  %v2922_v6 = vpop.permute.xlu2 %366 }
 0x14c   :  { %v2924_v7 = vpop.permute.xlu1 %307 }
 0x151   :  { %677 = vrot.lane.b32.xlu0 %v671_v16, %s2575_s14  ;;  %639 = vrot.lane.b32.xlu2 %v631_v17, %s2573_s10  ;;  %v651_v16 = vmul.f32 %v2909_v50, %v2644_v29  ;;  %v118_v17 = vld [vmem:[#allocation7 + $0x3] ss:$8 sm:$0x3]  ;;  %v672_v50 = vmul.f32 %v2926_v8, %v2644_v29  ;;  %v694_v8 = vmul.f32 %v2943_v57, %v2647_v30 }
 0x152   :  { %637 = vrot.lane.b32.xlu1 %v630_v20, %s2573_s10  ;;  %v713_v15 = vperm.slane %v118_v17, 0  ;;  %v714_v19 = vperm.slane %v118_v17, 1  ;;  %v775_v17 = vmul.f32 %v3003_v9, %v2644_v29 }
 0x153   :  { %v2937_v33 = vpop.permute.xlu0 %347  ;;  %v2939_v38 = vpop.permute.xlu2 %387 }
 0x154   :  { %v2941_v40 = vpop.permute.xlu1 %328 }
 0x159   :  { %698 = vrot.lane.b32.xlu0 %v692_v58, %s2576_s16  ;;  %660 = vrot.lane.b32.xlu2 %v652_v60, %s2574_s12 }
 0x15a   :  { %658 = vrot.lane.b32.xlu1 %v651_v16, %s2574_s12 }
 0x15b   :  { %v2954_v20 = vpop.permute.xlu0 %368  ;;  %v2956_v4 = vpop.permute.xlu2 %408 }
 0x15c   :  { %v2958_v32 = vpop.permute.xlu1 %349 }
 0x161   :  { %715 = vrot.lane.b32.xlu0 %v713_v15, %s2578_s15  ;;  %681 = vrot.lane.b32.xlu2 %v673_v2, %s2575_s14  ;;  %v693_v2 = vmul.f32 %v2943_v57, %v2644_v29 }
 0x162   :  { %679 = vrot.lane.b32.xlu1 %v672_v50, %s2575_s14 }
 0x163   :  { %v2966_v58 = vpop.permute.xlu0 %389  ;;  %v2968_v60 = vpop.permute.xlu2 %450 }
 0x164   :  { %v2970_v16 = vpop.permute.xlu1 %370 }
 0x169   :  { %740 = vrot.lane.b32.xlu0 %v733_v46, %s2571_s6  ;;  %702 = vrot.lane.b32.xlu2 %v694_v8, %s2576_s16  ;;  %v732_v46 = vmul.f32 %v2972_v56, %v2638_v26 }
 0x16a   :  { %700 = vrot.lane.b32.xlu1 %v693_v2, %s2576_s16 }
 0x16b   :  { %v2983_v15 = vpop.permute.xlu0 %410  ;;  %v2985_v50 = vpop.permute.xlu2 %471 }
 0x16c   :  { %v2987_v37 = vpop.permute.xlu1 %391 }
 0x171   :  { %761 = vrot.lane.b32.xlu0 %v754_v14, %s2572_s8  ;;  %738 = vrot.lane.b32.xlu2 %v732_v46, %s2571_s6  ;;  %v734_v14 = vmul.f32 %v2972_v56, %v2647_v30  ;;  %v774_v56 = vmul.f32 %v3003_v9, %v2638_v26 }
 0x172   :  { %717 = vrot.lane.b32.xlu1 %v714_v19, %s2578_s15  ;;  %s2382_s15 = sld [smem:[#allocation3 + $0x1]] }
 0x173   :  { %v2997_v8 = vpop.permute.xlu0 %452  ;;  %v2999_v2 = vpop.permute.xlu2 %492 }
 0x174   :  { %4602 = vst [vmem:[#allocation63_spill] sm:$0xff] %v2997_v8  ;;  %v3001_v57 = vpop.permute.xlu1 %412 }
 0x179   :  { %782 = vrot.lane.b32.xlu0 %v775_v17, %s2573_s10  ;;  %759 = vrot.lane.b32.xlu2 %v753_v5, %s2572_s8  ;;  %v755_v5 = vmul.f32 %v2989_v27, %v2647_v30  ;;  %v795_v27 = vmul.f32 %v3020_v63, %v2638_v26 }
 0x17a   :  { %742 = vrot.lane.b32.xlu1 %v734_v14, %s2571_s6 }
 0x17b   :  { %v3014_v19 = vpop.permute.xlu0 %473  ;;  %v3016_v46 = vpop.permute.xlu2 %513 }
 0x17c   :  { %4604 = vst [vmem:[#allocation65_spill] sm:$0xff] %v3014_v19  ;;  %v3018_v1 = vpop.permute.xlu1 %448 }
 0x17d   :  { %4605 = vst [vmem:[#allocation66_spill] sm:$0xff] %v3016_v46 }
 0x181   :  { %803 = vrot.lane.b32.xlu0 %v796_v59, %s2574_s12  ;;  %780 = vrot.lane.b32.xlu2 %v774_v56, %s2573_s10  ;;  %v776_v59 = vmul.f32 %v3003_v9, %v2647_v30  ;;  %v816_v9 = vmul.f32 %v3037_v51, %v2638_v26 }
 0x182   :  { %763 = vrot.lane.b32.xlu1 %v755_v5, %s2572_s8 }
 0x183   :  { %v3031_v17 = vpop.permute.xlu0 %494  ;;  %v3033_v14 = vpop.permute.xlu2 %534 }
 0x184   :  { %4607 = vst [vmem:[#allocation68_spill] sm:$0xff] %v3031_v17  ;;  %v3035_v55 = vpop.permute.xlu1 %469  ;;  %v3199_v17 = vstv %s2401_s30 }
 0x185   :  { %4608 = vst [vmem:[#allocation69_spill] sm:$0xff] %v3033_v14  ;;  %v3285_v14 = vld [vmem:[#allocation7 + $0x6] ss:$8 sm:$0x3] }
 0x186   :  { %4630 = vst [vmem:[#allocation91_spill] sm:$0xff] %v3199_v17 }
 0x189   :  { %824 = vrot.lane.b32.xlu0 %v817_v47, %s2575_s14  ;;  %801 = vrot.lane.b32.xlu2 %v795_v27, %s2574_s12  ;;  %v797_v47 = vmul.f32 %v3020_v63, %v2647_v30  ;;  %v120_v27 = vld [vmem:[#allocation7 + $0x4] ss:$8 sm:$0x3]  ;;  %v818_v63 = vmul.f32 %v3037_v51, %v2647_v30 }
 0x18a   :  { %784 = vrot.lane.b32.xlu1 %v776_v59, %s2573_s10  ;;  %v859_v21 = vperm.slane %v120_v27, 1  ;;  %v858_v53 = vperm.slane %v120_v27, 0  ;;  %v3097_v27 = vstv %s2400_s24  ;;  %s2385_s24 = sld [smem:[#allocation3 + $0x4]] }
 0x18b   :  { %v3048_v56 = vpop.permute.xlu0 %515  ;;  %v3050_v5 = vpop.permute.xlu2 %555  ;;  %4621 = vst [vmem:[#allocation82_spill] sm:$0xff] %v3097_v27  ;;  %v900_v44 = vmul.f32 %v3097_v27, %v2647_v30 }
 0x18c   :  { %4610 = vst [vmem:[#allocation71_spill] sm:$0xff] %v3048_v56  ;;  %v3052_v43 = vpop.permute.xlu1 %490 }
 0x18d   :  { %4611 = vst [vmem:[#allocation72_spill] sm:$0xff] %v3050_v5 }
 0x18e   :  { %4612 = vst [vmem:[#allocation73_spill] sm:$0xff] %v3052_v43 }
 0x191   :  { %845 = vrot.lane.b32.xlu0 %v838_v35, %s2576_s16  ;;  %822 = vrot.lane.b32.xlu2 %v816_v9, %s2575_s14 }
 0x192   :  { %805 = vrot.lane.b32.xlu1 %v797_v47, %s2574_s12 }
 0x193   :  { %v3065_v59 = vpop.permute.xlu0 %536  ;;  %v3067_v49 = vpop.permute.xlu2 %572 }
 0x194   :  { %4614 = vst [vmem:[#allocation75_spill] sm:$0xff] %v3065_v59  ;;  %v3069_v62 = vpop.permute.xlu1 %511 }
 0x195   :  { %4615 = vst [vmem:[#allocation76_spill] sm:$0xff] %v3067_v49 }
 0x196   :  { %4616 = vst [vmem:[#allocation77_spill] sm:$0xff] %v3069_v62 }
 0x199   :  { %862 = vrot.lane.b32.xlu0 %v859_v21, %s2579_s23  ;;  %843 = vrot.lane.b32.xlu2 %v837_v28, %s2576_s16  ;;  %v839_v21 = vmul.f32 %v3054_v39, %v2647_v30  ;;  %v878_v39 = vmul.f32 %v3083_v10, %v2644_v29 }
 0x19a   :  { %826 = vrot.lane.b32.xlu1 %v818_v63, %s2575_s14 }
 0x19b   :  { %v3077_v35 = vpop.permute.xlu0 %557  ;;  %v3079_v9 = vpop.permute.xlu2 %597 }
 0x19c   :  { %4617 = vst [vmem:[#allocation78_spill] sm:$0xff] %v3077_v35  ;;  %v3081_v47 = vpop.permute.xlu1 %532  ;;  %v3182_v35 = vstv %s2394_s2 }
 0x19d   :  { %4618 = vst [vmem:[#allocation79_spill] sm:$0xff] %v3081_v47  ;;  %v1022_v59 = vmul.f32 %v3182_v35, %v2638_v26  ;;  %v352_v47 = vsel %vm218_vm4, %v2937_v33, %v2958_v32 }
 0x19e   :  { %4628 = vst [vmem:[#allocation89_spill] sm:$0xff] %v3182_v35 }
 0x1a1   :  { %887 = vrot.lane.b32.xlu0 %v879_v12, %s2571_s6  ;;  %860 = vrot.lane.b32.xlu2 %v858_v53, %s2579_s23  ;;  %v877_v53 = vmul.f32 %v3083_v10, %v2638_v26  ;;  %v899_v10 = vmul.f32 %v3097_v27, %v2644_v29  ;;  %s2583_s23 = smov 126  }
 0x1a2   :  { %847 = vrot.lane.b32.xlu1 %v839_v21, %s2576_s16 }
 0x1a3   :  { %v3091_v63 = vpop.permute.xlu0 %593  ;;  %v3093_v28 = vpop.permute.xlu2 %618 }
 0x1a4   :  { %v3095_v51 = vpop.permute.xlu1 %553 }
 0x1a5   :  { %4620 = vst [vmem:[#allocation81_spill] sm:$0xff] %v3095_v51 }
 0x1a9   :  { %908 = vrot.lane.b32.xlu0 %v900_v44, %s2572_s8  ;;  %885 = vrot.lane.b32.xlu2 %v878_v39, %s2571_s6  ;;  %v898_v39 = vmul.f32 %v3097_v27, %v2638_v26  ;;  %v920_v27 = vmul.f32 %v3114_v0, %v2644_v29 }
 0x1aa   :  { %883 = vrot.lane.b32.xlu1 %v877_v53, %s2571_s6 }
 0x1ab   :  { %v3108_v12 = vpop.permute.xlu0 %614  ;;  %v3110_v21 = vpop.permute.xlu2 %639 }
 0x1ac   :  { %v3112_v61 = vpop.permute.xlu1 %570 }
 0x1ad   :  { %4622 = vst [vmem:[#allocation83_spill] sm:$0xff] %v3112_v61  ;;  %v1024_v61 = vmul.f32 %v3182_v35, %v2647_v30 }
 0x1b1   :  { %929 = vrot.lane.b32.xlu0 %v921_v31, %s2573_s10  ;;  %906 = vrot.lane.b32.xlu2 %v899_v10, %s2572_s8  ;;  %v919_v31 = vmul.f32 %v3114_v0, %v2638_v26  ;;  %v941_v0 = vmul.f32 %v3131_v52, %v2644_v29 }
 0x1b2   :  { %904 = vrot.lane.b32.xlu1 %v898_v39, %s2572_s8 }
 0x1b3   :  { %v3125_v44 = vpop.permute.xlu0 %635  ;;  %v3127_v53 = vpop.permute.xlu2 %660 }
 0x1b4   :  { %v3129_v34 = vpop.permute.xlu1 %595 }
 0x1b9   :  { %950 = vrot.lane.b32.xlu0 %v942_v25, %s2574_s12  ;;  %927 = vrot.lane.b32.xlu2 %v920_v27, %s2573_s10  ;;  %v940_v25 = vmul.f32 %v3131_v52, %v2638_v26  ;;  %v962_v52 = vmul.f32 %v3148_v54, %v2644_v29 }
 0x1ba   :  { %925 = vrot.lane.b32.xlu1 %v919_v31, %s2573_s10 }
 0x1bb   :  { %v3142_v10 = vpop.permute.xlu0 %656  ;;  %v3144_v39 = vpop.permute.xlu2 %681 }
 0x1bc   :  { %v3146_v42 = vpop.permute.xlu1 %616 }
 0x1c1   :  { %971 = vrot.lane.b32.xlu0 %v963_v18, %s2575_s14  ;;  %948 = vrot.lane.b32.xlu2 %v941_v0, %s2574_s12  ;;  %v961_v18 = vmul.f32 %v3148_v54, %v2638_v26  ;;  %v983_v54 = vmul.f32 %v3165_v36, %v2644_v29 }
 0x1c2   :  { %946 = vrot.lane.b32.xlu1 %v940_v25, %s2574_s12 }
 0x1c3   :  { %v3159_v27 = vpop.permute.xlu0 %677  ;;  %v3161_v31 = vpop.permute.xlu2 %702 }
 0x1c4   :  { %v3163_v24 = vpop.permute.xlu1 %637 }
 0x1c9   :  { %992 = vrot.lane.b32.xlu0 %v984_v45, %s2576_s16  ;;  %969 = vrot.lane.b32.xlu2 %v962_v52, %s2575_s14  ;;  %v982_v45 = vmul.f32 %v3165_v36, %v2638_v26  ;;  %v122_v52 = vld [vmem:[#allocation7 + $0x5] ss:$8 sm:$0x3]  ;;  %v1043_v36 = vmul.f32 %v3199_v17, %v2638_v26 }
 0x1ca   :  { %967 = vrot.lane.b32.xlu1 %v961_v18, %s2575_s14  ;;  %v1004_v19 = vperm.slane %v122_v52, 1  ;;  %v1003_v8 = vperm.slane %v122_v52, 0 }
 0x1cb   :  { %v3176_v0 = vpop.permute.xlu0 %698  ;;  %v3178_v25 = vpop.permute.xlu2 %738 }
 0x1cc   :  { %4627 = vst [vmem:[#allocation88_spill] sm:$0xff] %v3178_v25  ;;  %v3180_v49 = vpop.permute.xlu1 %658 }
 0x1d1   :  { %1028 = vrot.lane.b32.xlu0 %v1022_v59, %s2571_s6  ;;  %990 = vrot.lane.b32.xlu2 %v983_v54, %s2576_s16 }
 0x1d2   :  { %988 = vrot.lane.b32.xlu1 %v982_v45, %s2576_s16 }
 0x1d3   :  { %v3193_v18 = vpop.permute.xlu0 %715  ;;  %v3195_v25 = vpop.permute.xlu2 %759 }
 0x1d4   :  { %4629 = vst [vmem:[#allocation90_spill] sm:$0xff] %v3195_v25  ;;  %v3197_v56 = vpop.permute.xlu1 %679  ;;  %v3210_v25 = vstv %s2408_s5 }
 0x1d5   :  { %4633 = vst [vmem:[#allocation94_spill] sm:$0xff] %v3210_v25  ;;  %v1064_v52 = vmul.f32 %v3210_v25, %v2638_v26 }
 0x1d9   :  { %1049 = vrot.lane.b32.xlu0 %v1043_v36, %s2572_s8  ;;  %1007 = vrot.lane.b32.xlu2 %v1004_v19, %s2580_s7  ;;  %v1023_v36 = vmul.f32 %v3182_v35, %v2644_v29  ;;  %v1045_v35 = vmul.f32 %v3199_v17, %v2647_v30 }
 0x1da   :  { %1005 = vrot.lane.b32.xlu1 %v1003_v8, %s2580_s7 }
 0x1db   :  { %v3204_v54 = vpop.permute.xlu0 %740  ;;  %v3206_v59 = vpop.permute.xlu2 %780 }
 0x1dc   :  { %4631 = vst [vmem:[#allocation92_spill] sm:$0xff] %v3204_v54  ;;  %v3208_v45 = vpop.permute.xlu1 %700  ;;  %v3227_v54 = vstv %s2415_s9 }
 0x1dd   :  { %4632 = vst [vmem:[#allocation93_spill] sm:$0xff] %v3206_v59  ;;  %v1085_v51 = vmul.f32 %v3227_v54, %v2638_v26 }
 0x1de   :  { %4636 = vst [vmem:[#allocation97_spill] sm:$0xff] %v3227_v54 }
 0x1e1   :  { %1070 = vrot.lane.b32.xlu0 %v1064_v52, %s2573_s10  ;;  %1032 = vrot.lane.b32.xlu2 %v1024_v61, %s2571_s6  ;;  %v1044_v61 = vmul.f32 %v3199_v17, %v2644_v29 }
 0x1e2   :  { %1030 = vrot.lane.b32.xlu1 %v1023_v36, %s2571_s6 }
 0x1e3   :  { %v3221_v8 = vpop.permute.xlu0 %761  ;;  %v3223_v19 = vpop.permute.xlu2 %801 }
 0x1e4   :  { %4634 = vst [vmem:[#allocation95_spill] sm:$0xff] %v3221_v8  ;;  %v3225_v59 = vpop.permute.xlu1 %717  ;;  %v3244_v8 = vstv %s2422_s11 }
 0x1e5   :  { %4635 = vst [vmem:[#allocation96_spill] sm:$0xff] %v3223_v19  ;;  %v1106_v5 = vmul.f32 %v3244_v8, %v2638_v26 }
 0x1e6   :  { %4640 = vst [vmem:[#allocation101_spill] sm:$0xff] %v3244_v8 }
 0x1e9   :  { %1091 = vrot.lane.b32.xlu0 %v1085_v51, %s2574_s12  ;;  %1053 = vrot.lane.b32.xlu2 %v1045_v35, %s2572_s8  ;;  %v1066_v51 = vmul.f32 %v3210_v25, %v2647_v30  ;;  %v1065_v35 = vmul.f32 %v3210_v25, %v2644_v29  ;;  %v310_v25 = vsel %vm178_vm2, %v2903_v41, %v2924_v7 }
 0x1ea   :  { %1051 = vrot.lane.b32.xlu1 %v1044_v61, %s2572_s8 }
 0x1eb   :  { %v3238_v52 = vpop.permute.xlu0 %782  ;;  %v3240_v36 = vpop.permute.xlu2 %822 }
 0x1ec   :  { %4637 = vst [vmem:[#allocation98_spill] sm:$0xff] %v3238_v52  ;;  %v3242_v19 = vpop.permute.xlu1 %742  ;;  %v3261_v52 = vstv %s2429_s13 }
 0x1ed   :  { %4638 = vst [vmem:[#allocation99_spill] sm:$0xff] %v3240_v36 }
 0x1ee   :  { %4639 = vst [vmem:[#allocation100_spill] sm:$0xff] %v3242_v19  ;;  %v3263_v19 = vstv %s2382_s15 }
 0x1f1   :  { %1112 = vrot.lane.b32.xlu0 %v1106_v5, %s2575_s14  ;;  %1074 = vrot.lane.b32.xlu2 %v1066_v51, %s2573_s10  ;;  %v294_v5 = vmul.f32 %v3263_v19, %v2644_v29  ;;  %v1127_v51 = vmul.f32 %v3261_v52, %v2638_v26 }
 0x1f2   :  { %1072 = vrot.lane.b32.xlu1 %v1065_v35, %s2573_s10  ;;  %v1087_v35 = vmul.f32 %v3227_v54, %v2647_v30 }
 0x1f3   :  { %v3255_v61 = vpop.permute.xlu0 %803  ;;  %v3257_v17 = vpop.permute.xlu2 %843 }
 0x1f4   :  { %4641 = vst [vmem:[#allocation102_spill] sm:$0xff] %v3255_v61  ;;  %v3259_v36 = vpop.permute.xlu1 %763  ;;  %v1086_v61 = vmul.f32 %v3227_v54, %v2644_v29  ;;  %v293_v54 = vmul.f32 %v3263_v19, %v2638_v26 }
 0x1f5   :  { %4642 = vst [vmem:[#allocation103_spill] sm:$0xff] %v3257_v17  ;;  %v331_v17 = vsel %vm198_vm3, %v2920_v3, %v2941_v40 }
 0x1f6   :  { %4643 = vst [vmem:[#allocation104_spill] sm:$0xff] %v3259_v36  ;;  %v315_v36 = vadd.f32 %v310_v25, %v294_v5  ;;  %v373_v25 = vsel %vm238_vm5, %v2954_v20, %v2970_v16 }
 0x1f8   :  { %v336_v62 = vadd.f32 %v331_v17, %v315_v36  ;;  %v394_v17 = vsel %vm258_vm6, %v2966_v58, %v2987_v37  ;;  %v3303_v36 = vstv %s2384_s17 }
 0x1f9   :  { %1133 = vrot.lane.b32.xlu0 %v1127_v51, %s2576_s16  ;;  %1095 = vrot.lane.b32.xlu2 %v1087_v35, %s2574_s12  ;;  %v1148_v35 = vperm.slane %v3285_v14, 0 }
 0x1fa   :  { %1093 = vrot.lane.b32.xlu1 %v1086_v61, %s2574_s12  ;;  %v357_v51 = vadd.f32 %v352_v47, %v336_v62  ;;  %v309_v61 = vsel %vm178_vm2, %v2877_v11, %v2903_v41  ;;  %v1108_v62 = vmul.f32 %v3244_v8, %v2647_v30  ;;  %v330_v47 = vsel %vm198_vm3, %v2888_v22, %v2920_v3 }
 0x1fb   :  { %v3287_v46 = vpop.permute.xlu0 %824  ;;  %v3289_v43 = vpop.permute.xlu2 %860  ;;  %v415_v11 = vsel %vm278_vm7, %v2983_v15, %v3001_v57  ;;  %v600_v41 = vsel %vm178_vm2, %v3129_v34, %v3079_v9  ;;  %v351_v22 = vsel %vm218_vm4, %v2905_v48, %v2937_v33  ;;  %v621_v3 = vsel %vm198_vm3, %v3146_v42, %v3093_v28 }
 0x1fc   :  { %4644 = vst [vmem:[#allocation105_spill] sm:$0xff] %v3287_v46  ;;  %v3294_v5 = vpop.permute.xlu1 %784  ;;  %v1107_v46 = vmul.f32 %v3244_v8, %v2644_v29  ;;  %v642_v48 = vsel %vm218_vm4, %v3163_v24, %v3110_v21 }
 0x1fd   :  { %4645 = vst [vmem:[#allocation106_spill] sm:$0xff] %v3289_v43  ;;  %v378_v43 = vadd.f32 %v373_v25, %v357_v51  ;;  %v584_v51 = vmul.f32 %v3303_v36, %v2644_v29 }
 0x1fe   :  { %4646 = vst [vmem:[#allocation107_spill] sm:$0xff] %v3294_v5  ;;  %v314_v5 = vadd.f32 %v309_v61, %v293_v54 }
 0x1ff   :  { %v399_v25 = vadd.f32 %v394_v17, %v378_v43  ;;  %v605_v61 = vadd.f32 %v600_v41, %v584_v51  ;;  %v663_v41 = vsel %vm238_vm5, %v3180_v49, %v3127_v53 }
 0x200   :  { %v335_v43 = vadd.f32 %v330_v47, %v314_v5  ;;  %v3347_v47 = vsel %vm429_vm8, %v2770_v13, %v2633_v23  ;;  %vm4552_vm8 = vcmask 1014784  }
 0x201   :  { %1150 = vrot.lane.b32.xlu0 %v1148_v35, %s2581_s18  ;;  %1116 = vrot.lane.b32.xlu2 %v1108_v62, %s2575_s14  ;;  %v420_v54 = vadd.f32 %v415_v11, %v399_v25  ;;  %v372_v35 = vsel %vm238_vm5, %v2922_v6, %v2954_v20  ;;  %v626_v62 = vadd.f32 %v621_v3, %v605_v61 }
 0x202   :  { %1114 = vrot.lane.b32.xlu1 %v1107_v46, %s2575_s14  ;;  %v295_v46 = vmul.f32 %v3263_v19, %v2647_v30  ;;  %v356_v5 = vadd.f32 %v351_v22, %v335_v43  ;;  %4647 = vst [vmem:[#allocation108_spill] sm:$0xff] %v3347_v47  ;;  %v393_v11 = vsel %vm258_vm6, %v2939_v38, %v2966_v58 }
 0x203   :  { %v3331_v17 = vpop.permute.xlu0 %845  ;;  %v3333_v8 = vpop.permute.xlu2 %885  ;;  %v583_v6 = vmul.f32 %v3303_v36, %v2638_v26  ;;  %v599_v20 = vsel %vm178_vm2, %v3091_v63, %v3129_v34  ;;  %v647_v51 = vadd.f32 %v642_v48, %v626_v62  ;;  %v1129_v22 = vmul.f32 %v3261_v52, %v2647_v30 }
 0x204   :  { %v3341_v33 = vpop.permute.xlu1 %805  ;;  %v377_v25 = vadd.f32 %v372_v35, %v356_v5  ;;  %v435_v3 = vmul.f32 %v3347_v47, %v420_v54  ;;  %v414_v38 = vsel %vm278_vm7, %v2956_v4, %v2983_v15  ;;  %v620_v58 = vsel %vm198_vm3, %v3108_v12, %v3146_v42 }
 0x205   :  { %v684_v34 = vsel %vm258_vm6, %v3197_v56, %v3144_v39  ;;  %v1128_v63 = vmul.f32 %v3261_v52, %v2644_v29  ;;  %v604_v61 = vadd.f32 %v599_v20, %v583_v6  ;;  %v668_v35 = vadd.f32 %v663_v41, %v647_v51 }
 0x206   :  { %v398_v43 = vadd.f32 %v393_v11, %v377_v25  ;;  %v316_v4 = vadd.f32 %v2924_v7, %v295_v46  ;;  %v641_v42 = vsel %vm218_vm4, %v3125_v44, %v3163_v24  ;;  %v705_v15 = vsel %vm278_vm7, %v3208_v45, %v3161_v31 }
 0x207   :  { %v625_v54 = vadd.f32 %v620_v58, %v604_v61  ;;  %v689_v48 = vadd.f32 %v684_v34, %v668_v35  ;;  %v662_v7 = vsel %vm238_vm5, %v3142_v10, %v3180_v49  ;;  %v3396_v44 = vsel %vm719_vm9, %v3193_v18, %v3225_v59 }
 0x208   :  { %v419_v12 = vadd.f32 %v414_v38, %v398_v43  ;;  %v337_v11 = vadd.f32 %v2941_v40, %v316_v4  ;;  %v683_v41 = vsel %vm258_vm6, %v3159_v27, %v3197_v56  ;;  %v1149_v40 = vperm.slane %v3285_v14, 1 }
 0x209   :  { %1137 = vrot.lane.b32.xlu2 %v1129_v22, %s2576_s16  ;;  %1167 = vrot.lane.b32.xlu0 %v435_v3, %s2582_s19  ;;  %v646_v46 = vadd.f32 %v641_v42, %v625_v54  ;;  %v710_v6 = vadd.f32 %v705_v15, %v689_v48  ;;  %v704_v22 = vsel %vm278_vm7, %v3176_v0, %v3208_v45  ;;  %v3430_v48 = vstv %s2386_s20 }
 0x20a   :  { %1135 = vrot.lane.b32.xlu1 %v1128_v63, %s2576_s16  ;;  %v358_v20 = vadd.f32 %v2958_v32, %v337_v11  ;;  %v434_v49 = vmul.f32 %v2770_v13, %v419_v12  ;;  %v585_v14 = vmul.f32 %v3303_v36, %v2647_v30  ;;  %v875_v11 = vmul.f32 %v3430_v48, %v2647_v30 }
 0x20b   :  { %v3384_v5 = vpop.permute.xlu0 %862  ;;  %v3386_v62 = vpop.permute.xlu2 %906  ;;  %v667_v25 = vadd.f32 %v662_v7, %v646_v46  ;;  %v725_v51 = vmul.f32 %v3396_v44, %v710_v6 }
 0x20c   :  { %v3392_v24 = vpop.permute.xlu1 %826  ;;  %v379_v10 = vadd.f32 %v2970_v16, %v358_v20  ;;  %v606_v58 = vadd.f32 %v3079_v9, %v585_v14  ;;  %v873_v14 = vmul.f32 %v3430_v48, %v2638_v26 }
 0x20d   :  { %v688_v3 = vadd.f32 %v683_v41, %v667_v25 }
 0x20e   :  { %v400_v32 = vadd.f32 %v2987_v37, %v379_v10  ;;  %v627_v45 = vadd.f32 %v3093_v28, %v606_v58 }
 0x20f   :  { %v709_v56 = vadd.f32 %v704_v22, %v688_v3 }
 0x210   :  { %v421_v16 = vadd.f32 %v3001_v57, %v400_v32  ;;  %v648_v37 = vadd.f32 %v3110_v21, %v627_v45 }
 0x211   :  { %1183 = vrot.lane.b32.xlu0 %v725_v51, %s2582_s19  ;;  %1165 = vrot.lane.b32.xlu2 %v434_v49, %s2582_s19  ;;  %v724_v34 = vmul.f32 %v3193_v18, %v709_v56  ;;  %v874_v56 = vmul.f32 %v3430_v48, %v2644_v29 }
 0x212   :  { %1152 = vrot.lane.b32.xlu1 %v1149_v40, %s2581_s18  ;;  %v436_v63 = vmul.f32 %v2633_v23, %v421_v16  ;;  %v669_v43 = vadd.f32 %v3127_v53, %v648_v37 }
 0x213   :  { %v888_v27 = vpop.permute.xlu0 %887  ;;  %v928_v38 = vpop.permute.xlu2 %927 }
 0x214   :  { %v3417_v0 = vpop.permute.xlu1 %847  ;;  %v690_v9 = vadd.f32 %v3144_v39, %v669_v43  ;;  %v896_v39 = vadd.f32 %v888_v27, %v875_v11  ;;  %v890_v32 = vsel %vm178_vm2, %v3333_v8, %v888_v27 }
 0x216   :  { %v711_v4 = vadd.f32 %v3161_v31, %v690_v9 }
 0x218   :  { %v726_v28 = vmul.f32 %v3225_v59, %v711_v4 }
 0x219   :  { %1181 = vrot.lane.b32.xlu2 %v724_v34, %s2582_s19  ;;  %v895_v34 = vadd.f32 %v890_v32, %v874_v56 }
 0x21a   :  { %1169 = vrot.lane.b32.xlu1 %v436_v63, %s2582_s19 }
 0x21b   :  { %v909_v61 = vpop.permute.xlu0 %908  ;;  %v949_v57 = vpop.permute.xlu2 %948 }
 0x21c   :  { %v884_v35 = vpop.permute.xlu1 %883  ;;  %v917_v31 = vadd.f32 %v909_v61, %v896_v39  ;;  %v911_v58 = vsel %vm198_vm3, %v3386_v62, %v909_v61 }
 0x21d   :  { %v889_v22 = vsel %vm178_vm2, %v884_v35, %v3333_v8  ;;  %v916_v43 = vadd.f32 %v911_v58, %v895_v34  ;;  %v3488_v34 = vstv %s2383_s21 }
 0x21e   :  { %v894_v45 = vadd.f32 %v889_v22, %v873_v14 }
 0x222   :  { %1185 = vrot.lane.b32.xlu1 %v726_v28, %s2582_s19 }
 0x223   :  { %v930_v21 = vpop.permute.xlu0 %929  ;;  %v970_v42 = vpop.permute.xlu2 %969 }
 0x224   :  { %v905_v15 = vpop.permute.xlu1 %904  ;;  %v938_v20 = vadd.f32 %v930_v21, %v917_v31  ;;  %v932_v8 = vsel %vm218_vm4, %v928_v38, %v930_v21 }
 0x225   :  { %v910_v16 = vsel %vm198_vm3, %v905_v15, %v3386_v62  ;;  %v937_v15 = vadd.f32 %v932_v8, %v916_v43  ;;  %v454_v8 = vsel %vm178_vm2, %v3018_v1, %v2968_v60  ;;  %v438_v43 = vmul.f32 %v3488_v34, %v2638_v26 }
 0x226   :  { %v915_v27 = vadd.f32 %v910_v16, %v894_v45 }
 0x22b   :  { %v951_v12 = vpop.permute.xlu0 %950  ;;  %v991_v54 = vpop.permute.xlu2 %990 }
 0x22c   :  { %v926_v53 = vpop.permute.xlu1 %925  ;;  %v959_v41 = vadd.f32 %v951_v12, %v938_v20  ;;  %v953_v4 = vsel %vm238_vm5, %v949_v57, %v951_v12 }
 0x22d   :  { %v931_v37 = vsel %vm218_vm4, %v926_v53, %v928_v38  ;;  %v958_v53 = vadd.f32 %v953_v4, %v937_v15  ;;  %v4648_v4 = vld [vmem:[#allocation73_spill] sm:$0xff] }
 0x22e   :  { %v936_v28 = vadd.f32 %v931_v37, %v915_v27 }
 0x233   :  { %v972_v7 = vpop.permute.xlu0 %971  ;;  %v3434_v46 = vpop.permute.xlu2 %1007 }
 0x234   :  { %v947_v6 = vpop.permute.xlu1 %946  ;;  %v980_v40 = vadd.f32 %v972_v7, %v959_v41  ;;  %v974_v62 = vsel %vm258_vm6, %v970_v42, %v972_v7 }
 0x235   :  { %v952_v9 = vsel %vm238_vm5, %v947_v6, %v949_v57  ;;  %v979_v20 = vadd.f32 %v974_v62, %v958_v53  ;;  %v4649_v62 = vld [vmem:[#allocation66_spill] sm:$0xff]  ;;  %v3510_v53 = vstv %s2387_s22 }
 0x236   :  { %v957_v61 = vadd.f32 %v952_v9, %v936_v28  ;;  %v475_v9 = vsel %vm198_vm3, %v3035_v55, %v2985_v50  ;;  %v496_v28 = vsel %vm218_vm4, %v4648_v4, %v2999_v2 }
 0x23b   :  { %v993_v25 = vpop.permute.xlu0 %992  ;;  %v3436_v10 = vpop.permute.xlu2 %1032 }
 0x23c   :  { %v1001_v51 = vadd.f32 %v993_v25, %v980_v40  ;;  %v968_v49 = vpop.permute.xlu1 %967  ;;  %v995_v21 = vsel %vm278_vm7, %v991_v54, %v993_v25 }
 0x23d   :  { %v973_v11 = vsel %vm258_vm6, %v968_v49, %v970_v42  ;;  %v1000_v57 = vadd.f32 %v995_v21, %v979_v20  ;;  %v4652_v20 = vld [vmem:[#allocation79_spill] sm:$0xff] }
 0x23e   :  { %v1016_v3 = vmul.f32 %v3434_v46, %v1001_v51  ;;  %v978_v31 = vadd.f32 %v973_v11, %v957_v61  ;;  %v4650_v61 = vld [vmem:[#allocation77_spill] sm:$0xff] }
 0x23f   :  { %v517_v1 = vsel %vm238_vm5, %v4650_v61, %v4649_v62 }
 0x240   :  { %1202 = vrot.lane.b32.xlu1 %v1016_v3, %s2582_s19 }
 0x243   :  { %v1029_v63 = vpop.permute.xlu0 %1028  ;;  %v3458_v39 = vpop.permute.xlu2 %1053 }
 0x244   :  { %v989_v35 = vpop.permute.xlu1 %988 }
 0x245   :  { %v994_v38 = vsel %vm278_vm7, %v989_v35, %v991_v54  ;;  %v459_v35 = vadd.f32 %v454_v8, %v438_v43  ;;  %v4653_v8 = vld [vmem:[#allocation72_spill] sm:$0xff]  ;;  %v4654_v43 = vld [vmem:[#allocation81_spill] sm:$0xff] }
 0x246   :  { %v999_v6 = vadd.f32 %v994_v38, %v978_v31  ;;  %v4651_v31 = vld [vmem:[#allocation69_spill] sm:$0xff] }
 0x247   :  { %v480_v15 = vadd.f32 %v475_v9, %v459_v35  ;;  %v538_v55 = vsel %vm258_vm6, %v4652_v20, %v4651_v31  ;;  %v559_v9 = vsel %vm278_vm7, %v4654_v43, %v4653_v8  ;;  %v4655_v20 = vld [vmem:[#allocation83_spill] sm:$0xff] }
 0x249   :  { %v501_v38 = vadd.f32 %v496_v28, %v480_v15 }
 0x24b   :  { %v1050_v41 = vpop.permute.xlu0 %1049  ;;  %v3472_v54 = vpop.permute.xlu2 %1074 }
 0x24c   :  { %v3462_v12 = vpop.permute.xlu1 %1005 }
 0x24d   :  { %v3466_v40 = vsel %vm1009_vm10, %v3462_v12, %v3434_v46  ;;  %v1014_v42 = vmul.f32 %v3462_v12, %v999_v6 }
 0x24e   :  { %v1015_v7 = vmul.f32 %v3466_v40, %v1000_v57 }
 0x24f   :  { %1198 = vrot.lane.b32.xlu2 %v1014_v42, %s2582_s19  ;;  %v522_v42 = vadd.f32 %v517_v1, %v501_v38  ;;  %v440_v38 = vmul.f32 %v3488_v34, %v2647_v30 }
 0x250   :  { %1200 = vrot.lane.b32.xlu0 %v1015_v7, %s2582_s19  ;;  %v1018_v7 = vmul.f32 %v3510_v53, %v2638_v26 }
 0x251   :  { %v543_v4 = vadd.f32 %v538_v55, %v522_v42 }
 0x253   :  { %v1071_v25 = vpop.permute.xlu0 %1070  ;;  %v3476_v49 = vpop.permute.xlu2 %1095  ;;  %v564_v61 = vadd.f32 %v559_v9, %v543_v4 }
 0x254   :  { %v3474_v51 = vpop.permute.xlu1 %1030 }
 0x255   :  { %v1034_v6 = vsel %vm178_vm2, %v1029_v63, %v3474_v51  ;;  %v579_v47 = vmul.f32 %v4655_v20, %v564_v61 }
 0x256   :  { %v1039_v28 = vadd.f32 %v1034_v6, %v1018_v7  ;;  %v4656_v6 = vld [vmem:[#allocation63_spill] sm:$0xff] }
 0x257   :  { %v461_v42 = vadd.f32 %v4656_v6, %v440_v38 }
 0x25b   :  { %v1092_v22 = vpop.permute.xlu0 %1091  ;;  %v3482_v56 = vpop.permute.xlu2 %1116 }
 0x25c   :  { %v3478_v3 = vpop.permute.xlu1 %1051 }
 0x25d   :  { %v1055_v35 = vsel %vm198_vm3, %v1050_v41, %v3478_v3 }
 0x25e   :  { %v1060_v63 = vadd.f32 %v1055_v35, %v1039_v28  ;;  %v439_v35 = vmul.f32 %v3488_v34, %v2644_v29  ;;  %v4657_v28 = vld [vmem:[#allocation65_spill] sm:$0xff] }
 0x263   :  { %v1113_v32 = vpop.permute.xlu0 %1112  ;;  %v3486_v45 = vpop.permute.xlu2 %1137 }
 0x264   :  { %v3480_v14 = vpop.permute.xlu1 %1072 }
 0x265   :  { %v1076_v15 = vsel %vm218_vm4, %v1071_v25, %v3480_v14 }
 0x266   :  { %v1081_v13 = vadd.f32 %v1076_v15, %v1060_v63  ;;  %v482_v15 = vadd.f32 %v4657_v28, %v461_v42  ;;  %v4658_v63 = vld [vmem:[#allocation68_spill] sm:$0xff] }
 0x26b   :  { %v1134_v16 = vpop.permute.xlu0 %1133  ;;  %v3505_v11 = vpop.permute.xlu2 %1165 }
 0x26c   :  { %v3484_v58 = vpop.permute.xlu1 %1093 }
 0x26d   :  { %v1097_v1 = vsel %vm238_vm5, %v1092_v22, %v3484_v58  ;;  %v455_v22 = vsel %vm178_vm2, %v2968_v60, %v4656_v6  ;;  %v4660_v6 = vld [vmem:[#allocation75_spill] sm:$0xff] }
 0x26e   :  { %v1102_v7 = vadd.f32 %v1097_v1, %v1081_v13  ;;  %v460_v60 = vadd.f32 %v455_v22, %v439_v35  ;;  %v497_v13 = vsel %vm218_vm4, %v2999_v2, %v4658_v63  ;;  %v539_v22 = vsel %vm258_vm6, %v4651_v31, %v4660_v6 }
 0x273   :  { %v3490_v37 = vpop.permute.xlu0 %1150  ;;  %v1182_v43 = vpop.permute.xlu2 %1181 }
 0x274   :  { %v3495_v27 = vpop.permute.xlu1 %1114 }
 0x275   :  { %v1118_v41 = vsel %vm258_vm6, %v1113_v32, %v3495_v27  ;;  %v476_v32 = vsel %vm198_vm3, %v2985_v50, %v4657_v28  ;;  %v1035_v28 = vsel %vm178_vm2, %v3474_v51, %v3436_v10 }
 0x276   :  { %v1123_v61 = vadd.f32 %v1118_v41, %v1102_v7  ;;  %v481_v38 = vadd.f32 %v476_v32, %v460_v60  ;;  %v1019_v32 = vmul.f32 %v3510_v53, %v2644_v29  ;;  %v1056_v60 = vsel %vm198_vm3, %v3478_v3, %v3458_v39 }
 0x277   :  { %v1098_v3 = vsel %vm238_vm5, %v3484_v58, %v3476_v49 }
 0x27b   :  { %v3512_v21 = vpop.permute.xlu0 %1167 }
 0x27c   :  { %v3519_v57 = vpop.permute.xlu1 %1135 }
 0x27d   :  { %v1139_v4 = vsel %vm278_vm7, %v1134_v16, %v3519_v57  ;;  %v4659_v16 = vld [vmem:[#allocation71_spill] sm:$0xff] }
 0x27e   :  { %v1144_v1 = vadd.f32 %v1139_v4, %v1123_v61  ;;  %v1020_v4 = vmul.f32 %v3510_v53, %v2647_v30 }
 0x280   :  { %v1159_v2 = vmul.f32 %v3490_v37, %v1144_v1 }
 0x283   :  { %v1184_v23 = vpop.permute.xlu0 %1183 }
 0x284   :  { %v3537_v55 = vpop.permute.xlu1 %1152  ;;  %v1187_v25 = vsel %vm1171_vm11, %v1182_v43, %v1184_v23  ;;  %v518_v43 = vsel %vm238_vm5, %v4649_v62, %v4659_v16 }
 0x285   :  { %v1192_v9 = vadd.f32 %v1187_v25, %v579_v47  ;;  %v503_v47 = vadd.f32 %v4658_v63, %v482_v15  ;;  %v502_v25 = vadd.f32 %v497_v13, %v481_v38  ;;  %v4662_v15 = vld [vmem:[#allocation76_spill] sm:$0xff]  ;;  %v1040_v13 = vadd.f32 %v1035_v28, %v1019_v32 }
 0x286   :  { %v3582_v61 = vsel %vm574_vm12, %v4655_v20, %v4662_v15 }
 0x287   :  { %1215 = vrot.lane.b32.xlu2 %v1192_v9, %s2583_s23  ;;  %v524_v50 = vadd.f32 %v4659_v16, %v503_v47  ;;  %v523_v7 = vadd.f32 %v518_v43, %v502_v25  ;;  %v4661_v9 = vld [vmem:[#allocation78_spill] sm:$0xff]  ;;  %v1077_v47 = vsel %vm218_vm4, %v3480_v14, %v3472_v54  ;;  %v1061_v38 = vadd.f32 %v1056_v60, %v1040_v13 }
 0x288   :  { %v560_v35 = vsel %vm278_vm7, %v4653_v8, %v4661_v9  ;;  %v1041_v8 = vadd.f32 %v3436_v10, %v1020_v4  ;;  %v1119_v14 = vsel %vm258_vm6, %v3495_v27, %v3482_v56  ;;  %v4664_v4 = vld [vmem:[#allocation88_spill] sm:$0xff] }
 0x289   :  { %v545_v42 = vadd.f32 %v4660_v6, %v524_v50  ;;  %v544_v31 = vadd.f32 %v539_v22, %v523_v7 }
 0x28a   :  { %v1062_v51 = vadd.f32 %v3458_v39, %v1041_v8  ;;  %v1082_v39 = vadd.f32 %v1077_v47, %v1061_v38  ;;  %v1315_v8 = vld.sshfl [vmem:[#allocation1] sm:$0xff pattern:$0x75316420]  ;;  %v4667_v47 = vld [vmem:[#allocation90_spill] sm:$0xff] }
 0x28b   :  { %v566_v62 = vadd.f32 %v4661_v9, %v545_v42  ;;  %v565_v63 = vadd.f32 %v560_v35, %v544_v31  ;;  %v4665_v31 = vld [vmem:[#allocation100_spill] sm:$0xff] }
 0x28c   :  { %v3561_v41 = vpop.permute.xlu1 %1169  ;;  %v1083_v10 = vadd.f32 %v3472_v54, %v1062_v51  ;;  %v1103_v42 = vadd.f32 %v1098_v3, %v1082_v39  ;;  %v4666_v51 = vld [vmem:[#allocation95_spill] sm:$0xff]  ;;  %v4668_v38 = vld [vmem:[#allocation104_spill] sm:$0xff]  ;;  %v4669_v39 = vld [vmem:[#allocation98_spill] sm:$0xff] }
 0x28d   :  { %v581_v1 = vmul.f32 %v4662_v15, %v566_v62  ;;  %v580_v16 = vmul.f32 %v3582_v61, %v565_v63  ;;  %v4663_v62 = vld [vmem:[#allocation92_spill] sm:$0xff] }
 0x28e   :  { %v1104_v22 = vadd.f32 %v3476_v49, %v1083_v10  ;;  %v1124_v58 = vadd.f32 %v1119_v14, %v1103_v42  ;;  %v3612_v49 = vsel %vm1154_vm13, %v3490_v37, %v3537_v55  ;;  %v744_v28 = vsel %vm178_vm2, %v4664_v4, %v4663_v62  ;;  %v4671_v14 = vld [vmem:[#allocation107_spill] sm:$0xff] }
 0x28f   :  { %1231 = vrot.lane.b32.xlu2 %v1159_v2, %s2583_s23  ;;  %v745_v32 = vsel %vm178_vm2, %v4663_v62, %v4665_v31  ;;  %v787_v42 = vsel %vm218_vm4, %v4669_v39, %v4671_v14 }
 0x290   :  { %v1125_v54 = vadd.f32 %v3482_v56, %v1104_v22  ;;  %v3618_v56 = vstv %s2385_s24 }
 0x291   :  { %v728_v35 = vmul.f32 %v3618_v56, %v2638_v26  ;;  %v729_v60 = vmul.f32 %v3618_v56, %v2644_v29 }
 0x292   :  { %v1146_v2 = vadd.f32 %v3486_v45, %v1125_v54 }
 0x293   :  { %v749_v10 = vadd.f32 %v744_v28, %v728_v35  ;;  %v750_v3 = vadd.f32 %v745_v32, %v729_v60  ;;  %v4675_v32 = vld [vmem:[#allocation99_spill] sm:$0xff] }
 0x294   :  { %v1186_v43 = vpop.permute.xlu1 %1185  ;;  %v1161_v7 = vmul.f32 %v3537_v55, %v1146_v2 }
 0x295   :  { %v1188_v50 = vsel %vm1171_vm11, %v1184_v23, %v1186_v43  ;;  %v1194_v25 = vadd.f32 %v1186_v43, %v581_v1  ;;  %v1140_v23 = vsel %vm278_vm7, %v3519_v57, %v3486_v45  ;;  %v1316_v57 = vld.sshfl [vmem:[#allocation1 + $0x8] sm:$0xff pattern:$0x75316420]  ;;  %v730_v45 = vmul.f32 %v3618_v56, %v2647_v30 }
 0x296   :  { %v1193_v6 = vadd.f32 %v1188_v50, %v580_v16  ;;  %v1145_v27 = vadd.f32 %v1140_v23, %v1124_v58  ;;  %v1326_v13 = vsel %vm132_vm0, %v1316_v57, 0.0  ;;  %v1319_v30 = vsel %vm132_vm0, %v1315_v8, 0.0  ;;  %v4673_v57 = vld [vmem:[#allocation96_spill] sm:$0xff] }
 0x297   :  { %1219 = vrot.lane.b32.xlu1 %v1194_v25, %s2583_s23  ;;  %v751_v63 = vadd.f32 %v4665_v31, %v730_v45  ;;  %v765_v1 = vsel %vm198_vm3, %v4667_v47, %v4666_v51  ;;  %v766_v16 = vsel %vm198_vm3, %v4666_v51, %v4668_v38  ;;  %v1327_v23 = vrot.slane %v1326_v13, 4  ;;  %v4674_v31 = vld [vmem:[#allocation105_spill] sm:$0xff] }
 0x298   :  { %1217 = vrot.lane.b32.xlu0 %v1193_v6, %s2583_s23  ;;  %v1160_v9 = vmul.f32 %v3612_v49, %v1145_v27  ;;  %v4670_v6 = vld [vmem:[#allocation93_spill] sm:$0xff]  ;;  %v1320_v58 = vrot.slane %v1319_v30, 4  ;;  %v770_v2 = vadd.f32 %v765_v1, %v749_v10  ;;  %v771_v27 = vadd.f32 %v766_v16, %v750_v3  ;;  %v4676_v16 = vld [vmem:[#allocation103_spill] sm:$0xff] }
 0x299   :  { %v772_v50 = vadd.f32 %v4668_v38, %v751_v63  ;;  %v786_v22 = vsel %vm218_vm4, %v4670_v6, %v4669_v39  ;;  %v828_v8 = vsel %vm258_vm6, %v4675_v32, %v4674_v31  ;;  %v829_v60 = vsel %vm258_vm6, %v4674_v31, %v3392_v24 }
 0x29a   :  { %v791_v62 = vadd.f32 %v786_v22, %v770_v2  ;;  %v792_v4 = vadd.f32 %v787_v42, %v771_v27  ;;  %v1328_v63 = vadd.f32 %v1327_v23, %v1326_v13  ;;  %v1321_v51 = vadd.f32 %v1320_v58, %v1319_v30  ;;  %v4677_v23 = vld [vmem:[#allocation106_spill] sm:$0xff] }
 0x29b   :  { %v849_v10 = vsel %vm278_vm7, %v4676_v16, %v3331_v17  ;;  %v3678_v58 = vsel %vm864_vm14, %v4677_v23, %v3384_v5 }
 0x29c   :  { %v1322_v22 = vrot.slane %v1321_v51, 2 }
 0x29f   :  { %1235 = vrot.lane.b32.xlu1 %v1161_v7, %s2583_s23  ;;  %v793_v7 = vadd.f32 %v4671_v14, %v772_v50 }
 0x2a0   :  { %1233 = vrot.lane.b32.xlu0 %v1160_v9, %s2583_s23  ;;  %v4672_v9 = vld [vmem:[#allocation102_spill] sm:$0xff] }
 0x2a1   :  { %v807_v45 = vsel %vm238_vm5, %v4673_v57, %v4672_v9  ;;  %v808_v35 = vsel %vm238_vm5, %v4672_v9, %v3341_v33  ;;  %v814_v28 = vadd.f32 %v3341_v33, %v793_v7  ;;  %v850_v33 = vsel %vm278_vm7, %v3331_v17, %v3417_v0 }
 0x2a2   :  { %v812_v47 = vadd.f32 %v807_v45, %v791_v62  ;;  %v813_v1 = vadd.f32 %v808_v35, %v792_v4 }
 0x2a3   :  { %v835_v38 = vadd.f32 %v3392_v24, %v814_v28  ;;  %v1329_v24 = vrot.slane %v1328_v63, 2 }
 0x2a4   :  { %v833_v50 = vadd.f32 %v828_v8, %v812_v47  ;;  %v834_v39 = vadd.f32 %v829_v60, %v813_v1 }
 0x2a5   :  { %v856_v13 = vadd.f32 %v3417_v0, %v835_v38  ;;  %v1330_v7 = vadd.f32 %v1329_v24, %v1328_v63  ;;  %v1323_v0 = vadd.f32 %v1322_v22, %v1321_v51  ;;  %v4680_v22 = vld [vmem:[#allocation18_spill] sm:$0xff] }
 0x2a6   :  { %v854_v14 = vadd.f32 %v849_v10, %v833_v50  ;;  %v855_v42 = vadd.f32 %v850_v33, %v834_v39  ;;  %v3692_v10 = vstv %s62_s26  ;;  %v4678_v39 = vld [vmem:[#allocation41_spill] sm:$0xff] }
 0x2a7   :  { %v871_v17 = vmul.f32 %v3384_v5, %v856_v13  ;;  %v1331_v8 = vrot.slane %v1330_v7, 1  ;;  %v1324_v60 = vrot.slane %v1323_v0, 1  ;;  %v4679_v13 = vld [vmem:[#allocation37_spill] sm:$0xff] }
 0x2a8   :  { %v869_v9 = vmul.f32 %v4677_v23, %v854_v14  ;;  %v870_v57 = vmul.f32 %v3678_v58, %v855_v42  ;;  %v179_v24 = vsel %vm178_vm2, %v4679_v13, %v4678_v39  ;;  %v163_v42 = vmul.f32 %v3692_v10, %v2638_v26  ;;  %v4685_v26 = vld [vmem:[#allocation43_spill] sm:$0xff]  ;;  %v4693_v13 = vld [vmem:[#allocation44_spill] sm:$0xff] }
 0x2a9   :  { %v1199_v43 = vpop.permute.xlu2 %1198  ;;  %v1325_v47 = vadd.f32 %v1324_v60, %v1323_v0  ;;  %v4682_v0 = vld [vmem:[#allocation45_spill] sm:$0xff] }
 0x2aa   :  { %v4688_v60 = vld [vmem:[#allocation49_spill] sm:$0xff] }
 0x2ab   :  { %v1333_v38 = vmul.f32 0.25, %v1325_v47  ;;  %v4691_v47 = vld [vmem:[#allocation52_spill] sm:$0xff] }
 0x2b2   :  { %v1203_v25 = vpop.permute.xlu1 %1202 }
 0x2b3   :  { %v1211_v45 = vadd.f32 %v1203_v25, %v871_v17  ;;  %v4681_v17 = vld [vmem:[#allocation32_spill] sm:$0xff] }
 0x2c2   :  { %v1201_v54 = vpop.permute.xlu0 %1200 }
 0x2c3   :  { %v1204_v2 = vsel %vm1171_vm11, %v1199_v43, %v1201_v54  ;;  %v1205_v27 = vsel %vm1171_vm11, %v1201_v54, %v1203_v25  ;;  %v1332_v25 = vadd.f32 %v1331_v8, %v1330_v7  ;;  %v164_v7 = vmul.f32 %v3692_v10, %v2644_v29 }
 0x2c4   :  { %v1209_v35 = vadd.f32 %v1204_v2, %v869_v9  ;;  %v1210_v62 = vadd.f32 %v1205_v27, %v870_v57  ;;  %v180_v2 = vsel %vm178_vm2, %v4678_v39, %v4681_v17  ;;  %v183_v27 = vadd.f32 %v179_v24, %v163_v42  ;;  %v4683_v9 = vld [vmem:[#allocation39_spill] sm:$0xff] }
 0x2c5   :  { %v1334_v1 = vmul.f32 0.25, %v1332_v25  ;;  %v200_v57 = vsel %vm198_vm3, %v4683_v9, %v4682_v0  ;;  %v220_v29 = vsel %vm218_vm4, %v4685_v26, %v4688_v60  ;;  %v4692_v39 = vld [vmem:[#allocation51_spill] sm:$0xff] }
 0x2c6   :  { %v259_v24 = vsel %vm258_vm6, %v4693_v13, %v4692_v39  ;;  %v4694_v42 = vld [vmem:[#allocation55_spill] sm:$0xff] }
 0x2c7   :  { %v260_v17 = vsel %vm258_vm6, %v4692_v39, %v4694_v42 }
 0x2e1   :  { %v3669_v3 = vpop.permute.xlu2 %1215 }
 0x2e9   :  { %v1232_v28 = vpop.permute.xlu2 %1231 }
 0x309   :  { %v3672_v30 = vpop.permute.xlu1 %1219 }
 0x30a   :  { %v3674_v6 = vpop.permute.xlu0 %1217 }
 0x311   :  { %v1236_v4 = vpop.permute.xlu1 %1235 }
 0x312   :  { %v1244_v31 = vadd.f32 %v1236_v4, %v1211_v45  ;;  %v1234_v32 = vpop.permute.xlu0 %1233  ;;  %v4684_v45 = vld [vmem:[#allocation34_spill] sm:$0xff] }
 0x313   :  { %v1237_v43 = vsel %vm4553_vm15, %v1232_v28, %v1234_v32  ;;  %v1238_v54 = vsel %vm4553_vm15, %v1234_v32, %v1236_v4  ;;  %v4686_v4 = vld [vmem:[#allocation36_spill] sm:$0xff] }
 0x314   :  { %v1242_v63 = vadd.f32 %v1237_v43, %v1209_v35  ;;  %v1243_v51 = vadd.f32 %v1238_v54, %v1210_v62  ;;  %1252 = vrot.lane.b32.xlu1 %v1244_v31, %s2584_s25  ;;  %v199_v35 = vsel %vm198_vm3, %v4684_v45, %v4683_v9  ;;  %v184_v62 = vadd.f32 %v180_v2, %v164_v7  ;;  %v4687_v31 = vld [vmem:[#allocation19_spill] sm:$0xff]  ;;  %v4696_v7 = vld [vmem:[#allocation48_spill] sm:$0xff]  ;;  %v3740_v9 = vld [vmem:[#allocation7] ss:$8 sm:$0x3] }
 0x315   :  { %v219_v28 = vsel %vm218_vm4, %v4686_v4, %v4685_v26  ;;  %v203_v8 = vadd.f32 %v199_v35, %v183_v27  ;;  %v4689_v54 = vld [vmem:[#allocation47_spill] sm:$0xff]  ;;  %v4695_v27 = vld [vmem:[#allocation54_spill] sm:$0xff]  ;;  %v4697_v45 = vld [vmem:[#allocation57_spill] sm:$0xff] }
 0x316   :  { %1250 = vrot.lane.b32.xlu0 %v1243_v51, %s2584_s25  ;;  %1248 = vrot.lane.b32.xlu2 %v1242_v63, %s2584_s25  ;;  %v204_v43 = vadd.f32 %v200_v57, %v184_v62  ;;  %v4690_v63 = vld [vmem:[#allocation40_spill] sm:$0xff]  ;;  %v279_v0 = vsel %vm278_vm7, %v4696_v7, %v4695_v27  ;;  %v280_v35 = vsel %vm278_vm7, %v4695_v27, %v4697_v45 }
 0x317   :  { %v239_v51 = vsel %vm238_vm5, %v4690_v63, %v4689_v54  ;;  %v223_v25 = vadd.f32 %v219_v28, %v203_v8  ;;  %v4698_v4 = vld [vmem:[#allocation20_spill] sm:$0xff]  ;;  %v286_v8 = vperm.slane %v3740_v9, 0  ;;  %v1173_v63 = vsel %vm1171_vm11, %v3512_v21, %v3561_v41 }
 0x31e   :  { %1339 = vrot.lane.b32.xlu0 %v1334_v1, %s2570_s3  ;;  %1337 = vrot.lane.b32.xlu2 %v1333_v38, %s2570_s3  ;;  %v240_v1 = vsel %vm238_vm5, %v4689_v54, %v4691_v47  ;;  %v224_v38 = vadd.f32 %v220_v29, %v204_v43  ;;  %v287_v29 = vperm.slane %v3740_v9, 1  ;;  %v1172_v43 = vsel %vm1171_vm11, %v3505_v11, %v3512_v21 }
 0x31f   :  { %v1223_v11 = vsel %vm4553_vm15, %v3674_v6, %v3672_v30 }
 0x320   :  { %v244_v2 = vadd.f32 %v240_v1, %v224_v38 }
 0x322   :  { %v264_v62 = vadd.f32 %v260_v17, %v244_v2  ;;  %v4699_v17 = vld [vmem:[#allocation21_spill] sm:$0xff]  ;;  %v3783_v2 = vstv %s4435_s1  ;;  %s2585_s1 = smov [#allocation10]  }
 0x324   :  { %v284_v60 = vadd.f32 %v280_v35, %v264_v62 }
 0x370   :  { %v1249_v16 = vpop.permute.xlu2 %1248 }
 0x378   :  { %v1338_v33 = vpop.permute.xlu2 %1337 }
 0x379   :  { %v3695_v50 = vsel %vm155_vm1, 0.0, %v1338_v33 }
 0x37a   :  { %v1349_v14 = vmul.f32 %v3695_v50, %v4680_v22  ;;  %v1367_v32 = vmul.f32 %v3695_v50, %v4687_v31  ;;  %v1385_v28 = vmul.f32 %v3695_v50, %v4698_v4  ;;  %v1403_v30 = vmul.f32 %v3695_v50, %v4699_v17 }
 0x37c   :  { %1355 = vrot.lane.b32.xlu1 %v1349_v14, %s2571_s6  ;;  %v243_v14 = vadd.f32 %v239_v51, %v223_v25  ;;  %v291_v51 = vmul.f32 %v287_v29, %v284_v60  ;;  %v1222_v25 = vsel %vm4553_vm15, %v3669_v3, %v3674_v6 }
 0x37e   :  { %v263_v57 = vadd.f32 %v259_v24, %v243_v14  ;;  %v1177_v1 = vadd.f32 %v1173_v63, %v291_v51 }
 0x380   :  { %v1227_v3 = vadd.f32 %v1223_v11, %v1177_v1 }
 0x384   :  { %1373 = vrot.lane.b32.xlu1 %v1367_v32, %s2572_s8  ;;  %v283_v32 = vadd.f32 %v279_v0, %v263_v57  ;;  %v4700_v0 = vld [vmem:[#allocation22_spill] sm:$0xff] }
 0x385   :  { %v1421_v57 = vmul.f32 %v3695_v50, %v4700_v0 }
 0x386   :  { %v290_v54 = vmul.f32 %v286_v8, %v283_v32  ;;  %v1253_v38 = vpop.permute.xlu1 %1252 }
 0x388   :  { %v1251_v26 = vpop.permute.xlu0 %1250  ;;  %v1176_v47 = vadd.f32 %v1172_v43, %v290_v54 }
 0x389   :  { %v1255_v39 = vsel %vm4552_vm8, %v1249_v16, %v1251_v26  ;;  %v1256_v21 = vsel %vm4552_vm8, %v1251_v26, %v1253_v38  ;;  %v4703_v38 = vld [vmem:[#allocation25_spill] sm:$0xff] }
 0x38a   :  { %v1226_v24 = vadd.f32 %v1222_v25, %v1176_v47  ;;  %v4702_v25 = vld [vmem:[#allocation24_spill] sm:$0xff] }
 0x38b   :  { %v1462_v47 = vmul.f32 %v3695_v50, %v4702_v25 }
 0x38c   :  { %1391 = vrot.lane.b32.xlu1 %v1385_v28, %s2573_s10  ;;  %v1259_v16 = vadd.f32 %v1255_v39, %v1226_v24  ;;  %v4701_v28 = vld [vmem:[#allocation23_spill] sm:$0xff]  ;;  %v1482_v39 = vmul.f32 %v3695_v50, %v4703_v38 }
 0x38d   :  { %v1439_v32 = vmul.f32 %v3695_v50, %v4701_v28 }
 0x38e   :  { %v1262_v27 = vadd.f32 %v3783_v2, %v1259_v16 }
 0x390   :  { %v1340_v13 = vpop.permute.xlu0 %1339  ;;  %v2430_v45 = vmul.f32 -1.442695, %v1262_v27 }
 0x391   :  { %v3769_v41 = vsel %vm155_vm1, %v1338_v33, %v1340_v13  ;;  %v3772_v14 = vsel %vm155_vm1, %v1340_v13, 0.0  ;;  %v1260_v33 = vadd.f32 %v1256_v21, %v1227_v3 }
 0x392   :  { %v1351_v42 = vmul.f32 %v3772_v14, %v4680_v22  ;;  %v1350_v6 = vmul.f32 %v3769_v41, %v4680_v22  ;;  %v1369_v22 = vmul.f32 %v3772_v14, %v4687_v31  ;;  %v1368_v35 = vmul.f32 %v3769_v41, %v4687_v31 }
 0x393   :  { %v1263_v7 = vadd.f32 %v3783_v2, %v1260_v33  ;;  %2456 = vpow2.f32 %v2430_v45  ;;  %v1387_v26 = vmul.f32 %v3772_v14, %v4698_v4  ;;  %v1386_v60 = vmul.f32 %v3769_v41, %v4698_v4 }
 0x394   :  { %1359 = vrot.lane.b32.xlu0 %v1351_v42, %s2571_s6  ;;  %1409 = vrot.lane.b32.xlu1 %v1403_v30, %s2574_s12  ;;  %v1405_v51 = vmul.f32 %v3772_v14, %v4699_v17  ;;  %v1404_v11 = vmul.f32 %v3769_v41, %v4699_v17  ;;  %v1423_v1 = vmul.f32 %v3772_v14, %v4700_v0  ;;  %v4704_v17 = vld [vmem:[#allocation26_spill] sm:$0xff] }
 0x395   :  { %1357 = vrot.lane.b32.xlu2 %v1350_v6, %s2571_s6  ;;  %v2431_v62 = vmul.f32 -1.442695, %v1263_v7  ;;  %v1422_v24 = vmul.f32 %v3769_v41, %v4700_v0  ;;  %v1441_v42 = vmul.f32 %v3772_v14, %v4701_v28  ;;  %v1502_v30 = vmul.f32 %v3695_v50, %v4704_v17 }
 0x396   :  { %v1440_v45 = vmul.f32 %v3769_v41, %v4701_v28 }
 0x397   :  { %2458 = vpow2.f32 %v2431_v62 }
 0x399   :  { %v2457_v31 = vpop.eup %2456 }
 0x39a   :  { %v1270_v54 = vadd.f32 1.0, %v2457_v31 }
 0x39c   :  { %1377 = vrot.lane.b32.xlu0 %v1369_v22, %s2572_s8  ;;  %1427 = vrot.lane.b32.xlu1 %v1421_v57, %s2575_s14  ;;  %2460 = vrcp.f32 %v1270_v54  ;;  %v1281_v33 = vand.u32 2147483647, %v1270_v54  ;;  %v1283_v27 = vand.u32 2147483648, %v1270_v54  ;;  %vm1277_vm10 = vweird.f32 %v1270_v54 }
 0x39d   :  { %1375 = vrot.lane.b32.xlu2 %v1368_v35, %s2572_s8  ;;  %v2459_v43 = vpop.eup %2458 }
 0x39e   :  { %v1271_v63 = vadd.f32 1.0, %v2459_v43  ;;  %vm1282_vm8 = vcmp.eq.f32.partialorder %v1281_v33, 8.507059e+37  ;;  %v1503_v33 = vmul.f32 %v3769_v41, %v4704_v17 }
 0x3a0   :  { %2462 = vrcp.f32 %v1271_v63  ;;  %v1298_v7 = vand.u32 2147483648, %v1271_v63  ;;  %v1296_v57 = vand.u32 2147483647, %v1271_v63  ;;  %vm1292_vm13 = vweird.f32 %v1271_v63 }
 0x3a2   :  { %v2461_v4 = vpop.eup %2460  ;;  %vm1297_vm15 = vcmp.eq.f32.partialorder %v1296_v57, 8.507059e+37 }
 0x3a3   :  { %v1273_v21 = vmul.f32 %v2461_v4, %v1270_v54  ;;  %vm1278_vm1 = vweird.f32 %v2461_v4 }
 0x3a4   :  { %1395 = vrot.lane.b32.xlu0 %v1387_v26, %s2573_s10  ;;  %1445 = vrot.lane.b32.xlu1 %v1439_v32, %s2576_s16  ;;  %vm1279_vm12 = vmor %vm1277_vm10, %vm1278_vm1  ;;  %v1284_v26 = vor.u32 1.1754944e-38, %v1283_v27  ;;  %v1299_v32 = vor.u32 1.1754944e-38, %v1298_v7  ;;  %v4709_v27 = vld [vmem:[#allocation31_spill] sm:$0xff] }
 0x3a5   :  { %1393 = vrot.lane.b32.xlu2 %v1386_v60, %s2573_s10  ;;  %v1274_v6 = vsub.f32 1.0, %v1273_v21  ;;  %v1484_v21 = vmul.f32 %v3772_v14, %v4703_v38  ;;  %v1588_v7 = vmul.f32 %v3695_v50, %v4709_v27 }
 0x3a6   :  { %v2463_v13 = vpop.eup %2462 }
 0x3a7   :  { %v1288_v3 = vmul.f32 %v2463_v13, %v1271_v63  ;;  %v1275_v22 = vmul.f32 %v2461_v4, %v1274_v6  ;;  %vm1293_vm9 = vweird.f32 %v2463_v13  ;;  %v4708_v6 = vld [vmem:[#allocation29_spill] sm:$0xff] }
 0x3a8   :  { %vm1294_vm14 = vmor %vm1292_vm13, %vm1293_vm9 }
 0x3a9   :  { %v1289_v16 = vsub.f32 1.0, %v1288_v3  ;;  %v1276_v35 = vadd.f32 %v2461_v4, %v1275_v22  ;;  %v4707_v3 = vld [vmem:[#allocation28_spill] sm:$0xff] }
 0x3ab   :  { %v1290_v0 = vmul.f32 %v2463_v13, %v1289_v16  ;;  %v1280_v60 = vsel %vm1279_vm12, %v2461_v4, %v1276_v35  ;;  %v1562_v16 = vmul.f32 %v3695_v50, %v4708_v6  ;;  %v1564_v35 = vmul.f32 %v3772_v14, %v4708_v6 }
 0x3ac   :  { %1413 = vrot.lane.b32.xlu0 %v1405_v51, %s2574_s12  ;;  %1468 = vrot.lane.b32.xlu1 %v1462_v47, %s2571_s6  ;;  %v1285_v43 = vsel %vm1282_vm8, %v1284_v26, %v1280_v60  ;;  %v1464_v51 = vmul.f32 %v3772_v14, %v4702_v25  ;;  %v4705_v47 = vld [vmem:[#allocation27_spill] sm:$0xff] }
 0x3ad   :  { %1411 = vrot.lane.b32.xlu2 %v1404_v11, %s2574_s12  ;;  %v1291_v62 = vadd.f32 %v2463_v13, %v1290_v0  ;;  %v1522_v11 = vmul.f32 %v3695_v50, %v4705_v47  ;;  %v1523_v22 = vmul.f32 %v3769_v41, %v4705_v47  ;;  %v4710_v0 = vld [vmem:[#allocation33_spill] sm:$0xff] }
 0x3ae   :  { %v1608_v57 = vmul.f32 %v3695_v50, %v4710_v0 }
 0x3af   :  { %v1295_v31 = vsel %vm1294_vm14, %v2463_v13, %v1291_v62  ;;  %v4706_v13 = vld [vmem:[#allocation15_spill] sm:$0xff] }
 0x3b0   :  { %v1300_v28 = vsel %vm1297_vm15, %v1299_v32, %v1295_v31  ;;  %v4711_v62 = vld [vmem:[#allocation35_spill] sm:$0xff]  ;;  %v1563_v32 = vmul.f32 %v3769_v41, %v4708_v6 }
 0x3b1   :  { %v1303_v54 = vperm.slane %v1300_v28, 0  ;;  %v1628_v26 = vmul.f32 %v3695_v50, %v4711_v62 }
 0x3b3   :  { %v1306_v63 = vrot.slane %v1303_v54, 4 }
 0x3b4   :  { %1431 = vrot.lane.b32.xlu0 %v1423_v1, %s2575_s14  ;;  %1488 = vrot.lane.b32.xlu1 %v1482_v39, %s2572_s8  ;;  %v1302_v1 = vperm.slane %v1285_v43, 0  ;;  %v1463_v39 = vmul.f32 %v3769_v41, %v4702_v25  ;;  %v1483_v25 = vmul.f32 %v3769_v41, %v4703_v38  ;;  %v1524_v38 = vmul.f32 %v3772_v14, %v4705_v47  ;;  %v4712_v47 = vld [vmem:[#allocation38_spill] sm:$0xff] }
 0x3b5   :  { %1429 = vrot.lane.b32.xlu2 %v1422_v24, %s2575_s14  ;;  %v1347_v43 = vmul.f32 %v3695_v50, %v3692_v10 }
 0x3b6   :  { %v1307_v4 = vsel %vm132_vm0, %v1302_v1, %v1306_v63  ;;  %v1589_v1 = vmul.f32 %v3769_v41, %v4709_v27 }
 0x3b7   :  { %v1309_v24 = vmul.f32 %v1307_v4, %v4706_v13 }
 0x3b9   :  { %1310 = vst [vmem:[#allocation10] sm:$0xff] %v1309_v24  ;;  %v1610_v24 = vmul.f32 %v3772_v14, %v4710_v0 }
 0x3bc   :  { %1449 = vrot.lane.b32.xlu0 %v1441_v42, %s2576_s16  ;;  %1508 = vrot.lane.b32.xlu1 %v1502_v30, %s2573_s10  ;;  %v1542_v42 = vmul.f32 %v3695_v50, %v4707_v3  ;;  %v1504_v30 = vmul.f32 %v3772_v14, %v4704_v17  ;;  %v1544_v17 = vmul.f32 %v3772_v14, %v4707_v3 }
 0x3bd   :  { %1447 = vrot.lane.b32.xlu2 %v1440_v45, %s2576_s16  ;;  %v1543_v45 = vmul.f32 %v3769_v41, %v4707_v3 }
 0x3c4   :  { %1472 = vrot.lane.b32.xlu0 %v1464_v51, %s2571_s6  ;;  %1528 = vrot.lane.b32.xlu1 %v1522_v11, %s2574_s12  ;;  %v1590_v51 = vmul.f32 %v3772_v14, %v4709_v27  ;;  %v1648_v11 = vmul.f32 %v3695_v50, %v4712_v47 }
 0x3c5   :  { %1470 = vrot.lane.b32.xlu2 %v1463_v39, %s2571_s6 }
 0x3cc   :  { %1492 = vrot.lane.b32.xlu0 %v1484_v21, %s2572_s8  ;;  %1548 = vrot.lane.b32.xlu1 %v1542_v42, %s2575_s14  ;;  %v4713_v21 = vld [vmem:[#allocation42_spill] sm:$0xff]  ;;  %v1609_v42 = vmul.f32 %v3769_v41, %v4710_v0 }
 0x3cd   :  { %1490 = vrot.lane.b32.xlu2 %v1483_v25, %s2572_s8  ;;  %v1668_v3 = vmul.f32 %v3695_v50, %v4713_v21 }
 0x3d4   :  { %1512 = vrot.lane.b32.xlu0 %v1504_v30, %s2573_s10  ;;  %1568 = vrot.lane.b32.xlu1 %v1562_v16, %s2576_s16 }
 0x3d5   :  { %1510 = vrot.lane.b32.xlu2 %v1503_v33, %s2573_s10  ;;  %v1630_v33 = vmul.f32 %v3772_v14, %v4711_v62 }
 0x3dc   :  { %1532 = vrot.lane.b32.xlu0 %v1524_v38, %s2574_s12  ;;  %1594 = vrot.lane.b32.xlu1 %v1588_v7, %s2571_s6  ;;  %v4714_v38 = vld [vmem:[#allocation46_spill] sm:$0xff]  ;;  %v1629_v7 = vmul.f32 %v3769_v41, %v4711_v62  ;;  %v1650_v62 = vmul.f32 %v3772_v14, %v4712_v47 }
 0x3dd   :  { %1530 = vrot.lane.b32.xlu2 %v1523_v22, %s2574_s12  ;;  %v1688_v27 = vmul.f32 %v3695_v50, %v4714_v38 }
 0x3e4   :  { %1552 = vrot.lane.b32.xlu0 %v1544_v17, %s2575_s14  ;;  %1614 = vrot.lane.b32.xlu1 %v1608_v57, %s2572_s8  ;;  %v1348_v17 = vmul.f32 %v3769_v41, %v3692_v10 }
 0x3e5   :  { %1550 = vrot.lane.b32.xlu2 %v1543_v45, %s2575_s14 }
 0x3ec   :  { %1572 = vrot.lane.b32.xlu0 %v1564_v35, %s2576_s16  ;;  %1634 = vrot.lane.b32.xlu1 %v1628_v26, %s2573_s10 }
 0x3ed   :  { %1570 = vrot.lane.b32.xlu2 %v1563_v32, %s2576_s16 }
 0x3ee   :  { %v1356_v60 = vpop.permute.xlu1 %1355 }
 0x3ef   :  { %v1358_v31 = vpop.permute.xlu2 %1357 }
 0x3f0   :  { %v1361_v28 = vsel %vm178_vm2, %v1356_v60, %v1358_v31  ;;  %v4715_v60 = vld [vmem:[#allocation50_spill] sm:$0xff] }
 0x3f1   :  { %v1365_v54 = vadd.f32 %v1361_v28, %v1347_v43  ;;  %v1714_v43 = vmul.f32 %v3695_v50, %v4715_v60  ;;  %v1649_v28 = vmul.f32 %v3769_v41, %v4712_v47 }
 0x3f4   :  { %1598 = vrot.lane.b32.xlu0 %v1590_v51, %s2571_s6  ;;  %1654 = vrot.lane.b32.xlu1 %v1648_v11, %s2574_s12 }
 0x3f5   :  { %1596 = vrot.lane.b32.xlu2 %v1589_v1, %s2571_s6 }
 0x3f6   :  { %v1374_v63 = vpop.permute.xlu1 %1373 }
 0x3f7   :  { %v1376_v39 = vpop.permute.xlu2 %1375 }
 0x3f8   :  { %v1379_v4 = vsel %vm198_vm3, %v1374_v63, %v1376_v39 }
 0x3f9   :  { %v1383_v13 = vadd.f32 %v1379_v4, %v1365_v54  ;;  %v1670_v4 = vmul.f32 %v3772_v14, %v4713_v21 }
 0x3fc   :  { %1618 = vrot.lane.b32.xlu0 %v1610_v24, %s2572_s8  ;;  %1674 = vrot.lane.b32.xlu1 %v1668_v3, %s2575_s14  ;;  %v1669_v24 = vmul.f32 %v3769_v41, %v4713_v21  ;;  %v4717_v21 = vld [vmem:[#allocation56_spill] sm:$0xff] }
 0x3fd   :  { %1616 = vrot.lane.b32.xlu2 %v1609_v42, %s2572_s8 }
 0x3fe   :  { %v1392_v25 = vpop.permute.xlu1 %1391 }
 0x3ff   :  { %v1394_v30 = vpop.permute.xlu2 %1393 }
 0x400   :  { %v1397_v6 = vsel %vm218_vm4, %v1392_v25, %v1394_v30 }
 0x401   :  { %v1401_v16 = vadd.f32 %v1397_v6, %v1383_v13  ;;  %v4716_v13 = vld [vmem:[#allocation53_spill] sm:$0xff] }
 0x402   :  { %v1734_v47 = vmul.f32 %v3695_v50, %v4716_v13 }
 0x404   :  { %1638 = vrot.lane.b32.xlu0 %v1630_v33, %s2573_s10  ;;  %1694 = vrot.lane.b32.xlu1 %v1688_v27, %s2576_s16  ;;  %v1690_v27 = vmul.f32 %v3772_v14, %v4714_v38 }
 0x405   :  { %1636 = vrot.lane.b32.xlu2 %v1629_v7, %s2573_s10  ;;  %v1754_v7 = vmul.f32 %v3695_v50, %v4717_v21 }
 0x406   :  { %v1360_v22 = vpop.permute.xlu0 %1359  ;;  %v1410_v0 = vpop.permute.xlu1 %1409 }
 0x407   :  { %v1362_v57 = vsel %vm178_vm2, %v1358_v31, %v1360_v22  ;;  %v1412_v45 = vpop.permute.xlu2 %1411  ;;  %v1689_v22 = vmul.f32 %v3769_v41, %v4714_v38  ;;  %v1716_v38 = vmul.f32 %v3772_v14, %v4715_v60 }
 0x408   :  { %v1366_v35 = vadd.f32 %v1362_v57, %v1348_v17  ;;  %v1415_v26 = vsel %vm238_vm5, %v1410_v0, %v1412_v45  ;;  %v1459_v57 = vmul.f32 %v3695_v50, %v3263_v19 }
 0x409   :  { %v1419_v32 = vadd.f32 %v1415_v26, %v1401_v16 }
 0x40c   :  { %1658 = vrot.lane.b32.xlu0 %v1650_v62, %s2574_s12  ;;  %1720 = vrot.lane.b32.xlu1 %v1714_v43, %s2571_s6  ;;  %v4718_v43 = vld [vmem:[#allocation58_spill] sm:$0xff] }
 0x40d   :  { %1656 = vrot.lane.b32.xlu2 %v1649_v28, %s2574_s12  ;;  %v1774_v28 = vmul.f32 %v3695_v50, %v4718_v43 }
 0x40e   :  { %v1378_v10 = vpop.permute.xlu0 %1377  ;;  %v1428_v31 = vpop.permute.xlu1 %1427 }
 0x40f   :  { %v1380_v54 = vsel %vm198_vm3, %v1376_v39, %v1378_v10  ;;  %v1430_v51 = vpop.permute.xlu2 %1429  ;;  %v1715_v10 = vmul.f32 %v3769_v41, %v4715_v60 }
 0x410   :  { %v1384_v11 = vadd.f32 %v1380_v54, %v1366_v35  ;;  %v1433_v1 = vsel %vm258_vm6, %v1428_v31, %v1430_v51 }
 0x411   :  { %v1437_v63 = vadd.f32 %v1433_v1, %v1419_v32 }
 0x414   :  { %1678 = vrot.lane.b32.xlu0 %v1670_v4, %s2575_s14  ;;  %1740 = vrot.lane.b32.xlu1 %v1734_v47, %s2572_s8  ;;  %v1736_v47 = vmul.f32 %v3772_v14, %v4716_v13 }
 0x415   :  { %1676 = vrot.lane.b32.xlu2 %v1669_v24, %s2575_s14  ;;  %v4719_v24 = vld [vmem:[#allocation59_spill] sm:$0xff] }
 0x416   :  { %v1396_v39 = vpop.permute.xlu0 %1395  ;;  %v1446_v3 = vpop.permute.xlu1 %1445  ;;  %v1794_v60 = vmul.f32 %v3695_v50, %v4719_v24 }
 0x417   :  { %v1398_v42 = vsel %vm218_vm4, %v1394_v30, %v1396_v39  ;;  %v1448_v25 = vpop.permute.xlu2 %1447  ;;  %v1735_v39 = vmul.f32 %v3769_v41, %v4716_v13  ;;  %v4720_v13 = vld [vmem:[#allocation60_spill] sm:$0xff] }
 0x418   :  { %v1402_v6 = vadd.f32 %v1398_v42, %v1384_v11  ;;  %v1451_v16 = vsel %vm278_vm7, %v1446_v3, %v1448_v25 }
 0x419   :  { %v3949_v33 = vadd.f32 %v1451_v16, %v1437_v63 }
 0x41c   :  { %1698 = vrot.lane.b32.xlu0 %v1690_v27, %s2576_s16  ;;  %1760 = vrot.lane.b32.xlu1 %v1754_v7, %s2573_s10 }
 0x41d   :  { %1696 = vrot.lane.b32.xlu2 %v1689_v22, %s2576_s16  ;;  %v1756_v22 = vmul.f32 %v3772_v14, %v4717_v21 }
 0x41e   :  { %v1414_v30 = vpop.permute.xlu0 %1413  ;;  %v1469_v17 = vpop.permute.xlu1 %1468 }
 0x41f   :  { %v1416_v0 = vsel %vm238_vm5, %v1412_v45, %v1414_v30  ;;  %v1471_v35 = vpop.permute.xlu2 %1470  ;;  %v1814_v30 = vmul.f32 %v3695_v50, %v4720_v13 }
 0x420   :  { %v1420_v26 = vadd.f32 %v1416_v0, %v1402_v6  ;;  %v1474_v32 = vsel %vm178_vm2, %v1469_v17, %v1471_v35  ;;  %v1755_v17 = vmul.f32 %v3769_v41, %v4717_v21 }
 0x421   :  { %v1479_v62 = vadd.f32 %v1474_v32, %v1459_v57  ;;  %v1460_v57 = vmul.f32 %v3769_v41, %v3263_v19 }
 0x424   :  { %1724 = vrot.lane.b32.xlu0 %v1716_v38, %s2571_s6  ;;  %1780 = vrot.lane.b32.xlu1 %v1774_v28, %s2574_s12 }
 0x425   :  { %1722 = vrot.lane.b32.xlu2 %v1715_v10, %s2571_s6 }
 0x426   :  { %v1432_v45 = vpop.permute.xlu0 %1431  ;;  %v1489_v31 = vpop.permute.xlu1 %1488 }
 0x427   :  { %v1434_v54 = vsel %vm258_vm6, %v1430_v51, %v1432_v45  ;;  %v1491_v11 = vpop.permute.xlu2 %1490  ;;  %v1776_v45 = vmul.f32 %v3772_v14, %v4718_v43 }
 0x428   :  { %v1438_v1 = vadd.f32 %v1434_v54, %v1420_v26  ;;  %v1494_v63 = vsel %vm198_vm3, %v1489_v31, %v1491_v11  ;;  %v4721_v31 = vld [vmem:[#allocation61_spill] sm:$0xff] }
 0x429   :  { %v1499_v4 = vadd.f32 %v1494_v63, %v1479_v62  ;;  %v1840_v54 = vmul.f32 %v3695_v50, %v4721_v31 }
 0x42c   :  { %1744 = vrot.lane.b32.xlu0 %v1736_v47, %s2572_s8  ;;  %1800 = vrot.lane.b32.xlu1 %v1794_v60, %s2575_s14 }
 0x42d   :  { %1742 = vrot.lane.b32.xlu2 %v1735_v39, %s2572_s8 }
 0x42e   :  { %v1450_v51 = vpop.permute.xlu0 %1449  ;;  %v1509_v3 = vpop.permute.xlu1 %1508 }
 0x42f   :  { %v1452_v42 = vsel %vm278_vm7, %v1448_v25, %v1450_v51  ;;  %v1511_v6 = vpop.permute.xlu2 %1510  ;;  %v1461_v25 = vmul.f32 %v3772_v14, %v3263_v19 }
 0x430   :  { %v3985_v16 = vadd.f32 %v1452_v42, %v1438_v1  ;;  %v1514_v27 = vsel %vm218_vm4, %v1509_v3, %v1511_v6  ;;  %v1775_v1 = vmul.f32 %v3769_v41, %v4718_v43  ;;  %v1796_v3 = vmul.f32 %v3772_v14, %v4719_v24  ;;  %v4722_v43 = vld [vmem:[#allocation62_spill] sm:$0xff] }
 0x431   :  { %v1519_v7 = vadd.f32 %v1514_v27, %v1499_v4  ;;  %v1860_v42 = vmul.f32 %v3695_v50, %v4722_v43  ;;  %v1795_v27 = vmul.f32 %v3769_v41, %v4719_v24  ;;  %v1816_v24 = vmul.f32 %v3772_v14, %v4720_v13 }
 0x434   :  { %1764 = vrot.lane.b32.xlu0 %v1756_v22, %s2573_s10  ;;  %1820 = vrot.lane.b32.xlu1 %v1814_v30, %s2576_s16 }
 0x435   :  { %1762 = vrot.lane.b32.xlu2 %v1755_v17, %s2573_s10 }
 0x436   :  { %v1473_v0 = vpop.permute.xlu0 %1472  ;;  %v1529_v26 = vpop.permute.xlu1 %1528 }
 0x437   :  { %v1475_v32 = vsel %vm178_vm2, %v1471_v35, %v1473_v0  ;;  %v1481_v62 = vadd.f32 %v1473_v0, %v1461_v25  ;;  %v1531_v38 = vpop.permute.xlu2 %1530 }
 0x438   :  { %v1480_v28 = vadd.f32 %v1475_v32, %v1460_v57  ;;  %v1534_v21 = vsel %vm238_vm5, %v1529_v26, %v1531_v38  ;;  %v4723_v26 = vld [vmem:[#allocation64_spill] sm:$0xff] }
 0x439   :  { %v1539_v10 = vadd.f32 %v1534_v21, %v1519_v7  ;;  %v1880_v32 = vmul.f32 %v3695_v50, %v4723_v26 }
 0x43c   :  { %1784 = vrot.lane.b32.xlu0 %v1776_v45, %s2574_s12  ;;  %1846 = vrot.lane.b32.xlu1 %v1840_v54, %s2571_s6  ;;  %v1585_v45 = vmul.f32 %v3695_v50, %v3488_v34 }
 0x43d   :  { %1782 = vrot.lane.b32.xlu2 %v1775_v1, %s2574_s12 }
 0x43e   :  { %v1493_v19 = vpop.permute.xlu0 %1492  ;;  %v1549_v35 = vpop.permute.xlu1 %1548 }
 0x43f   :  { %v1495_v63 = vsel %vm198_vm3, %v1491_v11, %v1493_v19  ;;  %v1501_v4 = vadd.f32 %v1493_v19, %v1481_v62  ;;  %v1551_v47 = vpop.permute.xlu2 %1550  ;;  %v1815_v62 = vmul.f32 %v3769_v41, %v4720_v13  ;;  %v1842_v13 = vmul.f32 %v3772_v14, %v4721_v31 }
 0x440   :  { %v1500_v60 = vadd.f32 %v1495_v63, %v1480_v28  ;;  %v1554_v39 = vsel %vm258_vm6, %v1549_v35, %v1551_v47  ;;  %v4724_v63 = vld [vmem:[#allocation67_spill] sm:$0xff] }
 0x441   :  { %v1559_v51 = vadd.f32 %v1554_v39, %v1539_v10 }
 0x444   :  { %1804 = vrot.lane.b32.xlu0 %v1796_v3, %s2575_s14  ;;  %1866 = vrot.lane.b32.xlu1 %v1860_v42, %s2572_s8 }
 0x445   :  { %1802 = vrot.lane.b32.xlu2 %v1795_v27, %s2575_s14 }
 0x446   :  { %v1513_v11 = vpop.permute.xlu0 %1512  ;;  %v1569_v7 = vpop.permute.xlu1 %1568 }
 0x447   :  { %v1515_v22 = vsel %vm218_vm4, %v1511_v6, %v1513_v11  ;;  %v1521_v30 = vadd.f32 %v1513_v11, %v1501_v4  ;;  %v1571_v17 = vpop.permute.xlu2 %1570  ;;  %v1900_v4 = vmul.f32 %v3695_v50, %v4724_v63 }
 0x448   :  { %v1520_v25 = vadd.f32 %v1515_v22, %v1500_v60  ;;  %v1574_v0 = vsel %vm278_vm7, %v1569_v7, %v1571_v17  ;;  %v1841_v60 = vmul.f32 %v3769_v41, %v4721_v31  ;;  %v1862_v22 = vmul.f32 %v3772_v14, %v4722_v43  ;;  %v4725_v31 = vld [vmem:[#allocation70_spill] sm:$0xff] }
 0x449   :  { %v4025_v57 = vadd.f32 %v1574_v0, %v1559_v51 }
 0x44c   :  { %1824 = vrot.lane.b32.xlu0 %v1816_v24, %s2576_s16  ;;  %1886 = vrot.lane.b32.xlu1 %v1880_v32, %s2573_s10 }
 0x44d   :  { %1822 = vrot.lane.b32.xlu2 %v1815_v62, %s2576_s16 }
 0x44e   :  { %v1533_v6 = vpop.permute.xlu0 %1532  ;;  %v1595_v28 = vpop.permute.xlu1 %1594 }
 0x44f   :  { %v1535_v21 = vsel %vm238_vm5, %v1531_v38, %v1533_v6  ;;  %v1541_v10 = vadd.f32 %v1533_v6, %v1521_v30  ;;  %v1597_v54 = vpop.permute.xlu2 %1596  ;;  %v1920_v30 = vmul.f32 %v3695_v50, %v4725_v31 }
 0x450   :  { %v1540_v1 = vadd.f32 %v1535_v21, %v1520_v25  ;;  %v1600_v19 = vsel %vm178_vm2, %v1595_v28, %v1597_v54  ;;  %v1861_v25 = vmul.f32 %v3769_v41, %v4722_v43  ;;  %v1882_v43 = vmul.f32 %v3772_v14, %v4723_v26 }
 0x451   :  { %v1605_v35 = vadd.f32 %v1600_v19, %v1585_v45 }
 0x454   :  { %1850 = vrot.lane.b32.xlu0 %v1842_v13, %s2571_s6  ;;  %1906 = vrot.lane.b32.xlu1 %v1900_v4, %s2574_s12 }
 0x455   :  { %1848 = vrot.lane.b32.xlu2 %v1841_v60, %s2571_s6 }
 0x456   :  { %v1553_v38 = vpop.permute.xlu0 %1552  ;;  %v1615_v39 = vpop.permute.xlu1 %1614 }
 0x457   :  { %v1555_v51 = vsel %vm258_vm6, %v1551_v47, %v1553_v38  ;;  %v1561_v3 = vadd.f32 %v1553_v38, %v1541_v10  ;;  %v1617_v42 = vpop.permute.xlu2 %1616  ;;  %v4726_v10 = vld [vmem:[#allocation80_spill] sm:$0xff] }
 0x458   :  { %v1560_v27 = vadd.f32 %v1555_v51, %v1540_v1  ;;  %v1620_v11 = vsel %vm198_vm3, %v1615_v39, %v1617_v42  ;;  %v1966_v45 = vmul.f32 %v3695_v50, %v4726_v10  ;;  %v1881_v1 = vmul.f32 %v3769_v41, %v4723_v26 }
 0x459   :  { %v1625_v7 = vadd.f32 %v1620_v11, %v1605_v35  ;;  %v1586_v35 = vmul.f32 %v3769_v41, %v3488_v34 }
 0x45c   :  { %1870 = vrot.lane.b32.xlu0 %v1862_v22, %s2572_s8  ;;  %1926 = vrot.lane.b32.xlu1 %v1920_v30, %s2575_s14 }
 0x45d   :  { %1868 = vrot.lane.b32.xlu2 %v1861_v25, %s2572_s8 }
 0x45e   :  { %v1573_v47 = vpop.permute.xlu0 %1572  ;;  %v1635_v0 = vpop.permute.xlu1 %1634 }
 0x45f   :  { %v1575_v24 = vsel %vm278_vm7, %v1571_v17, %v1573_v47  ;;  %v4061_v32 = vadd.f32 %v1573_v47, %v1561_v3  ;;  %v1637_v62 = vpop.permute.xlu2 %1636  ;;  %v1587_v17 = vmul.f32 %v3772_v14, %v3488_v34  ;;  %v1902_v3 = vmul.f32 %v3772_v14, %v4724_v63 }
 0x460   :  { %v4063_v6 = vadd.f32 %v1575_v24, %v1560_v27  ;;  %v1640_v28 = vsel %vm218_vm4, %v1635_v0, %v1637_v62  ;;  %v4727_v27 = vld [vmem:[#allocation89_spill] sm:$0xff] }
 0x461   :  { %v1645_v21 = vadd.f32 %v1640_v28, %v1625_v7  ;;  %v2093_v11 = vmul.f32 %v3769_v41, %v4727_v27  ;;  %v1901_v7 = vmul.f32 %v3769_v41, %v4724_v63  ;;  %v1968_v28 = vmul.f32 %v3772_v14, %v4726_v10  ;;  %v4728_v63 = vld [vmem:[#allocation84_spill] sm:$0xff] }
 0x464   :  { %1890 = vrot.lane.b32.xlu0 %v1882_v43, %s2573_s10  ;;  %1972 = vrot.lane.b32.xlu1 %v1966_v45, %s2571_s6  ;;  %v1967_v43 = vmul.f32 %v3769_v41, %v4726_v10 }
 0x465   :  { %1888 = vrot.lane.b32.xlu2 %v1881_v1, %s2573_s10 }
 0x466   :  { %v1599_v19 = vpop.permute.xlu0 %1598  ;;  %v1655_v13 = vpop.permute.xlu1 %1654 }
 0x467   :  { %v1601_v4 = vsel %vm178_vm2, %v1597_v54, %v1599_v19  ;;  %v1607_v60 = vadd.f32 %v1599_v19, %v1587_v17  ;;  %v1657_v38 = vpop.permute.xlu2 %1656 }
 0x468   :  { %v1606_v39 = vadd.f32 %v1601_v4, %v1586_v35  ;;  %v1660_v26 = vsel %vm238_vm5, %v1655_v13, %v1657_v38 }
 0x469   :  { %v1665_v51 = vadd.f32 %v1660_v26, %v1645_v21  ;;  %v2007_v21 = vmul.f32 %v3769_v41, %v4728_v63 }
 0x46c   :  { %1910 = vrot.lane.b32.xlu0 %v1902_v3, %s2574_s12  ;;  %2100 = vrot.lane.b32.xlu1 %v2093_v11, %s2571_s6 }
 0x46d   :  { %1908 = vrot.lane.b32.xlu2 %v1901_v7, %s2574_s12 }
 0x46e   :  { %v1619_v34 = vpop.permute.xlu0 %1618  ;;  %v1675_v54 = vpop.permute.xlu1 %1674 }
 0x46f   :  { %v1621_v22 = vsel %vm198_vm3, %v1617_v42, %v1619_v34  ;;  %v1627_v30 = vadd.f32 %v1619_v34, %v1607_v60  ;;  %v1677_v25 = vpop.permute.xlu2 %1676  ;;  %v4729_v60 = vld [vmem:[#allocation82_spill] sm:$0xff]  ;;  %v1711_v34 = vmul.f32 %v3695_v50, %v3303_v36 }
 0x470   :  { %v1626_v47 = vadd.f32 %v1621_v22, %v1606_v39  ;;  %v1680_v0 = vsel %vm258_vm6, %v1675_v54, %v1677_v25  ;;  %v1988_v10 = vmul.f32 %v3772_v14, %v4729_v60  ;;  %v4730_v39 = vld [vmem:[#allocation91_spill] sm:$0xff] }
 0x471   :  { %v1685_v24 = vadd.f32 %v1680_v0, %v1665_v51  ;;  %v2113_v26 = vmul.f32 %v3769_v41, %v4730_v39  ;;  %v1987_v51 = vmul.f32 %v3769_v41, %v4729_v60  ;;  %v1986_v0 = vmul.f32 %v3695_v50, %v4729_v60 }
 0x472   :  { %v2092_v60 = vmul.f32 %v3695_v50, %v4727_v27 }
 0x474   :  { %1976 = vrot.lane.b32.xlu0 %v1968_v28, %s2571_s6  ;;  %2014 = vrot.lane.b32.xlu1 %v2007_v21, %s2573_s10 }
 0x475   :  { %1974 = vrot.lane.b32.xlu2 %v1967_v43, %s2571_s6 }
 0x476   :  { %v1639_v42 = vpop.permute.xlu0 %1638  ;;  %v1695_v45 = vpop.permute.xlu1 %1694 }
 0x477   :  { %v1641_v1 = vsel %vm218_vm4, %v1637_v62, %v1639_v42  ;;  %v1647_v17 = vadd.f32 %v1639_v42, %v1627_v30  ;;  %v1697_v19 = vpop.permute.xlu2 %1696 }
 0x478   :  { %v1646_v35 = vadd.f32 %v1641_v1, %v1626_v47  ;;  %v1700_v13 = vsel %vm278_vm7, %v1695_v45, %v1697_v19 }
 0x479   :  { %v4103_v4 = vadd.f32 %v1700_v13, %v1685_v24  ;;  %v4731_v24 = vld [vmem:[#allocation85_spill] sm:$0xff] }
 0x47a   :  { %v2027_v28 = vmul.f32 %v3769_v41, %v4731_v24 }
 0x47c   :  { %1996 = vrot.lane.b32.xlu0 %v1988_v10, %s2572_s8  ;;  %2120 = vrot.lane.b32.xlu1 %v2113_v26, %s2572_s8  ;;  %v4732_v10 = vld [vmem:[#allocation94_spill] sm:$0xff] }
 0x47d   :  { %1994 = vrot.lane.b32.xlu2 %v1987_v51, %s2572_s8  ;;  %v2133_v26 = vmul.f32 %v3769_v41, %v4732_v10  ;;  %v2008_v51 = vmul.f32 %v3772_v14, %v4728_v63 }
 0x47e   :  { %v1659_v62 = vpop.permute.xlu0 %1658  ;;  %v1721_v3 = vpop.permute.xlu1 %1720 }
 0x47f   :  { %v1661_v11 = vsel %vm238_vm5, %v1657_v38, %v1659_v62  ;;  %v1667_v7 = vadd.f32 %v1659_v62, %v1647_v17  ;;  %v4117_v54 = vpop.permute.xlu2 %1722  ;;  %v2094_v38 = vmul.f32 %v3772_v14, %v4727_v27 }
 0x480   :  { %v1666_v22 = vadd.f32 %v1661_v11, %v1646_v35  ;;  %v1726_v30 = vsel %vm178_vm2, %v1721_v3, %v4117_v54 }
 0x481   :  { %v1731_v47 = vadd.f32 %v1726_v30, %v1711_v34  ;;  %v2006_v30 = vmul.f32 %v3695_v50, %v4728_v63 }
 0x484   :  { %1992 = vrot.lane.b32.xlu0 %v1986_v0, %s2572_s8  ;;  %2034 = vrot.lane.b32.xlu1 %v2027_v28, %s2574_s12  ;;  %v2114_v28 = vmul.f32 %v3772_v14, %v4730_v39 }
 0x485   :  { %2102 = vrot.lane.b32.xlu2 %v2094_v38, %s2571_s6 }
 0x486   :  { %v1679_v21 = vpop.permute.xlu0 %1678  ;;  %v1741_v43 = vpop.permute.xlu1 %1740 }
 0x487   :  { %v1681_v42 = vsel %vm258_vm6, %v1677_v25, %v1679_v21  ;;  %v1687_v45 = vadd.f32 %v1679_v21, %v1667_v7  ;;  %v4131_v1 = vpop.permute.xlu2 %1742 }
 0x488   :  { %v1686_v17 = vadd.f32 %v1681_v42, %v1666_v22  ;;  %v1746_v35 = vsel %vm198_vm3, %v1741_v43, %v4131_v1 }
 0x489   :  { %v1751_v13 = vadd.f32 %v1746_v35, %v1731_v47  ;;  %v4733_v47 = vld [vmem:[#allocation86_spill] sm:$0xff]  ;;  %v4734_v35 = vld [vmem:[#allocation97_spill] sm:$0xff] }
 0x48a   :  { %v2047_v0 = vmul.f32 %v3769_v41, %v4733_v47 }
 0x48c   :  { %2098 = vrot.lane.b32.xlu0 %v2092_v60, %s2571_s6  ;;  %2140 = vrot.lane.b32.xlu1 %v2133_v26, %s2573_s10  ;;  %v2028_v60 = vmul.f32 %v3772_v14, %v4731_v24  ;;  %s2365_s6 = sshll.u32 %s2585_s1, 4  ;;  %s2366_s6 = int_to_ptr.vmem [resolvable:$true] %s2365_s6 }
 0x48d   :  { %2016 = vrot.lane.b32.xlu2 %v2008_v51, %s2573_s10 }
 0x48e   :  { %v1699_v25 = vpop.permute.xlu0 %1698  ;;  %v1761_v62 = vpop.permute.xlu1 %1760 }
 0x48f   :  { %v1701_v3 = vsel %vm278_vm7, %v1697_v19, %v1699_v25  ;;  %v4145_v11 = vadd.f32 %v1699_v25, %v1687_v45  ;;  %v4147_v7 = vpop.permute.xlu2 %1762  ;;  %v1713_v19 = vmul.f32 %v3772_v14, %v3303_v36 }
 0x490   :  { %v4149_v27 = vadd.f32 %v1701_v3, %v1686_v17  ;;  %v1766_v34 = vsel %vm218_vm4, %v1761_v62, %v4147_v7  ;;  %v2112_v17 = vmul.f32 %v3695_v50, %v4730_v39  ;;  %v2026_v39 = vmul.f32 %v3695_v50, %v4731_v24 }
 0x491   :  { %v1771_v22 = vadd.f32 %v1766_v34, %v1751_v13  ;;  %v2153_v13 = vmul.f32 %v3769_v41, %v4734_v35  ;;  %v4735_v34 = vld [vmem:[#allocation87_spill] sm:$0xff]  ;;  %v2132_v24 = vmul.f32 %v3695_v50, %v4732_v10 }
 0x494   :  { %2012 = vrot.lane.b32.xlu0 %v2006_v30, %s2573_s10  ;;  %2054 = vrot.lane.b32.xlu1 %v2047_v0, %s2575_s14  ;;  %v2134_v30 = vmul.f32 %v3772_v14, %v4732_v10 }
 0x495   :  { %2122 = vrot.lane.b32.xlu2 %v2114_v28, %s2572_s8 }
 0x496   :  { %v1725_v38 = vpop.permute.xlu0 %1724  ;;  %v1781_v21 = vpop.permute.xlu1 %1780 }
 0x497   :  { %v4164_v43 = vadd.f32 %v1725_v38, %v1713_v19  ;;  %v4166_v63 = vpop.permute.xlu2 %1782 }
 0x498   :  { %v1786_v42 = vsel %vm238_vm5, %v1781_v21, %v4166_v63 }
 0x499   :  { %v1791_v45 = vadd.f32 %v1786_v42, %v1771_v22  ;;  %v2067_v22 = vmul.f32 %v3769_v41, %v4735_v34 }
 0x49c   :  { %2118 = vrot.lane.b32.xlu0 %v2112_v17, %s2572_s8  ;;  %2160 = vrot.lane.b32.xlu1 %v2153_v13, %s2574_s12  ;;  %v2048_v13 = vmul.f32 %v3772_v14, %v4733_v47 }
 0x49d   :  { %2036 = vrot.lane.b32.xlu2 %v2028_v60, %s2574_s12 }
 0x49e   :  { %v4179_v26 = vpop.permute.xlu0 %1744  ;;  %v1801_v51 = vpop.permute.xlu1 %1800 }
 0x49f   :  { %v1803_v25 = vpop.permute.xlu2 %1802 }
 0x4a0   :  { %v1806_v62 = vsel %vm258_vm6, %v1801_v51, %v1803_v25 }
 0x4a1   :  { %v1811_v3 = vadd.f32 %v1806_v62, %v1791_v45  ;;  %v4736_v45 = vld [vmem:[#allocation101_spill] sm:$0xff]  ;;  %v1837_v62 = vmul.f32 %v3695_v50, %v3618_v56 }
 0x4a2   :  { %v2173_v17 = vmul.f32 %v3769_v41, %v4736_v45 }
 0x4a4   :  { %2032 = vrot.lane.b32.xlu0 %v2026_v39, %s2574_s12  ;;  %2074 = vrot.lane.b32.xlu1 %v2067_v22, %s2576_s16  ;;  %v2046_v22 = vmul.f32 %v3695_v50, %v4733_v47  ;;  %v1727_v47 = vsel %vm178_vm2, %v4117_v54, %v1725_v38 }
 0x4a5   :  { %2142 = vrot.lane.b32.xlu2 %v2134_v30, %s2573_s10  ;;  %v2172_v30 = vmul.f32 %v3695_v50, %v4736_v45 }
 0x4a6   :  { %v4191_v0 = vpop.permute.xlu0 %1764  ;;  %v1821_v28 = vpop.permute.xlu1 %1820 }
 0x4a7   :  { %v1823_v19 = vpop.permute.xlu2 %1822 }
 0x4a8   :  { %v1826_v21 = vsel %vm278_vm7, %v1821_v28, %v1823_v19  ;;  %v2154_v28 = vmul.f32 %v3772_v14, %v4734_v35 }
 0x4a9   :  { %v4194_v42 = vadd.f32 %v1826_v21, %v1811_v3 }
 0x4ac   :  { %2138 = vrot.lane.b32.xlu0 %v2132_v24, %s2573_s10  ;;  %2180 = vrot.lane.b32.xlu1 %v2173_v17, %s2575_s14 }
 0x4ad   :  { %2056 = vrot.lane.b32.xlu2 %v2048_v13, %s2575_s14 }
 0x4ae   :  { %v4205_v60 = vpop.permute.xlu0 %1784  ;;  %v1847_v51 = vpop.permute.xlu1 %1846 }
 0x4af   :  { %v1849_v3 = vpop.permute.xlu2 %1848 }
 0x4b0   :  { %v1852_v10 = vsel %vm178_vm2, %v1847_v51, %v1849_v3 }
 0x4b1   :  { %v1857_v39 = vadd.f32 %v1852_v10, %v1837_v62  ;;  %v1712_v62 = vmul.f32 %v3769_v41, %v3303_v36  ;;  %v2152_v10 = vmul.f32 %v3695_v50, %v4734_v35  ;;  %v1767_v36 = vsel %vm218_vm4, %v4147_v7, %v4191_v0 }
 0x4b2   :  { %v2066_v7 = vmul.f32 %v3695_v50, %v4735_v34 }
 0x4b4   :  { %2052 = vrot.lane.b32.xlu0 %v2046_v22, %s2575_s14  ;;  %2178 = vrot.lane.b32.xlu1 %v2172_v30, %s2575_s14  ;;  %v2192_v22 = vmul.f32 %v3695_v50, %v3261_v52  ;;  %v1747_v30 = vsel %vm198_vm3, %v4131_v1, %v4179_v26  ;;  %v1787_v1 = vsel %vm238_vm5, %v4166_v63, %v4205_v60 }
 0x4b5   :  { %2162 = vrot.lane.b32.xlu2 %v2154_v28, %s2574_s12  ;;  %v2068_v28 = vmul.f32 %v3772_v14, %v4735_v34  ;;  %v2174_v63 = vmul.f32 %v3772_v14, %v4736_v45 }
 0x4b6   :  { %v4219_v21 = vpop.permute.xlu0 %1804  ;;  %v1867_v24 = vpop.permute.xlu1 %1866 }
 0x4b7   :  { %v1869_v17 = vpop.permute.xlu2 %1868 }
 0x4b8   :  { %v1872_v13 = vsel %vm198_vm3, %v1867_v24, %v1869_v17  ;;  %v1732_v24 = vadd.f32 %v1727_v47, %v1712_v62  ;;  %v1807_v62 = vsel %vm258_vm6, %v1803_v25, %v4219_v21  ;;  %v1839_v25 = vmul.f32 %v3772_v14, %v3618_v56 }
 0x4b9   :  { %v1877_v51 = vadd.f32 %v1872_v13, %v1857_v39 }
 0x4ba   :  { %v1752_v54 = vadd.f32 %v1747_v30, %v1732_v24  ;;  %v4737_v30 = vld [vmem:[#allocation74_spill] sm:$0xff] }
 0x4bc   :  { %2158 = vrot.lane.b32.xlu0 %v2152_v10, %s2574_s12  ;;  %2198 = vrot.lane.b32.xlu1 %v2192_v22, %s2576_s16  ;;  %v1772_v13 = vadd.f32 %v1767_v36, %v1752_v54  ;;  %v1838_v54 = vmul.f32 %v3769_v41, %v3618_v56  ;;  %s2367_s12 = sshll.u32 %s4438_s4, 4  ;;  %s2368_s12 = int_to_ptr.hbm [resolvable:$true] %s2367_s12 }
 0x4bd   :  { %2076 = vrot.lane.b32.xlu2 %v2068_v28, %s2576_s16  ;;  %v1941_v28 = vmul.f32 %v3769_v41, %v4737_v30 }
 0x4be   :  { %v4241_v38 = vpop.permute.xlu0 %1824  ;;  %v1887_v35 = vpop.permute.xlu1 %1886  ;;  %v1792_v22 = vadd.f32 %v1787_v1, %v1772_v13 }
 0x4bf   :  { %v1889_v39 = vpop.permute.xlu2 %1888  ;;  %v1827_v24 = vsel %vm278_vm7, %v1823_v19, %v4241_v38 }
 0x4c0   :  { %v1892_v47 = vsel %vm218_vm4, %v1887_v35, %v1889_v39  ;;  %v1812_v36 = vadd.f32 %v1807_v62, %v1792_v22 }
 0x4c1   :  { %v1897_v10 = vadd.f32 %v1892_v47, %v1877_v51 }
 0x4c2   :  { %v1832_v34 = vadd.f32 %v1827_v24, %v1812_v36  ;;  %v1922_v36 = vmul.f32 %v3772_v14, %v4725_v31 }
 0x4c4   :  { %2072 = vrot.lane.b32.xlu0 %v2066_v7, %s2576_s16  ;;  %1948 = vrot.lane.b32.xlu1 %v1941_v28, %s2576_s16  ;;  %v1835_v22 = vmul.f32 %v1832_v34, %v3396_v44  ;;  %v2194_v7 = vmul.f32 %v3772_v14, %v3261_v52  ;;  %v2193_v28 = vmul.f32 %v3769_v41, %v3261_v52 }
 0x4c5   :  { %2182 = vrot.lane.b32.xlu2 %v2174_v63, %s2575_s14  ;;  %v1921_v52 = vmul.f32 %v3769_v41, %v4725_v31  ;;  %v1963_v34 = vmul.f32 %v3695_v50, %v3430_v48 }
 0x4c6   :  { %v1851_v51 = vpop.permute.xlu0 %1850  ;;  %v1907_v35 = vpop.permute.xlu1 %1906 }
 0x4c7   :  { %v1853_v19 = vsel %vm178_vm2, %v1849_v3, %v1851_v51  ;;  %v1859_v1 = vadd.f32 %v1851_v51, %v1839_v25  ;;  %v1909_v45 = vpop.permute.xlu2 %1908 }
 0x4c8   :  { %v1858_v13 = vadd.f32 %v1853_v19, %v1838_v54  ;;  %v1912_v47 = vsel %vm238_vm5, %v1907_v35, %v1909_v45 }
 0x4c9   :  { %v4266_v62 = vadd.f32 %v1912_v47, %v1897_v10 }
 0x4cc   :  { %2202 = vrot.lane.b32.xlu0 %v2194_v7, %s2576_s16  ;;  %2235 = vrot.lane.b32.xlu1 %v1835_v22, %s2582_s19  ;;  %v1940_v22 = vmul.f32 %v3695_v50, %v4737_v30 }
 0x4cd   :  { %2200 = vrot.lane.b32.xlu2 %v2193_v28, %s2576_s16  ;;  %v1942_v28 = vmul.f32 %v3772_v14, %v4737_v30 }
 0x4ce   :  { %v1871_v56 = vpop.permute.xlu0 %1870  ;;  %v4276_v3 = vpop.permute.xlu1 %1926 }
 0x4cf   :  { %v1873_v10 = vsel %vm198_vm3, %v1869_v17, %v1871_v56  ;;  %v1879_v24 = vadd.f32 %v1871_v56, %v1859_v1  ;;  %v4279_v63 = vpop.permute.xlu2 %1974  ;;  %v1753_v17 = vadd.f32 %v4179_v26, %v4164_v43  ;;  %v2091_v56 = vmul.f32 %v3772_v14, %v3510_v53 }
 0x4d0   :  { %v1878_v44 = vadd.f32 %v1873_v10, %v1858_v13 }
 0x4d1   :  { %v1773_v47 = vadd.f32 %v4191_v0, %v1753_v17 }
 0x4d3   :  { %v1793_v7 = vadd.f32 %v4205_v60, %v1773_v47  ;;  %v2090_v60 = vmul.f32 %v3769_v41, %v3510_v53 }
 0x4d4   :  { %1930 = vrot.lane.b32.xlu0 %v1922_v36, %s2575_s14 }
 0x4d5   :  { %1928 = vrot.lane.b32.xlu2 %v1921_v52, %s2575_s14  ;;  %v1813_v43 = vadd.f32 %v4219_v21, %v1793_v7 }
 0x4d6   :  { %v1891_v25 = vpop.permute.xlu0 %1890  ;;  %v1973_v51 = vpop.permute.xlu1 %1972 }
 0x4d7   :  { %v1893_v54 = vsel %vm218_vm4, %v1889_v39, %v1891_v25  ;;  %v1899_v35 = vadd.f32 %v1891_v25, %v1879_v24  ;;  %v1978_v19 = vsel %vm178_vm2, %v1973_v51, %v4279_v63  ;;  %v1995_v1 = vpop.permute.xlu2 %1994  ;;  %v1833_v0 = vadd.f32 %v4241_v38, %v1813_v43 }
 0x4d8   :  { %v1898_v31 = vadd.f32 %v1893_v54, %v1878_v44  ;;  %v1983_v13 = vadd.f32 %v1978_v19, %v1963_v34 }
 0x4d9   :  { %v1836_v25 = vmul.f32 %v1833_v0, %v3225_v59 }
 0x4dc   :  { %1946 = vrot.lane.b32.xlu0 %v1940_v22, %s2576_s16 }
 0x4dd   :  { %1950 = vrot.lane.b32.xlu2 %v1942_v28, %s2576_s16 }
 0x4de   :  { %v1911_v26 = vpop.permute.xlu0 %1910  ;;  %v2101_v39 = vpop.permute.xlu1 %2100 }
 0x4df   :  { %v1913_v10 = vsel %vm238_vm5, %v1909_v45, %v1911_v26  ;;  %v4307_v24 = vadd.f32 %v1911_v26, %v1899_v35  ;;  %v2103_v30 = vpop.permute.xlu2 %2102  ;;  %v1834_v45 = vmul.f32 %v4194_v42, %v3193_v18  ;;  %v2089_v18 = vmul.f32 %v3695_v50, %v3510_v53 }
 0x4e0   :  { %v4311_v44 = vadd.f32 %v1913_v10, %v1898_v31  ;;  %v2105_v21 = vsel %vm178_vm2, %v2101_v39, %v2103_v30  ;;  %v2111_v36 = vadd.f32 %v2103_v30, %v2091_v56  ;;  %v1964_v50 = vmul.f32 %v3769_v41, %v3430_v48 }
 0x4e1   :  { %v2110_v52 = vadd.f32 %v2105_v21, %v2090_v60 }
 0x4e5   :  { %2237 = vrot.lane.b32.xlu2 %v1836_v25, %s2582_s19 }
 0x4e6   :  { %v1977_v34 = vpop.permute.xlu0 %1976  ;;  %v2015_v38 = vpop.permute.xlu1 %2014 }
 0x4e7   :  { %v2017_v51 = vpop.permute.xlu2 %2016  ;;  %v1979_v53 = vsel %vm178_vm2, %v4279_v63, %v1977_v34 }
 0x4ed   :  { %2233 = vrot.lane.b32.xlu2 %v1834_v45, %s2582_s19  ;;  %v1984_v45 = vadd.f32 %v1979_v53, %v1964_v50 }
 0x4ee   :  { %v1997_v17 = vpop.permute.xlu0 %1996  ;;  %v2121_v54 = vpop.permute.xlu1 %2120 }
 0x4ef   :  { %v2123_v35 = vpop.permute.xlu2 %2122 }
 0x4f0   :  { %v2125_v19 = vsel %vm198_vm3, %v2121_v54, %v2123_v35  ;;  %v4320_v31 = vadd.f32 %v2123_v35, %v2111_v36 }
 0x4f1   :  { %v4322_v47 = vadd.f32 %v2125_v19, %v2110_v52 }
 0x4f6   :  { %v1993_v59 = vpop.permute.xlu0 %1992  ;;  %v2035_v22 = vpop.permute.xlu1 %2034 }
 0x4f7   :  { %v1998_v7 = vsel %vm198_vm3, %v1993_v59, %v1995_v1  ;;  %v2037_v28 = vpop.permute.xlu2 %2036 }
 0x4f8   :  { %v2003_v43 = vadd.f32 %v1998_v7, %v1983_v13  ;;  %v1965_v13 = vmul.f32 %v3772_v14, %v3430_v48  ;;  %v2019_v14 = vsel %vm218_vm4, %v2015_v38, %v2017_v51  ;;  %v2039_v63 = vsel %vm238_vm5, %v2035_v22, %v2037_v28 }
 0x4fa   :  { %v1985_v25 = vadd.f32 %v1977_v34, %v1965_v13 }
 0x4fc   :  { %v2005_v35 = vadd.f32 %v1997_v17, %v1985_v25 }
 0x4fe   :  { %v2099_v42 = vpop.permute.xlu0 %2098  ;;  %v4327_v26 = vpop.permute.xlu1 %2140 }
 0x4ff   :  { %v2104_v56 = vsel %vm178_vm2, %v2099_v42, %v2101_v39  ;;  %v4330_v0 = vpop.permute.xlu2 %2142  ;;  %v1999_v39 = vsel %vm198_vm3, %v1995_v1, %v1997_v17  ;;  %vm4741_vm2 = vcmask 1031168  }
 0x500   :  { %v2109_v10 = vadd.f32 %v2104_v56, %v2089_v18  ;;  %v2004_v7 = vadd.f32 %v1999_v39, %v1984_v45  ;;  %v2025_v56 = vadd.f32 %v2017_v51, %v2005_v35 }
 0x506   :  { %v2013_v60 = vpop.permute.xlu0 %2012  ;;  %v2055_v30 = vpop.permute.xlu1 %2054 }
 0x507   :  { %v2018_v21 = vsel %vm218_vm4, %v2013_v60, %v2015_v38  ;;  %v2057_v36 = vpop.permute.xlu2 %2056  ;;  %v2024_v60 = vadd.f32 %v2019_v14, %v2004_v7 }
 0x508   :  { %v2023_v52 = vadd.f32 %v2018_v21, %v2003_v43  ;;  %v2045_v21 = vadd.f32 %v2037_v28, %v2025_v56  ;;  %v2059_v48 = vsel %vm258_vm6, %v2055_v30, %v2057_v36 }
 0x509   :  { %v2044_v41 = vadd.f32 %v2039_v63, %v2024_v60 }
 0x50a   :  { %v2065_v1 = vadd.f32 %v2057_v36, %v2045_v21 }
 0x50b   :  { %v2064_v13 = vadd.f32 %v2059_v48, %v2044_v41 }
 0x50e   :  { %v2119_v19 = vpop.permute.xlu0 %2118  ;;  %v2161_v59 = vpop.permute.xlu1 %2160 }
 0x50f   :  { %v2124_v18 = vsel %vm198_vm3, %v2119_v19, %v2121_v54  ;;  %v2163_v43 = vpop.permute.xlu2 %2162  ;;  %vm4742_vm3 = vmmov %vm4741_vm2 }
 0x510   :  { %v2129_v42 = vadd.f32 %v2124_v18, %v2109_v10 }
 0x516   :  { %v2033_v34 = vpop.permute.xlu0 %2032  ;;  %v2075_v17 = vpop.permute.xlu1 %2074 }
 0x517   :  { %v2077_v53 = vpop.permute.xlu2 %2076 }
 0x518   :  { %v2079_v50 = vsel %vm278_vm7, %v2075_v17, %v2077_v53  ;;  %v2085_v54 = vadd.f32 %v2077_v53, %v2065_v1 }
 0x519   :  { %v2084_v25 = vadd.f32 %v2079_v50, %v2064_v13 }
 0x51a   :  { %v2088_v10 = vmul.f32 %v2085_v54, %v3434_v46  ;;  %v2038_v46 = vsel %vm238_vm5, %v2033_v34, %v2035_v22 }
 0x51b   :  { %v2087_v38 = vmul.f32 %v2084_v25, %v3466_v40  ;;  %v2043_v21 = vadd.f32 %v2038_v46, %v2023_v52  ;;  %v2165_v52 = vsel %vm238_vm5, %v2161_v59, %v2163_v43 }
 0x51c   :  { %2254 = vrot.lane.b32.xlu1 %v2088_v10, %s2582_s19 }
 0x51d   :  { %2252 = vrot.lane.b32.xlu0 %v2087_v38, %s2582_s19 }
 0x51e   :  { %v2139_v51 = vpop.permute.xlu0 %2138  ;;  %v2181_v28 = vpop.permute.xlu1 %2180 }
 0x51f   :  { %v2183_v39 = vpop.permute.xlu2 %2182  ;;  %v2144_v40 = vsel %vm218_vm4, %v2139_v51, %v4327_v26 }
 0x520   :  { %v2149_v48 = vadd.f32 %v2144_v40, %v2129_v42  ;;  %v4738_v40 = vld [vmem:[#allocation17_spill] sm:$0xff] }
 0x526   :  { %v2053_v36 = vpop.permute.xlu0 %2052  ;;  %v2179_v45 = vpop.permute.xlu1 %2178 }
 0x527   :  { %v2201_v35 = vpop.permute.xlu2 %2200  ;;  %v2058_v63 = vsel %vm258_vm6, %v2053_v36, %v2055_v30  ;;  %v2151_v30 = vadd.f32 %v4330_v0, %v4320_v31  ;;  %v2184_v42 = vsel %vm258_vm6, %v2179_v45, %v2181_v28 }
 0x528   :  { %v2063_v41 = vadd.f32 %v2058_v63, %v2043_v21  ;;  %v4739_v63 = vld [vmem:[#allocation30_spill] sm:$0xff] }
 0x529   :  { %v2171_v38 = vadd.f32 %v2163_v43, %v2151_v30 }
 0x52b   :  { %v2191_v51 = vadd.f32 %v2183_v39, %v2171_v38 }
 0x52e   :  { %v2159_v19 = vpop.permute.xlu0 %2158  ;;  %v2199_v7 = vpop.permute.xlu1 %2198 }
 0x52f   :  { %v1929_v18 = vpop.permute.xlu2 %1928  ;;  %v2164_v60 = vsel %vm238_vm5, %v2159_v19, %v2161_v59  ;;  %v2204_v36 = vsel %vm278_vm7, %v2199_v7, %v2201_v35  ;;  %vm4744_vm5 = vmmov %vm4741_vm2 }
 0x530   :  { %v1932_v14 = vsel %vm258_vm6, %v4276_v3, %v1929_v18  ;;  %v2169_v1 = vadd.f32 %v2164_v60, %v2149_v48  ;;  %v2145_v3 = vsel %vm218_vm4, %v4327_v26, %v4330_v0  ;;  %v2185_v26 = vsel %vm258_vm6, %v2181_v28, %v2183_v39  ;;  %v4740_v60 = vld [vmem:[#allocation108_spill] sm:$0xff]  ;;  %vm4743_vm4 = vmmov %vm4741_vm2 }
 0x531   :  { %v1937_v56 = vadd.f32 %v1932_v14, %v4266_v62  ;;  %v2150_v54 = vadd.f32 %v2145_v3, %v4322_v47  ;;  %v1583_v21 = vmul.f32 %v4063_v6, %v4740_v60  ;;  %v1709_v6 = vmul.f32 %v4149_v27, %v3582_v61 }
 0x532   :  { %v2189_v25 = vadd.f32 %v2184_v42, %v2169_v1 }
 0x534   :  { %v2209_v31 = vadd.f32 %v2204_v36, %v2189_v25 }
 0x536   :  { %v2073_v13 = vpop.permute.xlu0 %2072  ;;  %v1949_v53 = vpop.permute.xlu1 %1948 }
 0x537   :  { %v2078_v22 = vsel %vm278_vm7, %v2073_v13, %v2075_v17  ;;  %v1951_v34 = vpop.permute.xlu2 %1950  ;;  %v2170_v17 = vadd.f32 %v2165_v52, %v2150_v54  ;;  %v1708_v13 = vmul.f32 %v4103_v4, %v4655_v20 }
 0x538   :  { %v2083_v50 = vadd.f32 %v2078_v22, %v2063_v41  ;;  %v1953_v62 = vsel %vm278_vm7, %v1949_v53, %v1951_v34 }
 0x539   :  { %v2190_v19 = vadd.f32 %v2185_v26, %v2170_v17 }
 0x53a   :  { %v2086_v10 = vmul.f32 %v2083_v50, %v3462_v12  ;;  %v2212_v12 = vmul.f32 %v2209_v31, %v3490_v37 }
 0x53c   :  { %2250 = vrot.lane.b32.xlu0 %v2086_v10, %s2582_s19 }
 0x53e   :  { %v2203_v0 = vpop.permute.xlu0 %2202  ;;  %v2236_v41 = vpop.permute.xlu1 %2235 }
 0x53f   :  { %v2205_v59 = vsel %vm278_vm7, %v2201_v35, %v2203_v0  ;;  %v2211_v45 = vadd.f32 %v2203_v0, %v2191_v51  ;;  %v2238_v28 = vpop.permute.xlu2 %2237 }
 0x540   :  { %v2210_v14 = vadd.f32 %v2205_v59, %v2190_v19 }
 0x541   :  { %v2214_v47 = vmul.f32 %v2211_v45, %v3537_v55  ;;  %v1584_v55 = vmul.f32 %v4061_v32, %v4738_v40  ;;  %v1710_v32 = vmul.f32 %v4145_v11, %v4662_v15  ;;  %v1458_v45 = vmul.f32 %v3985_v16, %v287_v29 }
 0x542   :  { %v2213_v43 = vmul.f32 %v2210_v14, %v3612_v49  ;;  %v1582_v49 = vmul.f32 %v4025_v57, %v4739_v63  ;;  %v1457_v14 = vmul.f32 %v3949_v33, %v286_v8 }
 0x543   :  { %2286 = vrot.lane.b32.xlu2 %v2214_v47, %s2583_s23  ;;  %v2246_v22 = vadd.f32 %v2238_v28, %v1710_v32 }
 0x544   :  { %2284 = vrot.lane.b32.xlu1 %v2213_v43, %s2583_s23  ;;  %2282 = vrot.lane.b32.xlu0 %v2212_v12, %s2583_s23 }
 0x546   :  { %v1931_v39 = vpop.permute.xlu0 %1930 }
 0x547   :  { %v1933_v7 = vsel %vm258_vm6, %v1929_v18, %v1931_v39  ;;  %v1939_v35 = vadd.f32 %v1931_v39, %v4307_v24  ;;  %v2234_v1 = vpop.permute.xlu2 %2233  ;;  %vm4745_vm6 = vcmask 1014784  }
 0x548   :  { %v1938_v46 = vadd.f32 %v1933_v7, %v4311_v44  ;;  %v2240_v44 = vsel %vm1171_vm11, %v2236_v41, %v2238_v28  ;;  %v2239_v57 = vsel %vm1171_vm11, %v2234_v1, %v2236_v41 }
 0x549   :  { %v1959_v37 = vadd.f32 %v1951_v34, %v1939_v35  ;;  %v2245_v34 = vadd.f32 %v2240_v44, %v1709_v6  ;;  %v2244_v50 = vadd.f32 %v2239_v57, %v1708_v13 }
 0x54a   :  { %v1958_v48 = vadd.f32 %v1953_v62, %v1938_v46 }
 0x54b   :  { %2222 = vrot.lane.b32.xlu2 %v1584_v55, %s2582_s19  ;;  %v1962_v11 = vmul.f32 %v1959_v37, %v3384_v5 }
 0x54c   :  { %2220 = vrot.lane.b32.xlu1 %v1583_v21, %s2582_s19  ;;  %2218 = vrot.lane.b32.xlu0 %v1582_v49, %s2582_s19 }
 0x54e   :  { %v1947_v24 = vpop.permute.xlu0 %1946 }
 0x54f   :  { %v1952_v18 = vsel %vm278_vm7, %v1947_v24, %v1949_v53  ;;  %vm4746_vm7 = vmmov %vm4745_vm6 }
 0x550   :  { %v1957_v3 = vadd.f32 %v1952_v18, %v1937_v56  ;;  %v1961_v56 = vmul.f32 %v1958_v48, %v3678_v58 }
 0x552   :  { %v1960_v52 = vmul.f32 %v1957_v3, %v4677_v23 }
 0x553   :  { %2271 = vrot.lane.b32.xlu2 %v2246_v22, %s2583_s23 }
 0x554   :  { %2269 = vrot.lane.b32.xlu1 %v2245_v34, %s2583_s23  ;;  %2267 = vrot.lane.b32.xlu0 %v2244_v50, %s2583_s23 }
 0x58e   :  { %v2255_v15 = vpop.permute.xlu1 %2254 }
 0x58f   :  { %v2263_v53 = vadd.f32 %v2255_v15, %v1962_v11  ;;  %v2253_v61 = vpop.permute.xlu0 %2252 }
 0x590   :  { %v2257_v4 = vsel %vm1171_vm11, %v2253_v61, %v2255_v15 }
 0x591   :  { %v2262_v42 = vadd.f32 %v2257_v4, %v1961_v56 }
 0x59d   :  { %v2287_v62 = vpop.permute.xlu2 %2286 }
 0x59e   :  { %v2295_v30 = vadd.f32 %v2287_v62, %v2263_v53 }
 0x5a0   :  { %2303 = vrot.lane.b32.xlu2 %v2295_v30, %s2584_s25 }
 0x5a5   :  { %v2223_v51 = vpop.permute.xlu2 %2222 }
 0x5ad   :  { %v2272_v58 = vpop.permute.xlu2 %2271 }
 0x5ae   :  { %v2251_v20 = vpop.permute.xlu0 %2250 }
 0x5af   :  { %v2256_v27 = vsel %vm1171_vm11, %v2251_v20, %v2253_v61 }
 0x5b0   :  { %v2261_v54 = vadd.f32 %v2256_v27, %v1960_v52  ;;  %v4747_v52 = vld [vmem:[#allocation16_spill] sm:$0xff] }
 0x5b6   :  { %v2285_v25 = vpop.permute.xlu1 %2284  ;;  %v2283_v10 = vpop.permute.xlu0 %2282 }
 0x5b7   :  { %v2289_v5 = vsel %vm4741_vm2, %v2285_v25, %v2287_v62  ;;  %v2288_v38 = vsel %vm4742_vm3, %v2283_v10, %v2285_v25 }
 0x5b8   :  { %v2294_v26 = vadd.f32 %v2289_v5, %v2262_v42  ;;  %v2293_v17 = vadd.f32 %v2288_v38, %v2261_v54 }
 0x5ba   :  { %2299 = vrot.lane.b32.xlu0 %v2293_v17, %s2584_s25  ;;  %2301 = vrot.lane.b32.xlu1 %v2294_v26, %s2584_s25 }
 0x5be   :  { %v2221_v36 = vpop.permute.xlu1 %2220  ;;  %v2219_v19 = vpop.permute.xlu0 %2218 }
 0x5bf   :  { %v2225_v0 = vsel %vm1171_vm11, %v2221_v36, %v2223_v51  ;;  %v2224_v59 = vsel %vm1171_vm11, %v2219_v19, %v2221_v36 }
 0x5c0   :  { %v2229_v43 = vadd.f32 %v2225_v0, %v1458_v45  ;;  %v2228_v28 = vadd.f32 %v2224_v59, %v1457_v14 }
 0x5c6   :  { %v2270_v31 = vpop.permute.xlu1 %2269  ;;  %v2268_v23 = vpop.permute.xlu0 %2267 }
 0x5c7   :  { %v2274_v47 = vsel %vm4743_vm4, %v2270_v31, %v2272_v58  ;;  %v2273_v12 = vsel %vm4744_vm5, %v2268_v23, %v2270_v31 }
 0x5c8   :  { %v2278_v7 = vadd.f32 %v2274_v47, %v2229_v43  ;;  %v2277_v35 = vadd.f32 %v2273_v12, %v2228_v28 }
 0x5fa   :  { %v2304_v39 = vpop.permute.xlu2 %2303 }
 0x62c   :  { %v2300_v46 = vpop.permute.xlu0 %2299  ;;  %v2302_v40 = vpop.permute.xlu1 %2301 }
 0x62d   :  { %v2305_v55 = vsel %vm4745_vm6, %v2300_v46, %v2302_v40  ;;  %v2306_v37 = vsel %vm4746_vm7, %v2302_v40, %v2304_v39 }
 0x62e   :  { %v2309_v29 = vadd.f32 %v2305_v55, %v2277_v35  ;;  %v2310_v16 = vadd.f32 %v2306_v37, %v2278_v7 }
 0x630   :  { %v2311_v9 = vadd.f32 %v2309_v29, %v3783_v2  ;;  %v2312_v8 = vadd.f32 %v2310_v16, %v3783_v2 }
 0x632   :  { %v2432_v33 = vmul.f32 -1.442695, %v2311_v9  ;;  %v2433_v63 = vmul.f32 -1.442695, %v2312_v8 }
 0x634   :  { %2464 = vpow2.f32 %v2432_v33 }
 0x635   :  { %2466 = vpow2.f32 %v2433_v63 }
 0x63a   :  { %v2465_v49 = vpop.eup %2464 }
 0x63b   :  { %v2467_v60 = vpop.eup %2466  ;;  %v2319_v21 = vadd.f32 1.0, %v2465_v49 }
 0x63c   :  { %v2320_v48 = vadd.f32 1.0, %v2467_v60 }
 0x63d   :  { %2468 = vrcp.f32 %v2319_v21  ;;  %v2332_v6 = vand.u32 2147483648, %v2319_v21  ;;  %v2330_v13 = vand.u32 2147483647, %v2319_v21  ;;  %vm2326_vm8 = vweird.f32 %v2319_v21 }
 0x63e   :  { %2470 = vrcp.f32 %v2320_v48  ;;  %v2347_v2 = vand.u32 2147483648, %v2320_v48  ;;  %v2345_v22 = vand.u32 2147483647, %v2320_v48  ;;  %vm2341_vm9 = vweird.f32 %v2320_v48 }
 0x63f   :  { %v2333_v11 = vor.u32 1.1754944e-38, %v2332_v6  ;;  %vm2331_vm12 = vcmp.eq.f32.partialorder %v2330_v13, 8.507059e+37 }
 0x640   :  { %v2348_v53 = vor.u32 1.1754944e-38, %v2347_v2  ;;  %vm2346_vm13 = vcmp.eq.f32.partialorder %v2345_v22, 8.507059e+37 }
 0x643   :  { %v2469_v41 = vpop.eup %2468 }
 0x644   :  { %v2471_v1 = vpop.eup %2470  ;;  %v2322_v24 = vmul.f32 %v2469_v41, %v2319_v21  ;;  %vm2327_vm11 = vweird.f32 %v2469_v41 }
 0x645   :  { %v2337_v32 = vmul.f32 %v2471_v1, %v2320_v48  ;;  %vm2342_vm15 = vweird.f32 %v2471_v1  ;;  %vm2328_vm1 = vmor %vm2326_vm8, %vm2327_vm11 }
 0x646   :  { %v2323_v44 = vsub.f32 1.0, %v2322_v24  ;;  %vm2343_vm10 = vmor %vm2341_vm9, %vm2342_vm15 }
 0x647   :  { %v2338_v57 = vsub.f32 1.0, %v2337_v32 }
 0x648   :  { %v2324_v18 = vmul.f32 %v2469_v41, %v2323_v44 }
 0x649   :  { %v2339_v3 = vmul.f32 %v2471_v1, %v2338_v57 }
 0x64a   :  { %v2325_v34 = vadd.f32 %v2469_v41, %v2324_v18 }
 0x64b   :  { %v2340_v50 = vadd.f32 %v2471_v1, %v2339_v3 }
 0x64c   :  { %v2329_v15 = vsel %vm2328_vm1, %v2469_v41, %v2325_v34 }
 0x64d   :  { %v2344_v62 = vsel %vm2343_vm10, %v2471_v1, %v2340_v50  ;;  %v2334_v30 = vsel %vm2331_vm12, %v2333_v11, %v2329_v15 }
 0x64e   :  { %v2349_v61 = vsel %vm2346_vm13, %v2348_v53, %v2344_v62  ;;  %v2351_v4 = vperm.slane %v2334_v30, 0 }
 0x64f   :  { %v2352_v20 = vperm.slane %v2349_v61, 0 }
 0x651   :  { %v2355_v27 = vrot.slane %v2352_v20, 4 }
 0x653   :  { %v2356_v56 = vsel %vm132_vm0, %v2351_v4, %v2355_v27 }
 0x654   :  { %v2358_v42 = vmul.f32 %v2356_v56, %v4747_v52 }
 0x656   :  { %2360 = vst [vmem:[#allocation10 + $0x8] sm:$0xff] %v2358_v42 }
 0x657   :  { %2373 = dma.vmem_to_hbm [thread:$0]  %s2366_s6, 256, %s2368_s12, [#allocation5], %s2567_s0, %s2567_s0, %s2568_s29  }
 0x658   :  { %2562 = dma.done.wait [#allocation5], 256  }
 0x659   :  { %2563 = vsyncadd [#allocation5], 4294967040 }
 0x65a   :  { %2378 = vsyncpa [#allocation4], 1 }
 0x65b   :  { %2379 = vsyncpa [#allocation9], 1 }
 0x65c   :  { %2380 = vsyncpa [#allocation5], 1 }
 0x65d   :  { %2381 = vsyncpa [#allocation6], 1 }

</bundles_post_ra>
